<compile_context>
chip_gen: v7x
topology: tpu7x:2x2x1
jax: 0.10.0
libtpu: 0.0.40
codegen_flags: <defaults>
</compile_context>

<pallas_src>
import functools

import jax
import jax.numpy as jnp
from jax.experimental import pallas as pl
from jax.experimental.pallas import tpu as pltpu

LEAKY_SLOPE = 0.2
BN_EPS = 1e-5
LANES = 128
TILE_M = 256                       # rows (N*Ho*Wo) per block
VMEM_LIMIT = 48 * 1024 * 1024      # stays below v7x's 64 MiB physical VMEM


def _round_up(x, m):
    return (x + m - 1) // m * m


# ----------------------------- kernels --------------------------------------

def _make_conv_bias_act_kernel(has_act):
    """im2col conv matmul + bias (+ LeakyReLU). Grid over M tiles, parallel."""
    def kernel(p_ref, w_ref, b_ref, o_ref):
        y = jnp.dot(p_ref[...], w_ref[...], preferred_element_type=jnp.float32)
        y = y + b_ref[...]
        if has_act:
            y = jnp.where(y > 0, y, LEAKY_SLOPE * y)
        o_ref[...] = y.astype(o_ref.dtype)
    return kernel


def _conv_stats_kernel(p_ref, w_ref, y_ref, stats_ref):
    """Conv matmul (no bias) + per-channel sum / sum-of-squares accumulated
    across all M tiles into a resident (8, C) stats block (rows 0 and 1)."""
    y = jnp.dot(p_ref[...], w_ref[...], preferred_element_type=jnp.float32)

    @pl.when(pl.program_id(0) == 0)
    def _():
        stats_ref[...] = jnp.zeros_like(stats_ref)

    s = jnp.sum(y, axis=0, keepdims=True)        # (1, C)
    ss = jnp.sum(y * y, axis=0, keepdims=True)   # (1, C)
    row = jax.lax.broadcasted_iota(jnp.int32, stats_ref.shape, 0)
    contrib = jnp.where(row == 0, s, 0.0) + jnp.where(row == 1, ss, 0.0)
    stats_ref[...] += contrib
    y_ref[...] = y.astype(y_ref.dtype)


def _bn_act_kernel(y_ref, scale_ref, shift_ref, o_ref):
    """Apply fused BN affine (y*scale + shift) + LeakyReLU (all BN layers in
    this module are followed by LeakyReLU). Grid over M tiles, parallel."""
    y = y_ref[...].astype(jnp.float32) * scale_ref[...] + shift_ref[...]
    y = jnp.where(y > 0, y, LEAKY_SLOPE * y)
    o_ref[...] = y.astype(o_ref.dtype)


# --------------------------- layer wrapper ----------------------------------

def _im2col(x_nhwc, k, stride, pad):
    N, H, W, C = x_nhwc.shape
    xp = jnp.pad(x_nhwc, ((0, 0), (pad, pad), (pad, pad), (0, 0)))
    Ho = (H + 2 * pad - k) // stride + 1
    Wo = (W + 2 * pad - k) // stride + 1
    cols = []
    for kh in range(k):
        for kw in range(k):
            patch = jax.lax.slice(
                xp,
                (0, kh, kw, 0),
                (N, kh + stride * (Ho - 1) + 1, kw + stride * (Wo - 1) + 1, C),
                (1, stride, stride, 1))
            cols.append(patch)  # [N, Ho, Wo, C]
    patches = jnp.concatenate(cols, axis=-1)  # (kh, kw, cin) ordering
    return patches.reshape(N * Ho * Wo, k * k * C), (N, Ho, Wo)


def conv_block_pallas(x_nhwc, w_hwio, bias, gamma, beta, *, stride, pad,
                      has_bias, has_bn, has_act, out_dtype=jnp.bfloat16):
    k = w_hwio.shape[0]
    c_out = w_hwio.shape[-1]
    patches, (N, Ho, Wo) = _im2col(x_nhwc, k, stride, pad)
    M, Kd = patches.shape

    # Lane/sublane-friendly padding.
    tile_m = min(TILE_M, _round_up(M, 8))
    m_pad = _round_up(M, tile_m)
    kd_pad = _round_up(Kd, LANES)
    c_pad = _round_up(c_out, LANES)

    p = jnp.pad(patches, ((0, m_pad - M), (0, kd_pad - Kd))).astype(jnp.bfloat16)
    w = jnp.pad(w_hwio.reshape(Kd, c_out),
                ((0, kd_pad - Kd), (0, c_pad - c_out))).astype(jnp.bfloat16)

    grid = (m_pad // tile_m,)
    p_spec = pl.BlockSpec((tile_m, kd_pad), lambda m: (m, 0))
    w_spec = pl.BlockSpec((kd_pad, c_pad), lambda m: (0, 0))
    row_spec = pl.BlockSpec((1, c_pad), lambda m: (0, 0))
    y_spec = pl.BlockSpec((tile_m, c_pad), lambda m: (m, 0))

    if not has_bn:
        b = jnp.pad(bias.astype(jnp.float32), (0, c_pad - c_out)).reshape(1, c_pad)
        y = pl.pallas_call(
            _make_conv_bias_act_kernel(has_act),
            out_shape=jax.ShapeDtypeStruct((m_pad, c_pad), out_dtype),
            grid=grid,
            in_specs=[p_spec, w_spec, row_spec],
            out_specs=y_spec,
            compiler_params=pltpu.CompilerParams(
                dimension_semantics=("parallel",),
                vmem_limit_bytes=VMEM_LIMIT),
        )(p, w, b)
    else:
        # Pass 1: conv matmul + global (cross-tile) sum / sumsq accumulation.
        # BN layers of this module have bias=False, so zero-padded rows
        # contribute exactly zero to the statistics.
        y_lin, stats = pl.pallas_call(
            _conv_stats_kernel,
            out_shape=(jax.ShapeDtypeStruct((m_pad, c_pad), jnp.bfloat16),
                       jax.ShapeDtypeStruct((8, c_pad), jnp.float32)),
            grid=grid,
            in_specs=[p_spec, w_spec],
            out_specs=(y_spec, pl.BlockSpec((8, c_pad), lambda m: (0, 0))),
            compiler_params=pltpu.CompilerParams(
                dimension_semantics=("arbitrary",),
                vmem_limit_bytes=VMEM_LIMIT),
        )(p, w)

        # Tiny per-channel reduction finish in plain JAX (f32, true row count).
        count = jnp.float32(M)
        mean = stats[0] / count
        var = stats[1] / count - mean * mean
        inv_std = jax.lax.rsqrt(var + BN_EPS)
        g = jnp.pad(gamma.astype(jnp.float32), (0, c_pad - c_out))
        be = jnp.pad(beta.astype(jnp.float32), (0, c_pad - c_out))
        scale = (g * inv_std).reshape(1, c_pad)
        shift = (be - mean * g * inv_std).reshape(1, c_pad)

        # Pass 2: normalize + affine + LeakyReLU, fully parallel over M tiles.
        y = pl.pallas_call(
            _bn_act_kernel,
            out_shape=jax.ShapeDtypeStruct((m_pad, c_pad), out_dtype),
            grid=grid,
            in_specs=[y_spec, row_spec, row_spec],
            out_specs=y_spec,
            compiler_params=pltpu.CompilerParams(
                dimension_semantics=("parallel",),
                vmem_limit_bytes=VMEM_LIMIT),
        )(y_lin, scale, shift)

    return y[:M, :c_out].reshape(N, Ho, Wo, c_out)


# ----------------------------- model ----------------------------------------

def init_discriminator_params(key, in_channels, num_filters_last=64, n_layers=3):
    # Mirror the PyTorch __init__ layer structure.
    specs = [(in_channels, num_filters_last, 2, True, False, True)]
    mult = 1
    for i in range(1, n_layers + 1):
        mult_last = mult
        mult = min(2 ** i, 8)
        specs.append((num_filters_last * mult_last, num_filters_last * mult,
                      2 if i < n_layers else 1, False, True, True))
    specs.append((num_filters_last * mult, 1, 1, True, False, False))  # conv_out

    params = []
    for (c_in, c_out, stride, has_bias, has_bn, has_act) in specs:
        key, kw_, kb_, kg_, kbe_ = jax.random.split(key, 5)
        fan_in = 4 * 4 * c_in
        w = jax.random.normal(kw_, (4, 4, c_in, c_out), jnp.float32) / jnp.sqrt(float(fan_in))
        b = (0.05 * jax.random.normal(kb_, (c_out,), jnp.float32)
             if has_bias else jnp.zeros((c_out,), jnp.float32))
        g = (1.0 + 0.1 * jax.random.normal(kg_, (c_out,), jnp.float32)
             if has_bn else jnp.ones((c_out,), jnp.float32))
        be = (0.05 * jax.random.normal(kbe_, (c_out,), jnp.float32)
              if has_bn else jnp.zeros((c_out,), jnp.float32))
        params.append(dict(w=w, b=b, gamma=g, beta=be, stride=stride, pad=1,
                           has_bias=has_bias, has_bn=has_bn, has_act=has_act))
    return params


def discriminator_forward(x_nchw, params):
    x = jnp.transpose(x_nchw, (0, 2, 3, 1))  # NCHW -> NHWC
    n_total = len(params)
    for idx, p in enumerate(params):
        last = idx == n_total - 1
        x = conv_block_pallas(
            x, p["w"], p["b"], p["gamma"], p["beta"],
            stride=p["stride"], pad=p["pad"],
            has_bias=p["has_bias"], has_bn=p["has_bn"], has_act=p["has_act"],
            out_dtype=jnp.float32 if last else jnp.bfloat16)
    return jnp.transpose(x, (0, 3, 1, 2))    # NHWC -> NCHW


def discriminator_forward_ref(x_nchw, params):
    # Pure-JAX f32 reference (lax.conv) used only for a sanity check.
    x = jnp.transpose(x_nchw, (0, 2, 3, 1))
    for p in params:
        y = jax.lax.conv_general_dilated(
            x, p["w"], (p["stride"], p["stride"]),
            [(p["pad"], p["pad"]), (p["pad"], p["pad"])],
            dimension_numbers=("NHWC", "HWIO", "NHWC"))
        if p["has_bias"]:
            y = y + p["b"]
        if p["has_bn"]:
            mean = jnp.mean(y, axis=(0, 1, 2), keepdims=True)
            var = jnp.mean((y - mean) ** 2, axis=(0, 1, 2), keepdims=True)
            y = (y - mean) * jax.lax.rsqrt(var + BN_EPS) * p["gamma"] + p["beta"]
        if p["has_act"]:
            y = jnp.where(y > 0, y, LEAKY_SLOPE * y)
        x = y
    return jnp.transpose(x, (0, 3, 1, 2))


if __name__ == "__main__":
    in_channels = 4
    num_filters_last = 16
    n_layers = 3
    N, H, W = 2, 64, 64  # 64x64 keeps all 4x4/pad-1 convs valid and exercises M tiling

    key = jax.random.PRNGKey(0)
    kx, kp = jax.random.split(key)
    x = jax.random.normal(kx, (N, in_channels, H, W), jnp.float32)
    params = init_discriminator_params(kp, in_channels, num_filters_last, n_layers)

    fwd = jax.jit(functools.partial(discriminator_forward, params=params))
    fwd_ref = jax.jit(functools.partial(discriminator_forward_ref, params=params))

    out = jax.block_until_ready(fwd(x))
    ref = jax.block_until_ready(fwd_ref(x))

    assert out.shape == (N, 1, 6, 6), out.shape
    assert jnp.allclose(out, ref, atol=5e-2, rtol=5e-2), float(jnp.max(jnp.abs(out - ref)))
    print("KERNEL_OK")
</pallas_src>

<mosaic_0001>
module attributes {stable_mosaic.version = 11 : i64} {
  func.func @kernel(%arg0: i32, %arg1: memref<256x128xbf16, #tpu.memory_space<vmem>>, %arg2: memref<128x128xbf16, #tpu.memory_space<vmem>>, %arg3: memref<1x128xf32, #tpu.memory_space<vmem>>, %arg4: memref<256x128xbf16, #tpu.memory_space<vmem>>) attributes {dimension_semantics = [#tpu.dimension_semantics<parallel>], iteration_bounds = array<i64: 8>, scalar_prefetch = 0 : i64, scratch_operands = 0 : i64, tpu.core_type = #tpu.core_type<tc>, window_params = [{transform_indices = @transform_0, window_bounds = array<i64: 256, 128>}, {pipeline_mode = #tpu.pipeline_mode<synchronous>, transform_indices = @transform_1, window_bounds = array<i64: 128, 128>}, {pipeline_mode = #tpu.pipeline_mode<synchronous>, transform_indices = @transform_2, window_bounds = array<i64: 1, 128>}, {transform_indices = @transform_3, window_bounds = array<i64: 256, 128>}]} {
    %c0 = arith.constant 0 : index
    %c0_0 = arith.constant 0 : index
    %0 = vector.load %arg1[%c0, %c0_0] : memref<256x128xbf16, #tpu.memory_space<vmem>>, vector<256x128xbf16>
    %c0_1 = arith.constant 0 : index
    %c0_2 = arith.constant 0 : index
    %1 = vector.load %arg2[%c0_1, %c0_2] : memref<128x128xbf16, #tpu.memory_space<vmem>>, vector<128x128xbf16>
    %cst = arith.constant dense<0.000000e+00> : vector<256x128xf32>
    %2 = tpu.matmul %0, %1, %cst {dimension_numbers = #tpu.dot_dimension_numbers<[1], [0], [0], [1], [0, 0, 1, 1], [], []>} : vector<256x128xbf16>, vector<128x128xbf16>, vector<256x128xf32> -> vector<256x128xf32>
    %c0_3 = arith.constant 0 : index
    %c0_4 = arith.constant 0 : index
    %3 = vector.load %arg3[%c0_3, %c0_4] : memref<1x128xf32, #tpu.memory_space<vmem>>, vector<1x128xf32>
    %4 = vector.broadcast %3 : vector<1x128xf32> to vector<256x128xf32>
    %5 = arith.addf %2, %4 : vector<256x128xf32>
    %cst_5 = arith.constant 0.000000e+00 : f32
    %6 = vector.broadcast %cst_5 : f32 to vector<256x128xf32>
    %7 = arith.cmpf ogt, %5, %6 : vector<256x128xf32>
    %cst_6 = arith.constant 2.000000e-01 : f32
    %8 = vector.broadcast %cst_6 : f32 to vector<256x128xf32>
    %9 = arith.mulf %8, %5 : vector<256x128xf32>
    %10 = arith.select %7, %5, %9 : vector<256x128xi1>, vector<256x128xf32>
    %11 = arith.truncf %10 : vector<256x128xf32> to vector<256x128xbf16>
    %c0_7 = arith.constant 0 : index
    %c0_8 = arith.constant 0 : index
    %12 = vector.load %arg4[%c0_7, %c0_8] : memref<256x128xbf16, #tpu.memory_space<vmem>>, vector<256x128xbf16>
    tpu.vector_store %arg4[%c0_7, %c0_8], %11 {strides = array<i32>} : memref<256x128xbf16, #tpu.memory_space<vmem>>, vector<256x128xbf16>,
    return
  }
  func.func @transform_0(%arg0: i32) -> (i32, i32) {
    %c0_i32 = arith.constant 0 : i32
    %c0_i32_0 = arith.constant 0 : i32
    return %arg0, %c0_i32 : i32, i32
  }
  func.func @transform_1(%arg0: i32) -> (i32, i32) {
    %c0_i32 = arith.constant 0 : i32
    %c0_i32_0 = arith.constant 0 : i32
    %c0_i32_1 = arith.constant 0 : i32
    return %c0_i32, %c0_i32_0 : i32, i32
  }
  func.func @transform_2(%arg0: i32) -> (i32, i32) {
    %c0_i32 = arith.constant 0 : i32
    %c0_i32_0 = arith.constant 0 : i32
    %c0_i32_1 = arith.constant 0 : i32
    return %c0_i32, %c0_i32_0 : i32, i32
  }
  func.func @transform_3(%arg0: i32) -> (i32, i32) {
    %c0_i32 = arith.constant 0 : i32
    %c0_i32_0 = arith.constant 0 : i32
    return %arg0, %c0_i32 : i32, i32
  }
}

module attributes {stable_mosaic.version = 11 : i64} {
  func.func @_bn_act_kernel(%arg0: i32, %arg1: memref<256x128xbf16, #tpu.memory_space<vmem>>, %arg2: memref<1x128xf32, #tpu.memory_space<vmem>>, %arg3: memref<1x128xf32, #tpu.memory_space<vmem>>, %arg4: memref<256x128xbf16, #tpu.memory_space<vmem>>) attributes {dimension_semantics = [#tpu.dimension_semantics<parallel>], iteration_bounds = array<i64: 2>, scalar_prefetch = 0 : i64, scratch_operands = 0 : i64, tpu.core_type = #tpu.core_type<tc>, window_params = [{transform_indices = @transform_0, window_bounds = array<i64: 256, 128>}, {pipeline_mode = #tpu.pipeline_mode<synchronous>, transform_indices = @transform_1, window_bounds = array<i64: 1, 128>}, {pipeline_mode = #tpu.pipeline_mode<synchronous>, transform_indices = @transform_2, window_bounds = array<i64: 1, 128>}, {transform_indices = @transform_3, window_bounds = array<i64: 256, 128>}]} {
    %c0 = arith.constant 0 : index
    %c0_0 = arith.constant 0 : index
    %0 = vector.load %arg1[%c0, %c0_0] : memref<256x128xbf16, #tpu.memory_space<vmem>>, vector<256x128xbf16>
    %1 = arith.extf %0 : vector<256x128xbf16> to vector<256x128xf32>
    %c0_1 = arith.constant 0 : index
    %c0_2 = arith.constant 0 : index
    %2 = vector.load %arg2[%c0_1, %c0_2] : memref<1x128xf32, #tpu.memory_space<vmem>>, vector<1x128xf32>
    %3 = vector.broadcast %2 : vector<1x128xf32> to vector<256x128xf32>
    %4 = arith.mulf %1, %3 : vector<256x128xf32>
    %c0_3 = arith.constant 0 : index
    %c0_4 = arith.constant 0 : index
    %5 = vector.load %arg3[%c0_3, %c0_4] : memref<1x128xf32, #tpu.memory_space<vmem>>, vector<1x128xf32>
    %6 = vector.broadcast %5 : vector<1x128xf32> to vector<256x128xf32>
    %7 = arith.addf %4, %6 : vector<256x128xf32>
    %cst = arith.constant 0.000000e+00 : f32
    %8 = vector.broadcast %cst : f32 to vector<256x128xf32>
    %9 = arith.cmpf ogt, %7, %8 : vector<256x128xf32>
    %cst_5 = arith.constant 2.000000e-01 : f32
    %10 = vector.broadcast %cst_5 : f32 to vector<256x128xf32>
    %11 = arith.mulf %10, %7 : vector<256x128xf32>
    %12 = arith.select %9, %7, %11 : vector<256x128xi1>, vector<256x128xf32>
    %13 = arith.truncf %12 : vector<256x128xf32> to vector<256x128xbf16>
    %c0_6 = arith.constant 0 : index
    %c0_7 = arith.constant 0 : index
    %14 = vector.load %arg4[%c0_6, %c0_7] : memref<256x128xbf16, #tpu.memory_space<vmem>>, vector<256x128xbf16>
    tpu.vector_store %arg4[%c0_6, %c0_7], %13 {strides = array<i32>} : memref<256x128xbf16, #tpu.memory_space<vmem>>, vector<256x128xbf16>,
    return
  }
  func.func @transform_0(%arg0: i32) -> (i32, i32) {
    %c0_i32 = arith.constant 0 : i32
    %c0_i32_0 = arith.constant 0 : i32
    return %arg0, %c0_i32 : i32, i32
  }
  func.func @transform_1(%arg0: i32) -> (i32, i32) {
    %c0_i32 = arith.constant 0 : i32
    %c0_i32_0 = arith.constant 0 : i32
    %c0_i32_1 = arith.constant 0 : i32
    return %c0_i32, %c0_i32_0 : i32, i32
  }
  func.func @transform_2(%arg0: i32) -> (i32, i32) {
    %c0_i32 = arith.constant 0 : i32
    %c0_i32_0 = arith.constant 0 : i32
    %c0_i32_1 = arith.constant 0 : i32
    return %c0_i32, %c0_i32_0 : i32, i32
  }
  func.func @transform_3(%arg0: i32) -> (i32, i32) {
    %c0_i32 = arith.constant 0 : i32
    %c0_i32_0 = arith.constant 0 : i32
    return %arg0, %c0_i32 : i32, i32
  }
}

module attributes {stable_mosaic.version = 11 : i64} {
  func.func @_conv_stats_kernel(%arg0: i32, %arg1: memref<256x256xbf16, #tpu.memory_space<vmem>>, %arg2: memref<256x128xbf16, #tpu.memory_space<vmem>>, %arg3: memref<256x128xbf16, #tpu.memory_space<vmem>>, %arg4: memref<8x128xf32, #tpu.memory_space<vmem>>) attributes {dimension_semantics = [#tpu.dimension_semantics<arbitrary>], iteration_bounds = array<i64: 2>, scalar_prefetch = 0 : i64, scratch_operands = 0 : i64, tpu.core_type = #tpu.core_type<tc>, window_params = [{transform_indices = @transform_0, window_bounds = array<i64: 256, 256>}, {pipeline_mode = #tpu.pipeline_mode<synchronous>, transform_indices = @transform_1, window_bounds = array<i64: 256, 128>}, {transform_indices = @transform_2, window_bounds = array<i64: 256, 128>}, {pipeline_mode = #tpu.pipeline_mode<synchronous>, transform_indices = @transform_3, window_bounds = array<i64: 8, 128>}]} {
    %c0 = arith.constant 0 : index
    %c0_0 = arith.constant 0 : index
    %0 = vector.load %arg1[%c0, %c0_0] : memref<256x256xbf16, #tpu.memory_space<vmem>>, vector<256x256xbf16>
    %c0_1 = arith.constant 0 : index
    %c0_2 = arith.constant 0 : index
    %1 = vector.load %arg2[%c0_1, %c0_2] : memref<256x128xbf16, #tpu.memory_space<vmem>>, vector<256x128xbf16>
    %cst = arith.constant dense<0.000000e+00> : vector<256x128xf32>
    %2 = tpu.matmul %0, %1, %cst {dimension_numbers = #tpu.dot_dimension_numbers<[1], [0], [0], [1], [0, 0, 1, 1], [], []>} : vector<256x256xbf16>, vector<256x128xbf16>, vector<256x128xf32> -> vector<256x128xf32>
    %c0_i32 = arith.constant 0 : i32
    %3 = arith.cmpi eq, %arg0, %c0_i32 : i32
    %4 = arith.extui %3 : i1 to i32
    %c0_i32_3 = arith.constant 0 : i32
    %5 = arith.cmpi ne, %4, %c0_i32_3 : i32
    scf.if %5 {
      %cst_15 = arith.constant 0.000000e+00 : f32
      %30 = vector.broadcast %cst_15 : f32 to vector<8x128xf32>
      %c0_16 = arith.constant 0 : index
      %c0_17 = arith.constant 0 : index
      %31 = vector.load %arg4[%c0_16, %c0_17] : memref<8x128xf32, #tpu.memory_space<vmem>>, vector<8x128xf32>
      tpu.vector_store %arg4[%c0_16, %c0_17], %30 {strides = array<i32>} : memref<8x128xf32, #tpu.memory_space<vmem>>, vector<8x128xf32>,
    } else {
    }
    %cst_4 = arith.constant dense<0.000000e+00> : vector<128xf32>
    %6 = vector.multi_reduction <add>, %2, %cst_4 [0] : vector<256x128xf32> to vector<128xf32>
    %7 = vector.shape_cast %6 : vector<128xf32> to vector<1x128xf32>
    %8 = arith.mulf %2, %2 : vector<256x128xf32>
    %cst_5 = arith.constant dense<0.000000e+00> : vector<128xf32>
    %9 = vector.multi_reduction <add>, %8, %cst_5 [0] : vector<256x128xf32> to vector<128xf32>
    %10 = vector.shape_cast %9 : vector<128xf32> to vector<1x128xf32>
    %11 = tpu.iota {dimensions = array<i32: 0>} : vector<8x128xi32>
    %c0_i32_6 = arith.constant 0 : i32
    %12 = vector.broadcast %c0_i32_6 : i32 to vector<8x128xi32>
    %13 = arith.cmpi eq, %11, %12 : vector<8x128xi32>
    %cst_7 = arith.constant 0.000000e+00 : f32
    %14 = vector.shape_cast %7 : vector<1x128xf32> to vector<1x128xf32>
    %15 = vector.broadcast %14 : vector<1x128xf32> to vector<8x128xf32>
    %16 = vector.broadcast %cst_7 : f32 to vector<8x128xf32>
    %17 = arith.select %13, %15, %16 : vector<8x128xi1>, vector<8x128xf32>
    %c1_i32 = arith.constant 1 : i32
    %18 = vector.broadcast %c1_i32 : i32 to vector<8x128xi32>
    %19 = arith.cmpi eq, %11, %18 : vector<8x128xi32>
    %cst_8 = arith.constant 0.000000e+00 : f32
    %20 = vector.shape_cast %10 : vector<1x128xf32> to vector<1x128xf32>
    %21 = vector.broadcast %20 : vector<1x128xf32> to vector<8x128xf32>
    %22 = vector.broadcast %cst_8 : f32 to vector<8x128xf32>
    %23 = arith.select %19, %21, %22 : vector<8x128xi1>, vector<8x128xf32>
    %24 = arith.addf %17, %23 : vector<8x128xf32>
    %c0_9 = arith.constant 0 : index
    %c0_10 = arith.constant 0 : index
    %25 = vector.load %arg4[%c0_9, %c0_10] : memref<8x128xf32, #tpu.memory_space<vmem>>, vector<8x128xf32>
    %26 = arith.addf %25, %24 : vector<8x128xf32>
    %c0_11 = arith.constant 0 : index
    %c0_12 = arith.constant 0 : index
    %27 = vector.load %arg4[%c0_11, %c0_12] : memref<8x128xf32, #tpu.memory_space<vmem>>, vector<8x128xf32>
    tpu.vector_store %arg4[%c0_11, %c0_12], %26 {strides = array<i32>} : memref<8x128xf32, #tpu.memory_space<vmem>>, vector<8x128xf32>,
    %28 = arith.truncf %2 : vector<256x128xf32> to vector<256x128xbf16>
    %c0_13 = arith.constant 0 : index
    %c0_14 = arith.constant 0 : index
    %29 = vector.load %arg3[%c0_13, %c0_14] : memref<256x128xbf16, #tpu.memory_space<vmem>>, vector<256x128xbf16>
    tpu.vector_store %arg3[%c0_13, %c0_14], %28 {strides = array<i32>} : memref<256x128xbf16, #tpu.memory_space<vmem>>, vector<256x128xbf16>,
    return
  }
  func.func @transform_0(%arg0: i32) -> (i32, i32) {
    %c0_i32 = arith.constant 0 : i32
    %c0_i32_0 = arith.constant 0 : i32
    return %arg0, %c0_i32 : i32, i32
  }
  func.func @transform_1(%arg0: i32) -> (i32, i32) {
    %c0_i32 = arith.constant 0 : i32
    %c0_i32_0 = arith.constant 0 : i32
    %c0_i32_1 = arith.constant 0 : i32
    return %c0_i32, %c0_i32_0 : i32, i32
  }
  func.func @transform_2(%arg0: i32) -> (i32, i32) {
    %c0_i32 = arith.constant 0 : i32
    %c0_i32_0 = arith.constant 0 : i32
    return %arg0, %c0_i32 : i32, i32
  }
  func.func @transform_3(%arg0: i32) -> (i32, i32) {
    %c0_i32 = arith.constant 0 : i32
    %c0_i32_0 = arith.constant 0 : i32
    %c0_i32_1 = arith.constant 0 : i32
    return %c0_i32, %c0_i32_0 : i32, i32
  }
}

module attributes {stable_mosaic.version = 11 : i64} {
  func.func @_conv_stats_kernel(%arg0: i32, %arg1: memref<128x512xbf16, #tpu.memory_space<vmem>>, %arg2: memref<512x128xbf16, #tpu.memory_space<vmem>>, %arg3: memref<128x128xbf16, #tpu.memory_space<vmem>>, %arg4: memref<8x128xf32, #tpu.memory_space<vmem>>) attributes {dimension_semantics = [#tpu.dimension_semantics<arbitrary>], iteration_bounds = array<i64: 1>, scalar_prefetch = 0 : i64, scratch_operands = 0 : i64, tpu.core_type = #tpu.core_type<tc>, window_params = [{transform_indices = @transform_0, window_bounds = array<i64: 128, 512>}, {pipeline_mode = #tpu.pipeline_mode<synchronous>, transform_indices = @transform_1, window_bounds = array<i64: 512, 128>}, {transform_indices = @transform_2, window_bounds = array<i64: 128, 128>}, {pipeline_mode = #tpu.pipeline_mode<synchronous>, transform_indices = @transform_3, window_bounds = array<i64: 8, 128>}]} {
    %c0 = arith.constant 0 : index
    %c0_0 = arith.constant 0 : index
    %0 = vector.load %arg1[%c0, %c0_0] : memref<128x512xbf16, #tpu.memory_space<vmem>>, vector<128x512xbf16>
    %c0_1 = arith.constant 0 : index
    %c0_2 = arith.constant 0 : index
    %1 = vector.load %arg2[%c0_1, %c0_2] : memref<512x128xbf16, #tpu.memory_space<vmem>>, vector<512x128xbf16>
    %cst = arith.constant dense<0.000000e+00> : vector<128x128xf32>
    %2 = tpu.matmul %0, %1, %cst {dimension_numbers = #tpu.dot_dimension_numbers<[1], [0], [0], [1], [0, 0, 1, 1], [], []>} : vector<128x512xbf16>, vector<512x128xbf16>, vector<128x128xf32> -> vector<128x128xf32>
    %c0_i32 = arith.constant 0 : i32
    %3 = arith.cmpi eq, %arg0, %c0_i32 : i32
    %4 = arith.extui %3 : i1 to i32
    %c0_i32_3 = arith.constant 0 : i32
    %5 = arith.cmpi ne, %4, %c0_i32_3 : i32
    scf.if %5 {
      %cst_15 = arith.constant 0.000000e+00 : f32
      %30 = vector.broadcast %cst_15 : f32 to vector<8x128xf32>
      %c0_16 = arith.constant 0 : index
      %c0_17 = arith.constant 0 : index
      %31 = vector.load %arg4[%c0_16, %c0_17] : memref<8x128xf32, #tpu.memory_space<vmem>>, vector<8x128xf32>
      tpu.vector_store %arg4[%c0_16, %c0_17], %30 {strides = array<i32>} : memref<8x128xf32, #tpu.memory_space<vmem>>, vector<8x128xf32>,
    } else {
    }
    %cst_4 = arith.constant dense<0.000000e+00> : vector<128xf32>
    %6 = vector.multi_reduction <add>, %2, %cst_4 [0] : vector<128x128xf32> to vector<128xf32>
    %7 = vector.shape_cast %6 : vector<128xf32> to vector<1x128xf32>
    %8 = arith.mulf %2, %2 : vector<128x128xf32>
    %cst_5 = arith.constant dense<0.000000e+00> : vector<128xf32>
    %9 = vector.multi_reduction <add>, %8, %cst_5 [0] : vector<128x128xf32> to vector<128xf32>
    %10 = vector.shape_cast %9 : vector<128xf32> to vector<1x128xf32>
    %11 = tpu.iota {dimensions = array<i32: 0>} : vector<8x128xi32>
    %c0_i32_6 = arith.constant 0 : i32
    %12 = vector.broadcast %c0_i32_6 : i32 to vector<8x128xi32>
    %13 = arith.cmpi eq, %11, %12 : vector<8x128xi32>
    %cst_7 = arith.constant 0.000000e+00 : f32
    %14 = vector.shape_cast %7 : vector<1x128xf32> to vector<1x128xf32>
    %15 = vector.broadcast %14 : vector<1x128xf32> to vector<8x128xf32>
    %16 = vector.broadcast %cst_7 : f32 to vector<8x128xf32>
    %17 = arith.select %13, %15, %16 : vector<8x128xi1>, vector<8x128xf32>
    %c1_i32 = arith.constant 1 : i32
    %18 = vector.broadcast %c1_i32 : i32 to vector<8x128xi32>
    %19 = arith.cmpi eq, %11, %18 : vector<8x128xi32>
    %cst_8 = arith.constant 0.000000e+00 : f32
    %20 = vector.shape_cast %10 : vector<1x128xf32> to vector<1x128xf32>
    %21 = vector.broadcast %20 : vector<1x128xf32> to vector<8x128xf32>
    %22 = vector.broadcast %cst_8 : f32 to vector<8x128xf32>
    %23 = arith.select %19, %21, %22 : vector<8x128xi1>, vector<8x128xf32>
    %24 = arith.addf %17, %23 : vector<8x128xf32>
    %c0_9 = arith.constant 0 : index
    %c0_10 = arith.constant 0 : index
    %25 = vector.load %arg4[%c0_9, %c0_10] : memref<8x128xf32, #tpu.memory_space<vmem>>, vector<8x128xf32>
    %26 = arith.addf %25, %24 : vector<8x128xf32>
    %c0_11 = arith.constant 0 : index
    %c0_12 = arith.constant 0 : index
    %27 = vector.load %arg4[%c0_11, %c0_12] : memref<8x128xf32, #tpu.memory_space<vmem>>, vector<8x128xf32>
    tpu.vector_store %arg4[%c0_11, %c0_12], %26 {strides = array<i32>} : memref<8x128xf32, #tpu.memory_space<vmem>>, vector<8x128xf32>,
    %28 = arith.truncf %2 : vector<128x128xf32> to vector<128x128xbf16>
    %c0_13 = arith.constant 0 : index
    %c0_14 = arith.constant 0 : index
    %29 = vector.load %arg3[%c0_13, %c0_14] : memref<128x128xbf16, #tpu.memory_space<vmem>>, vector<128x128xbf16>
    tpu.vector_store %arg3[%c0_13, %c0_14], %28 {strides = array<i32>} : memref<128x128xbf16, #tpu.memory_space<vmem>>, vector<128x128xbf16>,
    return
  }
  func.func @transform_0(%arg0: i32) -> (i32, i32) {
    %c0_i32 = arith.constant 0 : i32
    %c0_i32_0 = arith.constant 0 : i32
    return %arg0, %c0_i32 : i32, i32
  }
  func.func @transform_1(%arg0: i32) -> (i32, i32) {
    %c0_i32 = arith.constant 0 : i32
    %c0_i32_0 = arith.constant 0 : i32
    %c0_i32_1 = arith.constant 0 : i32
    return %c0_i32, %c0_i32_0 : i32, i32
  }
  func.func @transform_2(%arg0: i32) -> (i32, i32) {
    %c0_i32 = arith.constant 0 : i32
    %c0_i32_0 = arith.constant 0 : i32
    return %arg0, %c0_i32 : i32, i32
  }
  func.func @transform_3(%arg0: i32) -> (i32, i32) {
    %c0_i32 = arith.constant 0 : i32
    %c0_i32_0 = arith.constant 0 : i32
    %c0_i32_1 = arith.constant 0 : i32
    return %c0_i32, %c0_i32_0 : i32, i32
  }
}

module attributes {stable_mosaic.version = 11 : i64} {
  func.func @_bn_act_kernel(%arg0: i32, %arg1: memref<128x128xbf16, #tpu.memory_space<vmem>>, %arg2: memref<1x128xf32, #tpu.memory_space<vmem>>, %arg3: memref<1x128xf32, #tpu.memory_space<vmem>>, %arg4: memref<128x128xbf16, #tpu.memory_space<vmem>>) attributes {dimension_semantics = [#tpu.dimension_semantics<parallel>], iteration_bounds = array<i64: 1>, scalar_prefetch = 0 : i64, scratch_operands = 0 : i64, tpu.core_type = #tpu.core_type<tc>, window_params = [{transform_indices = @transform_0, window_bounds = array<i64: 128, 128>}, {pipeline_mode = #tpu.pipeline_mode<synchronous>, transform_indices = @transform_1, window_bounds = array<i64: 1, 128>}, {pipeline_mode = #tpu.pipeline_mode<synchronous>, transform_indices = @transform_2, window_bounds = array<i64: 1, 128>}, {transform_indices = @transform_3, window_bounds = array<i64: 128, 128>}]} {
    %c0 = arith.constant 0 : index
    %c0_0 = arith.constant 0 : index
    %0 = vector.load %arg1[%c0, %c0_0] : memref<128x128xbf16, #tpu.memory_space<vmem>>, vector<128x128xbf16>
    %1 = arith.extf %0 : vector<128x128xbf16> to vector<128x128xf32>
    %c0_1 = arith.constant 0 : index
    %c0_2 = arith.constant 0 : index
    %2 = vector.load %arg2[%c0_1, %c0_2] : memref<1x128xf32, #tpu.memory_space<vmem>>, vector<1x128xf32>
    %3 = vector.broadcast %2 : vector<1x128xf32> to vector<128x128xf32>
    %4 = arith.mulf %1, %3 : vector<128x128xf32>
    %c0_3 = arith.constant 0 : index
    %c0_4 = arith.constant 0 : index
    %5 = vector.load %arg3[%c0_3, %c0_4] : memref<1x128xf32, #tpu.memory_space<vmem>>, vector<1x128xf32>
    %6 = vector.broadcast %5 : vector<1x128xf32> to vector<128x128xf32>
    %7 = arith.addf %4, %6 : vector<128x128xf32>
    %cst = arith.constant 0.000000e+00 : f32
    %8 = vector.broadcast %cst : f32 to vector<128x128xf32>
    %9 = arith.cmpf ogt, %7, %8 : vector<128x128xf32>
    %cst_5 = arith.constant 2.000000e-01 : f32
    %10 = vector.broadcast %cst_5 : f32 to vector<128x128xf32>
    %11 = arith.mulf %10, %7 : vector<128x128xf32>
    %12 = arith.select %9, %7, %11 : vector<128x128xi1>, vector<128x128xf32>
    %13 = arith.truncf %12 : vector<128x128xf32> to vector<128x128xbf16>
    %c0_6 = arith.constant 0 : index
    %c0_7 = arith.constant 0 : index
    %14 = vector.load %arg4[%c0_6, %c0_7] : memref<128x128xbf16, #tpu.memory_space<vmem>>, vector<128x128xbf16>
    tpu.vector_store %arg4[%c0_6, %c0_7], %13 {strides = array<i32>} : memref<128x128xbf16, #tpu.memory_space<vmem>>, vector<128x128xbf16>,
    return
  }
  func.func @transform_0(%arg0: i32) -> (i32, i32) {
    %c0_i32 = arith.constant 0 : i32
    %c0_i32_0 = arith.constant 0 : i32
    return %arg0, %c0_i32 : i32, i32
  }
  func.func @transform_1(%arg0: i32) -> (i32, i32) {
    %c0_i32 = arith.constant 0 : i32
    %c0_i32_0 = arith.constant 0 : i32
    %c0_i32_1 = arith.constant 0 : i32
    return %c0_i32, %c0_i32_0 : i32, i32
  }
  func.func @transform_2(%arg0: i32) -> (i32, i32) {
    %c0_i32 = arith.constant 0 : i32
    %c0_i32_0 = arith.constant 0 : i32
    %c0_i32_1 = arith.constant 0 : i32
    return %c0_i32, %c0_i32_0 : i32, i32
  }
  func.func @transform_3(%arg0: i32) -> (i32, i32) {
    %c0_i32 = arith.constant 0 : i32
    %c0_i32_0 = arith.constant 0 : i32
    return %arg0, %c0_i32 : i32, i32
  }
}

module attributes {stable_mosaic.version = 11 : i64} {
  func.func @_conv_stats_kernel(%arg0: i32, %arg1: memref<104x1024xbf16, #tpu.memory_space<vmem>>, %arg2: memref<1024x128xbf16, #tpu.memory_space<vmem>>, %arg3: memref<104x128xbf16, #tpu.memory_space<vmem>>, %arg4: memref<8x128xf32, #tpu.memory_space<vmem>>) attributes {dimension_semantics = [#tpu.dimension_semantics<arbitrary>], iteration_bounds = array<i64: 1>, scalar_prefetch = 0 : i64, scratch_operands = 0 : i64, tpu.core_type = #tpu.core_type<tc>, window_params = [{transform_indices = @transform_0, window_bounds = array<i64: 104, 1024>}, {pipeline_mode = #tpu.pipeline_mode<synchronous>, transform_indices = @transform_1, window_bounds = array<i64: 1024, 128>}, {transform_indices = @transform_2, window_bounds = array<i64: 104, 128>}, {pipeline_mode = #tpu.pipeline_mode<synchronous>, transform_indices = @transform_3, window_bounds = array<i64: 8, 128>}]} {
    %c0 = arith.constant 0 : index
    %c0_0 = arith.constant 0 : index
    %0 = vector.load %arg1[%c0, %c0_0] : memref<104x1024xbf16, #tpu.memory_space<vmem>>, vector<104x1024xbf16>
    %c0_1 = arith.constant 0 : index
    %c0_2 = arith.constant 0 : index
    %1 = vector.load %arg2[%c0_1, %c0_2] : memref<1024x128xbf16, #tpu.memory_space<vmem>>, vector<1024x128xbf16>
    %cst = arith.constant dense<0.000000e+00> : vector<104x128xf32>
    %2 = tpu.matmul %0, %1, %cst {dimension_numbers = #tpu.dot_dimension_numbers<[1], [0], [0], [1], [0, 0, 1, 1], [], []>} : vector<104x1024xbf16>, vector<1024x128xbf16>, vector<104x128xf32> -> vector<104x128xf32>
    %c0_i32 = arith.constant 0 : i32
    %3 = arith.cmpi eq, %arg0, %c0_i32 : i32
    %4 = arith.extui %3 : i1 to i32
    %c0_i32_3 = arith.constant 0 : i32
    %5 = arith.cmpi ne, %4, %c0_i32_3 : i32
    scf.if %5 {
      %cst_15 = arith.constant 0.000000e+00 : f32
      %30 = vector.broadcast %cst_15 : f32 to vector<8x128xf32>
      %c0_16 = arith.constant 0 : index
      %c0_17 = arith.constant 0 : index
      %31 = vector.load %arg4[%c0_16, %c0_17] : memref<8x128xf32, #tpu.memory_space<vmem>>, vector<8x128xf32>
      tpu.vector_store %arg4[%c0_16, %c0_17], %30 {strides = array<i32>} : memref<8x128xf32, #tpu.memory_space<vmem>>, vector<8x128xf32>,
    } else {
    }
    %cst_4 = arith.constant dense<0.000000e+00> : vector<128xf32>
    %6 = vector.multi_reduction <add>, %2, %cst_4 [0] : vector<104x128xf32> to vector<128xf32>
    %7 = vector.shape_cast %6 : vector<128xf32> to vector<1x128xf32>
    %8 = arith.mulf %2, %2 : vector<104x128xf32>
    %cst_5 = arith.constant dense<0.000000e+00> : vector<128xf32>
    %9 = vector.multi_reduction <add>, %8, %cst_5 [0] : vector<104x128xf32> to vector<128xf32>
    %10 = vector.shape_cast %9 : vector<128xf32> to vector<1x128xf32>
    %11 = tpu.iota {dimensions = array<i32: 0>} : vector<8x128xi32>
    %c0_i32_6 = arith.constant 0 : i32
    %12 = vector.broadcast %c0_i32_6 : i32 to vector<8x128xi32>
    %13 = arith.cmpi eq, %11, %12 : vector<8x128xi32>
    %cst_7 = arith.constant 0.000000e+00 : f32
    %14 = vector.shape_cast %7 : vector<1x128xf32> to vector<1x128xf32>
    %15 = vector.broadcast %14 : vector<1x128xf32> to vector<8x128xf32>
    %16 = vector.broadcast %cst_7 : f32 to vector<8x128xf32>
    %17 = arith.select %13, %15, %16 : vector<8x128xi1>, vector<8x128xf32>
    %c1_i32 = arith.constant 1 : i32
    %18 = vector.broadcast %c1_i32 : i32 to vector<8x128xi32>
    %19 = arith.cmpi eq, %11, %18 : vector<8x128xi32>
    %cst_8 = arith.constant 0.000000e+00 : f32
    %20 = vector.shape_cast %10 : vector<1x128xf32> to vector<1x128xf32>
    %21 = vector.broadcast %20 : vector<1x128xf32> to vector<8x128xf32>
    %22 = vector.broadcast %cst_8 : f32 to vector<8x128xf32>
    %23 = arith.select %19, %21, %22 : vector<8x128xi1>, vector<8x128xf32>
    %24 = arith.addf %17, %23 : vector<8x128xf32>
    %c0_9 = arith.constant 0 : index
    %c0_10 = arith.constant 0 : index
    %25 = vector.load %arg4[%c0_9, %c0_10] : memref<8x128xf32, #tpu.memory_space<vmem>>, vector<8x128xf32>
    %26 = arith.addf %25, %24 : vector<8x128xf32>
    %c0_11 = arith.constant 0 : index
    %c0_12 = arith.constant 0 : index
    %27 = vector.load %arg4[%c0_11, %c0_12] : memref<8x128xf32, #tpu.memory_space<vmem>>, vector<8x128xf32>
    tpu.vector_store %arg4[%c0_11, %c0_12], %26 {strides = array<i32>} : memref<8x128xf32, #tpu.memory_space<vmem>>, vector<8x128xf32>,
    %28 = arith.truncf %2 : vector<104x128xf32> to vector<104x128xbf16>
    %c0_13 = arith.constant 0 : index
    %c0_14 = arith.constant 0 : index
    %29 = vector.load %arg3[%c0_13, %c0_14] : memref<104x128xbf16, #tpu.memory_space<vmem>>, vector<104x128xbf16>
    tpu.vector_store %arg3[%c0_13, %c0_14], %28 {strides = array<i32>} : memref<104x128xbf16, #tpu.memory_space<vmem>>, vector<104x128xbf16>,
    return
  }
  func.func @transform_0(%arg0: i32) -> (i32, i32) {
    %c0_i32 = arith.constant 0 : i32
    %c0_i32_0 = arith.constant 0 : i32
    return %arg0, %c0_i32 : i32, i32
  }
  func.func @transform_1(%arg0: i32) -> (i32, i32) {
    %c0_i32 = arith.constant 0 : i32
    %c0_i32_0 = arith.constant 0 : i32
    %c0_i32_1 = arith.constant 0 : i32
    return %c0_i32, %c0_i32_0 : i32, i32
  }
  func.func @transform_2(%arg0: i32) -> (i32, i32) {
    %c0_i32 = arith.constant 0 : i32
    %c0_i32_0 = arith.constant 0 : i32
    return %arg0, %c0_i32 : i32, i32
  }
  func.func @transform_3(%arg0: i32) -> (i32, i32) {
    %c0_i32 = arith.constant 0 : i32
    %c0_i32_0 = arith.constant 0 : i32
    %c0_i32_1 = arith.constant 0 : i32
    return %c0_i32, %c0_i32_0 : i32, i32
  }
}

module attributes {stable_mosaic.version = 11 : i64} {
  func.func @_bn_act_kernel(%arg0: i32, %arg1: memref<104x128xbf16, #tpu.memory_space<vmem>>, %arg2: memref<1x128xf32, #tpu.memory_space<vmem>>, %arg3: memref<1x128xf32, #tpu.memory_space<vmem>>, %arg4: memref<104x128xbf16, #tpu.memory_space<vmem>>) attributes {dimension_semantics = [#tpu.dimension_semantics<parallel>], iteration_bounds = array<i64: 1>, scalar_prefetch = 0 : i64, scratch_operands = 0 : i64, tpu.core_type = #tpu.core_type<tc>, window_params = [{transform_indices = @transform_0, window_bounds = array<i64: 104, 128>}, {pipeline_mode = #tpu.pipeline_mode<synchronous>, transform_indices = @transform_1, window_bounds = array<i64: 1, 128>}, {pipeline_mode = #tpu.pipeline_mode<synchronous>, transform_indices = @transform_2, window_bounds = array<i64: 1, 128>}, {transform_indices = @transform_3, window_bounds = array<i64: 104, 128>}]} {
    %c0 = arith.constant 0 : index
    %c0_0 = arith.constant 0 : index
    %0 = vector.load %arg1[%c0, %c0_0] : memref<104x128xbf16, #tpu.memory_space<vmem>>, vector<104x128xbf16>
    %1 = arith.extf %0 : vector<104x128xbf16> to vector<104x128xf32>
    %c0_1 = arith.constant 0 : index
    %c0_2 = arith.constant 0 : index
    %2 = vector.load %arg2[%c0_1, %c0_2] : memref<1x128xf32, #tpu.memory_space<vmem>>, vector<1x128xf32>
    %3 = vector.broadcast %2 : vector<1x128xf32> to vector<104x128xf32>
    %4 = arith.mulf %1, %3 : vector<104x128xf32>
    %c0_3 = arith.constant 0 : index
    %c0_4 = arith.constant 0 : index
    %5 = vector.load %arg3[%c0_3, %c0_4] : memref<1x128xf32, #tpu.memory_space<vmem>>, vector<1x128xf32>
    %6 = vector.broadcast %5 : vector<1x128xf32> to vector<104x128xf32>
    %7 = arith.addf %4, %6 : vector<104x128xf32>
    %cst = arith.constant 0.000000e+00 : f32
    %8 = vector.broadcast %cst : f32 to vector<104x128xf32>
    %9 = arith.cmpf ogt, %7, %8 : vector<104x128xf32>
    %cst_5 = arith.constant 2.000000e-01 : f32
    %10 = vector.broadcast %cst_5 : f32 to vector<104x128xf32>
    %11 = arith.mulf %10, %7 : vector<104x128xf32>
    %12 = arith.select %9, %7, %11 : vector<104x128xi1>, vector<104x128xf32>
    %13 = arith.truncf %12 : vector<104x128xf32> to vector<104x128xbf16>
    %c0_6 = arith.constant 0 : index
    %c0_7 = arith.constant 0 : index
    %14 = vector.load %arg4[%c0_6, %c0_7] : memref<104x128xbf16, #tpu.memory_space<vmem>>, vector<104x128xbf16>
    tpu.vector_store %arg4[%c0_6, %c0_7], %13 {strides = array<i32>} : memref<104x128xbf16, #tpu.memory_space<vmem>>, vector<104x128xbf16>,
    return
  }
  func.func @transform_0(%arg0: i32) -> (i32, i32) {
    %c0_i32 = arith.constant 0 : i32
    %c0_i32_0 = arith.constant 0 : i32
    return %arg0, %c0_i32 : i32, i32
  }
  func.func @transform_1(%arg0: i32) -> (i32, i32) {
    %c0_i32 = arith.constant 0 : i32
    %c0_i32_0 = arith.constant 0 : i32
    %c0_i32_1 = arith.constant 0 : i32
    return %c0_i32, %c0_i32_0 : i32, i32
  }
  func.func @transform_2(%arg0: i32) -> (i32, i32) {
    %c0_i32 = arith.constant 0 : i32
    %c0_i32_0 = arith.constant 0 : i32
    %c0_i32_1 = arith.constant 0 : i32
    return %c0_i32, %c0_i32_0 : i32, i32
  }
  func.func @transform_3(%arg0: i32) -> (i32, i32) {
    %c0_i32 = arith.constant 0 : i32
    %c0_i32_0 = arith.constant 0 : i32
    return %arg0, %c0_i32 : i32, i32
  }
}

module attributes {stable_mosaic.version = 11 : i64} {
  func.func @kernel(%arg0: i32, %arg1: memref<72x2048xbf16, #tpu.memory_space<vmem>>, %arg2: memref<2048x128xbf16, #tpu.memory_space<vmem>>, %arg3: memref<1x128xf32, #tpu.memory_space<vmem>>, %arg4: memref<72x128xf32, #tpu.memory_space<vmem>>) attributes {dimension_semantics = [#tpu.dimension_semantics<parallel>], iteration_bounds = array<i64: 1>, scalar_prefetch = 0 : i64, scratch_operands = 0 : i64, tpu.core_type = #tpu.core_type<tc>, window_params = [{transform_indices = @transform_0, window_bounds = array<i64: 72, 2048>}, {pipeline_mode = #tpu.pipeline_mode<synchronous>, transform_indices = @transform_1, window_bounds = array<i64: 2048, 128>}, {pipeline_mode = #tpu.pipeline_mode<synchronous>, transform_indices = @transform_2, window_bounds = array<i64: 1, 128>}, {transform_indices = @transform_3, window_bounds = array<i64: 72, 128>}]} {
    %c0 = arith.constant 0 : index
    %c0_0 = arith.constant 0 : index
    %0 = vector.load %arg1[%c0, %c0_0] : memref<72x2048xbf16, #tpu.memory_space<vmem>>, vector<72x2048xbf16>
    %c0_1 = arith.constant 0 : index
    %c0_2 = arith.constant 0 : index
    %1 = vector.load %arg2[%c0_1, %c0_2] : memref<2048x128xbf16, #tpu.memory_space<vmem>>, vector<2048x128xbf16>
    %cst = arith.constant dense<0.000000e+00> : vector<72x128xf32>
    %2 = tpu.matmul %0, %1, %cst {dimension_numbers = #tpu.dot_dimension_numbers<[1], [0], [0], [1], [0, 0, 1, 1], [], []>} : vector<72x2048xbf16>, vector<2048x128xbf16>, vector<72x128xf32> -> vector<72x128xf32>
    %c0_3 = arith.constant 0 : index
    %c0_4 = arith.constant 0 : index
    %3 = vector.load %arg3[%c0_3, %c0_4] : memref<1x128xf32, #tpu.memory_space<vmem>>, vector<1x128xf32>
    %4 = vector.broadcast %3 : vector<1x128xf32> to vector<72x128xf32>
    %5 = arith.addf %2, %4 : vector<72x128xf32>
    %c0_5 = arith.constant 0 : index
    %c0_6 = arith.constant 0 : index
    %6 = vector.load %arg4[%c0_5, %c0_6] : memref<72x128xf32, #tpu.memory_space<vmem>>, vector<72x128xf32>
    tpu.vector_store %arg4[%c0_5, %c0_6], %5 {strides = array<i32>} : memref<72x128xf32, #tpu.memory_space<vmem>>, vector<72x128xf32>,
    return
  }
  func.func @transform_0(%arg0: i32) -> (i32, i32) {
    %c0_i32 = arith.constant 0 : i32
    %c0_i32_0 = arith.constant 0 : i32
    return %arg0, %c0_i32 : i32, i32
  }
  func.func @transform_1(%arg0: i32) -> (i32, i32) {
    %c0_i32 = arith.constant 0 : i32
    %c0_i32_0 = arith.constant 0 : i32
    %c0_i32_1 = arith.constant 0 : i32
    return %c0_i32, %c0_i32_0 : i32, i32
  }
  func.func @transform_2(%arg0: i32) -> (i32, i32) {
    %c0_i32 = arith.constant 0 : i32
    %c0_i32_0 = arith.constant 0 : i32
    %c0_i32_1 = arith.constant 0 : i32
    return %c0_i32, %c0_i32_0 : i32, i32
  }
  func.func @transform_3(%arg0: i32) -> (i32, i32) {
    %c0_i32 = arith.constant 0 : i32
    %c0_i32_0 = arith.constant 0 : i32
    return %arg0, %c0_i32 : i32, i32
  }
}

</mosaic_0001>

<bundles_post_ra>
// kernel: discriminator_forward.8
= control target key start
LH: loop header
LB: loop body
LE: loop exit
PB: predicated region body
PF: predicated region fallthrough
CT: control target
= control target key end

     0   :  { %s1190_s12 = smov 0   ;;  %s1317_s0 = inlined_call_operand.vmem [shape: bf16[2048,128], index: 0, kind: input, shape index: {}]   ;;  %s1318_s1 = inlined_call_operand.vmem [shape: bf16[128,128], index: 1, kind: input, shape index: {}]   ;;  %s1319_s2 = inlined_call_operand.vmem [shape: f32[1,128], index: 2, kind: input, shape index: {}]   ;;  %s1320_s3 = inlined_call_operand.vmem [shape: bf16[2048,128], index: 3, kind: output, shape index: {}]  }
   0x1 LB: > { %s847_s13 = sadd.s32 4294967295, %s1168_s12   ;;  %p851_p0 = scmp.ge.s32.totalorder %s1168_s12, 1  ;;  %s1168_s12 = sphi %s1190_s12, %s13_s12  }
   0x2   : > { %p138_p1 = scmp.lt.s32.totalorder %s1168_s12, 9 }
   0x4   : > { %p139_p2 = pnand %p851_p0, %p138_p1 }
   0x5   : > { %v1138_v0 = vld [vmem:[%s1318_s1] sm:$0xff] (!%p139_p2)   ;;  %s852_s16 = sshll.u32 (!%p139_p2), %s847_s13, 5  ;;  %v1139_v1 = vld [vmem:[%s1318_s1 + $0x8] sm:$0xff] (!%p139_p2)   ;;  %v1140_v2 = vld [vmem:[%s1318_s1 + $0x10] sm:$0xff] (!%p139_p2)  }
   0x6   : > { %142 = sbr.rel (%p139_p2) target bundleno = 293 (0x125), region = 32  ;;  %p163_p3 = scmp.lt.s32.totalorder (!%p139_p2), %s852_s16, 255  ;;  %1066 = vmatprep.subr.bf16.mxu0 (!%p139_p2), %v1138_v0  ;;  %1114 = vmatprep.subr.bf16.mxu1 (!%p139_p2), %v1138_v0  ;;  %v1141_v3 = vld [vmem:[%s1318_s1 + $0x18] sm:$0xff] (!%p139_p2)   ;;  %v1142_v6 = vld [vmem:[%s1318_s1 + $0x20] sm:$0xff] (!%p139_p2)   ;;  %v1143_v7 = vld [vmem:[%s1318_s1 + $0x28] sm:$0xff] (!%p139_p2)  }
   0x7   : > { %1067 = vmatpush3.bf16.msra.mxu0 (!%p139_p2), %v1138_v0  ;;  %1122 = vmatpush3.bf16.msra.mxu1 (!%p139_p2), %v1138_v0  ;;  %v1144_v8 = vld [vmem:[%s1318_s1 + $0x30] sm:$0xff] (!%p139_p2)   ;;  %v1145_v9 = vld [vmem:[%s1318_s1 + $0x38] sm:$0xff] (!%p139_p2)   ;;  %v1251_v24 = vld [vmem:[%s1319_s2] ss:$0 sm:$0xff] (!%p139_p2) }
   0x8   : > { %1068 = vmatprep.subr.bf16.mxu0 (!%p139_p2), %v1139_v1  ;;  %1115 = vmatprep.subr.bf16.mxu1 (!%p139_p2), %v1139_v1 }
   0xb   : > { %1069 = vmatpush3.bf16.msra.mxu0 (!%p139_p2), %v1139_v1  ;;  %1123 = vmatpush3.bf16.msra.mxu1 (!%p139_p2), %v1139_v1 }
   0xc   : > { %1070 = vmatprep.subr.bf16.mxu0 (!%p139_p2), %v1140_v2  ;;  %1116 = vmatprep.subr.bf16.mxu1 (!%p139_p2), %v1140_v2 }
   0xd   : > { %s1322_s16 = smov (!%p163_p3, %s852_s16), 255 }
   0xe   : > { %s853_s21 = sshll.u32 %s1322_s16, 2 }
   0xf   : > { %s1215_s24 = scalar_lea.vmem %s1317_s0, %s853_s21  ;;  %1071 = vmatpush3.bf16.msra.mxu0 %v1140_v2  ;;  %1124 = vmatpush3.bf16.msra.mxu1 %v1140_v2  ;;  %s1268_s13 = scalar_lea.vmem %s1320_s3, %s853_s21 }
  0x10   : > { %v1146_v4 = vld [vmem:[%s1215_s24] sm:$0xff]   ;;  %1072 = vmatprep.subr.bf16.mxu0 %v1141_v3  ;;  %1117 = vmatprep.subr.bf16.mxu1 %v1141_v3  ;;  %v1148_v10 = vld [vmem:[%s1215_s24 + $0x8] sm:$0xff]   ;;  %v1150_v12 = vld [vmem:[%s1215_s24 + $0x10] sm:$0xff]  }
  0x11   : > { %v1147_v5 = vld [vmem:[%s1215_s24 + $0x40] sm:$0xff]   ;;  %1082 = vmatprep.mubr.bf16.mxu0 %v1146_v4  ;;  %v1149_v11 = vld [vmem:[%s1215_s24 + $0x48] sm:$0xff]   ;;  %v1151_v13 = vld [vmem:[%s1215_s24 + $0x50] sm:$0xff]  }
  0x12   : > { %1098 = vmatprep.mubr.bf16.mxu1 %v1147_v5  ;;  %v1152_v14 = vld [vmem:[%s1215_s24 + $0x18] sm:$0xff]   ;;  %v1154_v16 = vld [vmem:[%s1215_s24 + $0x20] sm:$0xff]   ;;  %v1156_v18 = vld [vmem:[%s1215_s24 + $0x28] sm:$0xff]  }
  0x13   : > { %1073 = vmatpush3.bf16.msra.mxu0 %v1141_v3  ;;  %1125 = vmatpush3.bf16.msra.mxu1 %v1141_v3  ;;  %v1153_v15 = vld [vmem:[%s1215_s24 + $0x58] sm:$0xff]   ;;  %v1155_v17 = vld [vmem:[%s1215_s24 + $0x60] sm:$0xff]   ;;  %v1157_v19 = vld [vmem:[%s1215_s24 + $0x68] sm:$0xff]  }
  0x14   : > { %1074 = vmatprep.subr.bf16.mxu0 %v1142_v6  ;;  %1118 = vmatprep.subr.bf16.mxu1 %v1142_v6  ;;  %v1158_v20 = vld [vmem:[%s1215_s24 + $0x30] sm:$0xff]   ;;  %v1160_v22 = vld [vmem:[%s1215_s24 + $0x38] sm:$0xff]  }
  0x15   : > { %v1159_v21 = vld [vmem:[%s1215_s24 + $0x70] sm:$0xff]   ;;  %v1161_v23 = vld [vmem:[%s1215_s24 + $0x78] sm:$0xff]  }
  0x17   : > { %1075 = vmatpush3.bf16.msra.mxu0 %v1142_v6  ;;  %1126 = vmatpush3.bf16.msra.mxu1 %v1142_v6 }
  0x18   : > { %1076 = vmatprep.subr.bf16.mxu0 %v1143_v7  ;;  %1119 = vmatprep.subr.bf16.mxu1 %v1143_v7 }
  0x1b   : > { %1077 = vmatpush3.bf16.msra.mxu0 %v1143_v7  ;;  %1127 = vmatpush3.bf16.msra.mxu1 %v1143_v7 }
  0x1c   : > { %1078 = vmatprep.subr.bf16.mxu0 %v1144_v8  ;;  %1120 = vmatprep.subr.bf16.mxu1 %v1144_v8 }
  0x1f   : > { %1079 = vmatpush3.bf16.msra.mxu0 %v1144_v8  ;;  %1128 = vmatpush3.bf16.msra.mxu1 %v1144_v8 }
  0x20   : > { %1080 = vmatprep.subr.bf16.mxu0 %v1145_v9  ;;  %1121 = vmatprep.subr.bf16.mxu1 %v1145_v9 }
  0x23   : > { %1081 = vmatpush3.bf16.msra.mxu0 %v1145_v9  ;;  %1129 = vmatpush3.bf16.msra.mxu1 %v1145_v9 }
  0x26   : > { %1083 = vmatmul.mubr.bf16.vlgmr.msra.gmra.mrb[0].mxu0 %v1148_v10  ;;  %1099 = vmatmul.mubr.bf16.vlgmr.msra.gmra.mrb[0].mxu1 %v1149_v11 }
  0x27   : > { %1086 = vmatprep.mubr.bf16.mxu0 %v1150_v12  ;;  %1102 = vmatprep.mubr.bf16.mxu1 %v1151_v13 }
  0x2e   : > { %1087 = vmatmul.mubr.bf16.gmra.mrb[4].mxu0 %v1152_v14  ;;  %1103 = vmatmul.mubr.bf16.gmra.mrb[4].mxu1 %v1153_v15 }
  0x2f   : > { %1090 = vmatprep.mubr.bf16.mxu0 %v1154_v16  ;;  %1106 = vmatprep.mubr.bf16.mxu1 %v1155_v17 }
  0x36   : > { %1091 = vmatmul.mubr.bf16.gmra.mrb[8].mxu0 %v1156_v18  ;;  %1107 = vmatmul.mubr.bf16.gmra.mrb[8].mxu1 %v1157_v19 }
  0x37   : > { %1094 = vmatprep.mubr.bf16.mxu0 %v1158_v20  ;;  %1110 = vmatprep.mubr.bf16.mxu1 %v1159_v21 }
  0x3e   : > { %1095 = vmatmul.mubr.bf16.gmra.mrb[12].mxu0 %v1160_v22  ;;  %1111 = vmatmul.mubr.bf16.gmra.mrb[12].mxu1 %v1161_v23 }
  0xf9   : > { %v1084_v25 = vpop.f32.mrb[0].mxu0  ;;  %v1100_v26 = vpop.f32.mrb[0].mxu1 }
  0xfa   : > { %v417_v27 = vadd.f32 %v1084_v25, %v1251_v24  ;;  %v481_v28 = vadd.f32 %v1100_v26, %v1251_v24  ;;  %v408_v29 = vpop.f32.mrb[1].mxu0  ;;  %v472_v30 = vpop.f32.mrb[1].mxu1 }
  0xfb   : > { %v409_v31 = vadd.f32 %v1251_v24, %v408_v29  ;;  %v473_v32 = vadd.f32 %v1251_v24, %v472_v30  ;;  %v1085_v33 = vpop.f32.mrb[2].mxu0  ;;  %v1101_v34 = vpop.f32.mrb[2].mxu1 }
  0xfc   : > { %vm537_vm0 = vcmp.gt.f32.partialorder %v417_v27, 0.0  ;;  %v569_v35 = vmul.f32 0.2, %v417_v27  ;;  %vm553_vm1 = vcmp.gt.f32.partialorder %v481_v28, 0.0  ;;  %v585_v36 = vmul.f32 0.2, %v481_v28 }
  0xfd   : > { %vm535_vm2 = vcmp.gt.f32.partialorder %v409_v31, 0.0  ;;  %v567_v37 = vmul.f32 0.2, %v409_v31  ;;  %vm551_vm3 = vcmp.gt.f32.partialorder %v473_v32, 0.0  ;;  %v583_v38 = vmul.f32 0.2, %v473_v32 }
  0xfe   : > { %v420_v39 = vadd.f32 %v1085_v33, %v1251_v24  ;;  %v484_v40 = vadd.f32 %v1101_v34, %v1251_v24  ;;  %v411_v41 = vpop.f32.mrb[3].mxu0  ;;  %v475_v42 = vpop.f32.mrb[3].mxu1  ;;  %v601_v43 = vsel %vm537_vm0, %v417_v27, %v569_v35  ;;  %v617_v44 = vsel %vm553_vm1, %v481_v28, %v585_v36 }
  0xff   : > { %v412_v45 = vadd.f32 %v1251_v24, %v411_v41  ;;  %v476_v46 = vadd.f32 %v1251_v24, %v475_v42  ;;  %v599_v51 = vsel %vm535_vm2, %v409_v31, %v567_v37  ;;  %v615_v52 = vsel %vm551_vm3, %v473_v32, %v583_v38 }
 0x100   : > { %vm538_vm4 = vcmp.gt.f32.partialorder %v420_v39, 0.0  ;;  %v570_v47 = vmul.f32 0.2, %v420_v39  ;;  %vm554_vm5 = vcmp.gt.f32.partialorder %v484_v40, 0.0  ;;  %v586_v48 = vmul.f32 0.2, %v484_v40 }
 0x101   : > { %vm536_vm6 = vcmp.gt.f32.partialorder %v412_v45, 0.0  ;;  %v568_v49 = vmul.f32 0.2, %v412_v45  ;;  %vm552_vm7 = vcmp.gt.f32.partialorder %v476_v46, 0.0  ;;  %v584_v50 = vmul.f32 0.2, %v476_v46 }
 0x102   : > { %v602_v53 = vsel %vm538_vm4, %v420_v39, %v570_v47  ;;  %v618_v54 = vsel %vm554_vm5, %v484_v40, %v586_v48  ;;  %v1088_v55 = vpop.f32.mrb[4].mxu0  ;;  %v1104_v56 = vpop.f32.mrb[4].mxu1 }
 0x103   : > { %v955_v57 = vpack.c.bf16 %v602_v53, %v601_v43  ;;  %v995_v58 = vpack.c.bf16 %v618_v54, %v617_v44  ;;  %v600_v59 = vsel %vm536_vm6, %v412_v45, %v568_v49  ;;  %v616_v60 = vsel %vm552_vm7, %v476_v46, %v584_v50  ;;  %v424_v61 = vpop.f32.mrb[5].mxu0  ;;  %v488_v62 = vpop.f32.mrb[5].mxu1 }
 0x104   : > { %v950_v63 = vpack.c.bf16 %v600_v59, %v599_v51  ;;  %v990_v0 = vpack.c.bf16 %v616_v60, %v615_v52  ;;  %v433_v1 = vadd.f32 %v1088_v55, %v1251_v24  ;;  %v497_v2 = vadd.f32 %v1104_v56, %v1251_v24  ;;  %v1089_v3 = vpop.f32.mrb[6].mxu0  ;;  %v1105_v4 = vpop.f32.mrb[6].mxu1 }
 0x105   : > { %1027 = vst [vmem:[%s1268_s13 + $0x8] sm:$0xff] %v955_v57   ;;  %1035 = vst [vmem:[%s1268_s13 + $0x48] sm:$0xff] %v995_v58   ;;  %v425_v5 = vadd.f32 %v1251_v24, %v424_v61  ;;  %v489_v6 = vadd.f32 %v1251_v24, %v488_v62  ;;  %v436_v7 = vadd.f32 %v1089_v3, %v1251_v24  ;;  %v427_v9 = vpop.f32.mrb[7].mxu0  ;;  %v491_v10 = vpop.f32.mrb[7].mxu1 }
 0x106   : > { %v500_v8 = vadd.f32 %v1105_v4, %v1251_v24  ;;  %951 = vst [vmem:[%s1268_s13] sm:$0xff] %v950_v63   ;;  %1034 = vst [vmem:[%s1268_s13 + $0x40] sm:$0xff] %v990_v0   ;;  %vm541_vm8 = vcmp.gt.f32.partialorder %v433_v1, 0.0  ;;  %v573_v11 = vmul.f32 0.2, %v433_v1  ;;  %vm557_vm9 = vcmp.gt.f32.partialorder %v497_v2, 0.0 }
 0x107   : > { %v589_v12 = vmul.f32 0.2, %v497_v2  ;;  %vm539_vm10 = vcmp.gt.f32.partialorder %v425_v5, 0.0  ;;  %v571_v13 = vmul.f32 0.2, %v425_v5  ;;  %vm555_vm11 = vcmp.gt.f32.partialorder %v489_v6, 0.0 }
 0x108   : > { %v605_v14 = vsel %vm541_vm8, %v433_v1, %v573_v11  ;;  %v587_v15 = vmul.f32 0.2, %v489_v6  ;;  %vm542_vm12 = vcmp.gt.f32.partialorder %v436_v7, 0.0  ;;  %v574_v16 = vmul.f32 0.2, %v436_v7 }
 0x109   : > { %v621_v17 = vsel %vm557_vm9, %v497_v2, %v589_v12  ;;  %v603_v18 = vsel %vm539_vm10, %v425_v5, %v571_v13  ;;  %vm558_vm13 = vcmp.gt.f32.partialorder %v500_v8, 0.0  ;;  %v590_v19 = vmul.f32 0.2, %v500_v8  ;;  %v1092_v20 = vpop.f32.mrb[8].mxu0  ;;  %v1108_v21 = vpop.f32.mrb[8].mxu1 }
 0x10a   : > { %v606_v22 = vsel %vm542_vm12, %v436_v7, %v574_v16  ;;  %v428_v23 = vadd.f32 %v1251_v24, %v427_v9  ;;  %v492_v25 = vadd.f32 %v1251_v24, %v491_v10  ;;  %v449_v26 = vadd.f32 %v1092_v20, %v1251_v24  ;;  %v440_v27 = vpop.f32.mrb[9].mxu0  ;;  %v504_v28 = vpop.f32.mrb[9].mxu1 }
 0x10b   : > { %v965_v29 = vpack.c.bf16 %v606_v22, %v605_v14  ;;  %v622_v30 = vsel %vm558_vm13, %v500_v8, %v590_v19  ;;  %v513_v31 = vadd.f32 %v1108_v21, %v1251_v24  ;;  %v441_v32 = vadd.f32 %v1251_v24, %v440_v27  ;;  %v1093_v33 = vpop.f32.mrb[10].mxu0  ;;  %v1109_v34 = vpop.f32.mrb[10].mxu1 }
 0x10c   : > { %v1005_v35 = vpack.c.bf16 %v622_v30, %v621_v17  ;;  %vm540_vm14 = vcmp.gt.f32.partialorder %v428_v23, 0.0  ;;  %v572_v36 = vmul.f32 0.2, %v428_v23  ;;  %vm556_vm15 = vcmp.gt.f32.partialorder %v492_v25, 0.0  ;;  %v443_v37 = vpop.f32.mrb[11].mxu0  ;;  %v507_v38 = vpop.f32.mrb[11].mxu1 }
 0x10d   : > { %1029 = vst [vmem:[%s1268_s13 + $0x18] sm:$0xff] %v965_v29   ;;  %v588_v39 = vmul.f32 0.2, %v492_v25  ;;  %vm545_vm0 = vcmp.gt.f32.partialorder %v449_v26, 0.0  ;;  %v577_v40 = vmul.f32 0.2, %v449_v26  ;;  %v619_v41 = vsel %vm555_vm11, %v489_v6, %v587_v15 }
 0x10e   : > { %vm561_vm1 = vcmp.gt.f32.partialorder %v513_v31, 0.0  ;;  %1037 = vst [vmem:[%s1268_s13 + $0x58] sm:$0xff] %v1005_v35   ;;  %v604_v42 = vsel %vm540_vm14, %v428_v23, %v572_v36  ;;  %v593_v43 = vmul.f32 0.2, %v513_v31  ;;  %vm543_vm2 = vcmp.gt.f32.partialorder %v441_v32, 0.0 }
 0x10f   : > { %v960_v44 = vpack.c.bf16 %v604_v42, %v603_v18  ;;  %v620_v45 = vsel %vm556_vm15, %v492_v25, %v588_v39  ;;  %v575_v46 = vmul.f32 0.2, %v441_v32  ;;  %v505_v47 = vadd.f32 %v1251_v24, %v504_v28 }
 0x110   : > { %v1000_v48 = vpack.c.bf16 %v620_v45, %v619_v41  ;;  %v609_v49 = vsel %vm545_vm0, %v449_v26, %v577_v40  ;;  %v625_v50 = vsel %vm561_vm1, %v513_v31, %v593_v43  ;;  %v452_v51 = vadd.f32 %v1093_v33, %v1251_v24 }
 0x111   : > { %1028 = vst [vmem:[%s1268_s13 + $0x10] sm:$0xff] %v960_v44   ;;  %vm559_vm3 = vcmp.gt.f32.partialorder %v505_v47, 0.0  ;;  %v591_v52 = vmul.f32 0.2, %v505_v47  ;;  %v516_v53 = vadd.f32 %v1109_v34, %v1251_v24  ;;  %v444_v54 = vadd.f32 %v1251_v24, %v443_v37  ;;  %v1096_v55 = vpop.f32.mrb[12].mxu0  ;;  %v1112_v56 = vpop.f32.mrb[12].mxu1 }
 0x112   : > { %1036 = vst [vmem:[%s1268_s13 + $0x50] sm:$0xff] %v1000_v48   ;;  %vm546_vm4 = vcmp.gt.f32.partialorder %v452_v51, 0.0  ;;  %v578_v57 = vmul.f32 0.2, %v452_v51  ;;  %v508_v58 = vadd.f32 %v1251_v24, %v507_v38  ;;  %v465_v59 = vadd.f32 %v1096_v55, %v1251_v24  ;;  %v456_v60 = vpop.f32.mrb[13].mxu0  ;;  %v520_v61 = vpop.f32.mrb[13].mxu1 }
 0x113   : > { %v607_v62 = vsel %vm543_vm2, %v441_v32, %v575_v46  ;;  %vm562_vm5 = vcmp.gt.f32.partialorder %v516_v53, 0.0  ;;  %v594_v63 = vmul.f32 0.2, %v516_v53  ;;  %vm544_vm6 = vcmp.gt.f32.partialorder %v444_v54, 0.0  ;;  %v1097_v0 = vpop.f32.mrb[14].mxu0  ;;  %v1113_v1 = vpop.f32.mrb[14].mxu1 }
 0x114   : > { %v610_v2 = vsel %vm546_vm4, %v452_v51, %v578_v57  ;;  %v576_v3 = vmul.f32 0.2, %v444_v54  ;;  %vm560_vm7 = vcmp.gt.f32.partialorder %v508_v58, 0.0  ;;  %v592_v4 = vmul.f32 0.2, %v508_v58  ;;  %v459_v5 = vpop.f32.mrb[15].mxu0 }
 0x115   : > { %v623_v6 = vsel %vm559_vm3, %v505_v47, %v591_v52  ;;  %v975_v7 = vpack.c.bf16 %v610_v2, %v609_v49  ;;  %v626_v8 = vsel %vm562_vm5, %v516_v53, %v594_v63  ;;  %v581_v9 = vmul.f32 0.2, %v465_v59  ;;  %v523_v10 = vpop.f32.mrb[15].mxu1 }
 0x116   : > { %v1015_v11 = vpack.c.bf16 %v626_v8, %v625_v50  ;;  %v608_v12 = vsel %vm544_vm6, %v444_v54, %v576_v3  ;;  %v624_v13 = vsel %vm560_vm7, %v508_v58, %v592_v4  ;;  %v529_v14 = vadd.f32 %v1112_v56, %v1251_v24 }
 0x117   : > { %1031 = vst [vmem:[%s1268_s13 + $0x28] sm:$0xff] %v975_v7   ;;  %v970_v15 = vpack.c.bf16 %v608_v12, %v607_v62  ;;  %v1010_v16 = vpack.c.bf16 %v624_v13, %v623_v6  ;;  %vm549_vm8 = vcmp.gt.f32.partialorder %v465_v59, 0.0  ;;  %v457_v17 = vadd.f32 %v1251_v24, %v456_v60 }
 0x118   : > { %1039 = vst [vmem:[%s1268_s13 + $0x68] sm:$0xff] %v1015_v11   ;;  %vm565_vm9 = vcmp.gt.f32.partialorder %v529_v14, 0.0  ;;  %v597_v18 = vmul.f32 0.2, %v529_v14  ;;  %v521_v19 = vadd.f32 %v1251_v24, %v520_v61  ;;  %v468_v20 = vadd.f32 %v1097_v0, %v1251_v24 }
 0x119   : > { %1030 = vst [vmem:[%s1268_s13 + $0x20] sm:$0xff] %v970_v15   ;;  %1038 = vst [vmem:[%s1268_s13 + $0x60] sm:$0xff] %v1010_v16   ;;  %v579_v21 = vmul.f32 0.2, %v457_v17  ;;  %v532_v22 = vadd.f32 %v1113_v1, %v1251_v24  ;;  %v460_v23 = vadd.f32 %v1251_v24, %v459_v5  ;;  %v613_v25 = vsel %vm549_vm8, %v465_v59, %v581_v9 }
 0x11a   : > { %vm547_vm10 = vcmp.gt.f32.partialorder %v457_v17, 0.0  ;;  %vm550_vm11 = vcmp.gt.f32.partialorder %v468_v20, 0.0  ;;  %v629_v26 = vsel %vm565_vm9, %v529_v14, %v597_v18  ;;  %v582_v27 = vmul.f32 0.2, %v468_v20 }
 0x11b   : > { %vm566_vm12 = vcmp.gt.f32.partialorder %v532_v22, 0.0  ;;  %v598_v28 = vmul.f32 0.2, %v532_v22  ;;  %vm563_vm13 = vcmp.gt.f32.partialorder %v521_v19, 0.0  ;;  %vm548_vm14 = vcmp.gt.f32.partialorder %v460_v23, 0.0 }
 0x11c   : > { %v580_v29 = vmul.f32 0.2, %v460_v23  ;;  %v524_v30 = vadd.f32 %v1251_v24, %v523_v10  ;;  %v611_v31 = vsel %vm547_vm10, %v457_v17, %v579_v21  ;;  %v595_v32 = vmul.f32 0.2, %v521_v19 }
 0x11d   : > { %v614_v33 = vsel %vm550_vm11, %v468_v20, %v582_v27  ;;  %v630_v34 = vsel %vm566_vm12, %v532_v22, %v598_v28 }
 0x11e   : > { %v985_v35 = vpack.c.bf16 %v614_v33, %v613_v25  ;;  %v1025_v36 = vpack.c.bf16 %v630_v34, %v629_v26  ;;  %v612_v37 = vsel %vm548_vm14, %v460_v23, %v580_v29  ;;  %vm564_vm15 = vcmp.gt.f32.partialorder %v524_v30, 0.0 }
 0x11f   : > { %v980_v38 = vpack.c.bf16 %v612_v37, %v611_v31  ;;  %v596_v39 = vmul.f32 0.2, %v524_v30  ;;  %v627_v40 = vsel %vm563_vm13, %v521_v19, %v595_v32 }
 0x120   : > { %1033 = vst [vmem:[%s1268_s13 + $0x38] sm:$0xff] %v985_v35   ;;  %1041 = vst [vmem:[%s1268_s13 + $0x78] sm:$0xff] %v1025_v36  }
 0x121   : > { %1032 = vst [vmem:[%s1268_s13 + $0x30] sm:$0xff] %v980_v38   ;;  %v628_v41 = vsel %vm564_vm15, %v524_v30, %v596_v39 }
 0x122   : > { %v1020_v42 = vpack.c.bf16 %v628_v41, %v627_v40 }
 0x124   : > { %1040 = vst [vmem:[%s1268_s13 + $0x70] sm:$0xff] %v1020_v42  }
 0x125 PF: > { %s13_s12 = sadd.s32 1, %s1168_s12  }
 0x126   : > { %p10_p4 = scmp.ge.s32.totalorder %s13_s12, 10  }
 0x128   :  { %12 = sbr.rel (!%p10_p4) target bundleno = 1 (0x1), region = 62 }

// kernel: mul.6
= control target key start
LH: loop header
LB: loop body
LE: loop exit
PB: predicated region body
PF: predicated region fallthrough
CT: control target
= control target key end

     0   :  { %s34_s0 = inlined_call_operand.vmem [shape: f32[1,128], index: 0, kind: input, shape index: {}]   ;;  %s35_s1 = inlined_call_operand.vmem [shape: f32[1,128], index: 1, kind: input, shape index: {}]   ;;  %s36_s2 = inlined_call_operand.vmem [shape: f32[1,128], index: 2, kind: output, shape index: {}]  }
   0x1   :  { %v3_v0 = vld [vmem:[%s34_s0] sm:$0x1] }
   0x2   :  { %v4_v1 = vld [vmem:[%s35_s1] sm:$0x1] }
   0x3   :  { %v7_v2 = vmul.f32 %v4_v1, %v3_v0 }
   0x5   :  { %9 = vst [vmem:[%s36_s2] sm:$0x1] %v7_v2 }

// kernel: discriminator_forward.10
= control target key start
LH: loop header
LB: loop body
LE: loop exit
PB: predicated region body
PF: predicated region fallthrough
CT: control target
= control target key end

     0   :  { %s915_s12 = smov 0   ;;  %s1050_s0 = inlined_call_operand.vmem [shape: bf16[512,128], index: 0, kind: input, shape index: {}]   ;;  %s1051_s1 = inlined_call_operand.vmem [shape: f32[1,128], index: 1, kind: input, shape index: {}]   ;;  %s1052_s2 = inlined_call_operand.vmem [shape: f32[1,128], index: 2, kind: input, shape index: {}]   ;;  %s1053_s3 = inlined_call_operand.vmem [shape: bf16[512,128], index: 3, kind: output, shape index: {}]  }
   0x1 LB: > { %s628_s13 = sadd.s32 4294967295, %s893_s12   ;;  %p632_p0 = scmp.ge.s32.totalorder %s893_s12, 1  ;;  %s893_s12 = sphi %s915_s12, %s13_s12  }
   0x2   : > { %p138_p1 = scmp.lt.s32.totalorder %s893_s12, 3 }
   0x4   : > { %p139_p2 = pnand %p632_p0, %p138_p1 }
   0x5   : > { %s633_s14 = sshll.u32 (!%p139_p2), %s628_s13, 5  ;;  %v936_v0 = vld [vmem:[%s1051_s1] ss:$0 sm:$0xff] (!%p139_p2) }
   0x6   : > { %142 = sbr.rel (%p139_p2) target bundleno = 76 (0x4c), region = 32  ;;  %p163_p3 = scmp.lt.s32.totalorder (!%p139_p2), %s633_s14, 63  ;;  %v945_v9 = vld [vmem:[%s1052_s2] ss:$0 sm:$0xff] (!%p139_p2) }
   0xd   : > { %s1055_s14 = smov (!%p163_p3, %s633_s14), 63 }
   0xe   : > { %s634_s15 = sshll.u32 %s1055_s14, 2 }
   0xf   : > { %s931_s18 = scalar_lea.vmem %s1050_s0, %s634_s15  ;;  %s968_s25 = scalar_lea.vmem %s1053_s3, %s634_s15 }
  0x10   : > { %v706_v1 = vld [vmem:[%s931_s18] sm:$0xff]   ;;  %v849_v2 = vld [vmem:[%s931_s18 + $0x8] sm:$0xff]   ;;  %v850_v3 = vld [vmem:[%s931_s18 + $0x10] sm:$0xff]  }
  0x11   : > { %v707_v4 = vunpack.c.l.bf16 %v706_v1  ;;  %v708_v5 = vunpack.c.h.bf16 %v706_v1  ;;  %v711_v6 = vunpack.c.l.bf16 %v849_v2  ;;  %v712_v7 = vunpack.c.h.bf16 %v849_v2  ;;  %v851_v8 = vld [vmem:[%s931_s18 + $0x18] sm:$0xff]   ;;  %v852_v36 = vld [vmem:[%s931_s18 + $0x20] sm:$0xff]   ;;  %v853_v41 = vld [vmem:[%s931_s18 + $0x28] sm:$0xff]  }
  0x12   : > { %v715_v10 = vunpack.c.l.bf16 %v850_v3  ;;  %v716_v11 = vunpack.c.h.bf16 %v850_v3  ;;  %v719_v12 = vunpack.c.l.bf16 %v851_v8  ;;  %v720_v13 = vunpack.c.h.bf16 %v851_v8  ;;  %v854_v52 = vld [vmem:[%s931_s18 + $0x30] sm:$0xff]   ;;  %v855_v53 = vld [vmem:[%s931_s18 + $0x38] sm:$0xff]  }
  0x13   : > { %v245_v14 = vmul.f32 %v707_v4, %v936_v0  ;;  %v246_v15 = vmul.f32 %v708_v5, %v936_v0  ;;  %v247_v16 = vmul.f32 %v711_v6, %v936_v0  ;;  %v248_v17 = vmul.f32 %v712_v7, %v936_v0 }
  0x14   : > { %v249_v18 = vmul.f32 %v715_v10, %v936_v0  ;;  %v250_v19 = vmul.f32 %v716_v11, %v936_v0  ;;  %v251_v20 = vmul.f32 %v719_v12, %v936_v0  ;;  %v252_v21 = vmul.f32 %v720_v13, %v936_v0 }
  0x15   : > { %v284_v22 = vadd.f32 %v945_v9, %v245_v14  ;;  %v285_v23 = vadd.f32 %v945_v9, %v246_v15  ;;  %v286_v24 = vadd.f32 %v945_v9, %v247_v16  ;;  %v287_v25 = vadd.f32 %v945_v9, %v248_v17 }
  0x16   : > { %v288_v26 = vadd.f32 %v945_v9, %v249_v18  ;;  %v289_v27 = vadd.f32 %v945_v9, %v250_v19  ;;  %v290_v28 = vadd.f32 %v945_v9, %v251_v20  ;;  %v291_v29 = vadd.f32 %v945_v9, %v252_v21  ;;  %v856_v20 = vld [vmem:[%s931_s18 + $0x40] sm:$0xff]  }
  0x17   : > { %vm316_vm0 = vcmp.gt.f32.partialorder %v284_v22, 0.0  ;;  %vm317_vm1 = vcmp.gt.f32.partialorder %v285_v23, 0.0  ;;  %v348_v30 = vmul.f32 0.2, %v284_v22  ;;  %v349_v31 = vmul.f32 0.2, %v285_v23 }
  0x18   : > { %vm318_vm2 = vcmp.gt.f32.partialorder %v286_v24, 0.0  ;;  %vm319_vm3 = vcmp.gt.f32.partialorder %v287_v25, 0.0  ;;  %v350_v32 = vmul.f32 0.2, %v286_v24  ;;  %v351_v33 = vmul.f32 0.2, %v287_v25 }
  0x19   : > { %v380_v34 = vsel %vm316_vm0, %v284_v22, %v348_v30  ;;  %v381_v35 = vsel %vm317_vm1, %v285_v23, %v349_v31  ;;  %vm320_vm4 = vcmp.gt.f32.partialorder %v288_v26, 0.0  ;;  %vm321_vm5 = vcmp.gt.f32.partialorder %v289_v27, 0.0 }
  0x1a   : > { %v772_v37 = vpack.c.bf16 %v381_v35, %v380_v34  ;;  %v382_v38 = vsel %vm318_vm2, %v286_v24, %v350_v32  ;;  %v383_v39 = vsel %vm319_vm3, %v287_v25, %v351_v33  ;;  %v352_v40 = vmul.f32 0.2, %v288_v26  ;;  %v857_v24 = vld [vmem:[%s931_s18 + $0x48] sm:$0xff]  }
  0x1b   : > { %v777_v42 = vpack.c.bf16 %v383_v39, %v382_v38  ;;  %v353_v43 = vmul.f32 0.2, %v289_v27  ;;  %vm322_vm6 = vcmp.gt.f32.partialorder %v290_v28, 0.0  ;;  %vm323_vm7 = vcmp.gt.f32.partialorder %v291_v29, 0.0 }
  0x1c   : > { %773 = vst [vmem:[%s968_s25] sm:$0xff] %v772_v37   ;;  %v384_v44 = vsel %vm320_vm4, %v288_v26, %v352_v40  ;;  %v354_v45 = vmul.f32 0.2, %v290_v28  ;;  %v355_v46 = vmul.f32 0.2, %v291_v29  ;;  %v723_v47 = vunpack.c.l.bf16 %v852_v36 }
  0x1d   : > { %864 = vst [vmem:[%s968_s25 + $0x8] sm:$0xff] %v777_v42   ;;  %v385_v48 = vsel %vm321_vm5, %v289_v27, %v353_v43  ;;  %v724_v49 = vunpack.c.h.bf16 %v852_v36  ;;  %v727_v50 = vunpack.c.l.bf16 %v853_v41  ;;  %v728_v51 = vunpack.c.h.bf16 %v853_v41  ;;  %v858_v36 = vld [vmem:[%s931_s18 + $0x50] sm:$0xff]  }
  0x1e   : > { %v782_v54 = vpack.c.bf16 %v385_v48, %v384_v44  ;;  %v386_v55 = vsel %vm322_vm6, %v290_v28, %v354_v45  ;;  %v387_v56 = vsel %vm323_vm7, %v291_v29, %v355_v46  ;;  %v253_v57 = vmul.f32 %v723_v47, %v936_v0 }
  0x1f   : > { %v787_v58 = vpack.c.bf16 %v387_v56, %v386_v55  ;;  %v254_v59 = vmul.f32 %v724_v49, %v936_v0  ;;  %v255_v60 = vmul.f32 %v727_v50, %v936_v0  ;;  %v256_v61 = vmul.f32 %v728_v51, %v936_v0  ;;  %v859_v55 = vld [vmem:[%s931_s18 + $0x58] sm:$0xff]  }
  0x20   : > { %865 = vst [vmem:[%s968_s25 + $0x10] sm:$0xff] %v782_v54   ;;  %v292_v62 = vadd.f32 %v945_v9, %v253_v57  ;;  %v731_v63 = vunpack.c.l.bf16 %v854_v52  ;;  %v732_v1 = vunpack.c.h.bf16 %v854_v52  ;;  %v735_v2 = vunpack.c.l.bf16 %v855_v53 }
  0x21   : > { %866 = vst [vmem:[%s968_s25 + $0x18] sm:$0xff] %v787_v58   ;;  %v293_v3 = vadd.f32 %v945_v9, %v254_v59  ;;  %v294_v4 = vadd.f32 %v945_v9, %v255_v60  ;;  %v295_v5 = vadd.f32 %v945_v9, %v256_v61  ;;  %v736_v6 = vunpack.c.h.bf16 %v855_v53 }
  0x22   : > { %vm324_vm8 = vcmp.gt.f32.partialorder %v292_v62, 0.0  ;;  %v356_v7 = vmul.f32 0.2, %v292_v62  ;;  %v257_v8 = vmul.f32 %v731_v63, %v936_v0  ;;  %v258_v10 = vmul.f32 %v732_v1, %v936_v0  ;;  %v860_v1 = vld [vmem:[%s931_s18 + $0x60] sm:$0xff]  }
  0x23   : > { %vm325_vm9 = vcmp.gt.f32.partialorder %v293_v3, 0.0  ;;  %v357_v11 = vmul.f32 0.2, %v293_v3  ;;  %vm326_vm10 = vcmp.gt.f32.partialorder %v294_v4, 0.0  ;;  %vm327_vm11 = vcmp.gt.f32.partialorder %v295_v5, 0.0 }
  0x24   : > { %v388_v12 = vsel %vm324_vm8, %v292_v62, %v356_v7  ;;  %v358_v13 = vmul.f32 0.2, %v294_v4  ;;  %v359_v14 = vmul.f32 0.2, %v295_v5  ;;  %v296_v15 = vadd.f32 %v945_v9, %v257_v8 }
  0x25   : > { %v389_v16 = vsel %vm325_vm9, %v293_v3, %v357_v11  ;;  %v297_v17 = vadd.f32 %v945_v9, %v258_v10  ;;  %v259_v18 = vmul.f32 %v735_v2, %v936_v0  ;;  %v260_v19 = vmul.f32 %v736_v6, %v936_v0  ;;  %v861_v6 = vld [vmem:[%s931_s18 + $0x68] sm:$0xff]  }
  0x26   : > { %v792_v21 = vpack.c.bf16 %v389_v16, %v388_v12  ;;  %v390_v22 = vsel %vm326_vm10, %v294_v4, %v358_v13  ;;  %v391_v23 = vsel %vm327_vm11, %v295_v5, %v359_v14  ;;  %vm328_vm12 = vcmp.gt.f32.partialorder %v296_v15, 0.0 }
  0x27   : > { %v797_v25 = vpack.c.bf16 %v391_v23, %v390_v22  ;;  %vm329_vm13 = vcmp.gt.f32.partialorder %v297_v17, 0.0  ;;  %v360_v26 = vmul.f32 0.2, %v296_v15  ;;  %v361_v27 = vmul.f32 0.2, %v297_v17  ;;  %v862_v22 = vld [vmem:[%s931_s18 + $0x70] sm:$0xff]  }
  0x28   : > { %867 = vst [vmem:[%s968_s25 + $0x20] sm:$0xff] %v792_v21   ;;  %v298_v28 = vadd.f32 %v945_v9, %v259_v18  ;;  %v299_v29 = vadd.f32 %v945_v9, %v260_v19  ;;  %v739_v30 = vunpack.c.l.bf16 %v856_v20  ;;  %v740_v31 = vunpack.c.h.bf16 %v856_v20 }
  0x29   : > { %868 = vst [vmem:[%s968_s25 + $0x28] sm:$0xff] %v797_v25   ;;  %v392_v32 = vsel %vm328_vm12, %v296_v15, %v360_v26  ;;  %v393_v33 = vsel %vm329_vm13, %v297_v17, %v361_v27  ;;  %v743_v34 = vunpack.c.l.bf16 %v857_v24  ;;  %v744_v35 = vunpack.c.h.bf16 %v857_v24 }
  0x2a   : > { %v802_v37 = vpack.c.bf16 %v393_v33, %v392_v32  ;;  %vm330_vm14 = vcmp.gt.f32.partialorder %v298_v28, 0.0  ;;  %vm331_vm15 = vcmp.gt.f32.partialorder %v299_v29, 0.0  ;;  %v362_v38 = vmul.f32 0.2, %v298_v28 }
  0x2b   : > { %v363_v39 = vmul.f32 0.2, %v299_v29  ;;  %v261_v40 = vmul.f32 %v739_v30, %v936_v0  ;;  %v262_v41 = vmul.f32 %v740_v31, %v936_v0  ;;  %v263_v42 = vmul.f32 %v743_v34, %v936_v0 }
  0x2c   : > { %869 = vst [vmem:[%s968_s25 + $0x30] sm:$0xff] %v802_v37   ;;  %v394_v43 = vsel %vm330_vm14, %v298_v28, %v362_v38  ;;  %v264_v44 = vmul.f32 %v744_v35, %v936_v0  ;;  %v747_v45 = vunpack.c.l.bf16 %v858_v36  ;;  %v748_v46 = vunpack.c.h.bf16 %v858_v36 }
  0x2d   : > { %v395_v47 = vsel %vm331_vm15, %v299_v29, %v363_v39  ;;  %v300_v48 = vadd.f32 %v945_v9, %v261_v40  ;;  %v301_v49 = vadd.f32 %v945_v9, %v262_v41  ;;  %v302_v50 = vadd.f32 %v945_v9, %v263_v42  ;;  %v863_v41 = vld [vmem:[%s931_s18 + $0x78] sm:$0xff]  }
  0x2e   : > { %v807_v51 = vpack.c.bf16 %v395_v47, %v394_v43  ;;  %v303_v52 = vadd.f32 %v945_v9, %v264_v44  ;;  %v265_v53 = vmul.f32 %v747_v45, %v936_v0  ;;  %v266_v54 = vmul.f32 %v748_v46, %v936_v0 }
  0x2f   : > { %vm332_vm0 = vcmp.gt.f32.partialorder %v300_v48, 0.0  ;;  %vm333_vm1 = vcmp.gt.f32.partialorder %v301_v49, 0.0  ;;  %v364_v56 = vmul.f32 0.2, %v300_v48  ;;  %v365_v57 = vmul.f32 0.2, %v301_v49 }
  0x30   : > { %870 = vst [vmem:[%s968_s25 + $0x38] sm:$0xff] %v807_v51   ;;  %vm334_vm2 = vcmp.gt.f32.partialorder %v302_v50, 0.0  ;;  %vm335_vm3 = vcmp.gt.f32.partialorder %v303_v52, 0.0  ;;  %v366_v58 = vmul.f32 0.2, %v302_v50  ;;  %v304_v62 = vadd.f32 %v945_v9, %v265_v53 }
  0x31   : > { %v367_v59 = vmul.f32 0.2, %v303_v52  ;;  %v396_v60 = vsel %vm332_vm0, %v300_v48, %v364_v56  ;;  %v397_v61 = vsel %vm333_vm1, %v301_v49, %v365_v57  ;;  %v305_v63 = vadd.f32 %v945_v9, %v266_v54 }
  0x32   : > { %v812_v2 = vpack.c.bf16 %v397_v61, %v396_v60  ;;  %v398_v3 = vsel %vm334_vm2, %v302_v50, %v366_v58  ;;  %v751_v5 = vunpack.c.l.bf16 %v859_v55  ;;  %vm336_vm4 = vcmp.gt.f32.partialorder %v304_v62, 0.0 }
  0x33   : > { %v399_v4 = vsel %vm335_vm3, %v303_v52, %v367_v59  ;;  %vm337_vm5 = vcmp.gt.f32.partialorder %v305_v63, 0.0  ;;  %v368_v8 = vmul.f32 0.2, %v304_v62  ;;  %v369_v10 = vmul.f32 0.2, %v305_v63 }
  0x34   : > { %v817_v7 = vpack.c.bf16 %v399_v4, %v398_v3  ;;  %871 = vst [vmem:[%s968_s25 + $0x40] sm:$0xff] %v812_v2   ;;  %v752_v11 = vunpack.c.h.bf16 %v859_v55  ;;  %v267_v12 = vmul.f32 %v751_v5, %v936_v0  ;;  %v755_v13 = vunpack.c.l.bf16 %v860_v1 }
  0x35   : > { %v400_v14 = vsel %vm336_vm4, %v304_v62, %v368_v8  ;;  %v756_v15 = vunpack.c.h.bf16 %v860_v1  ;;  %v759_v16 = vunpack.c.l.bf16 %v861_v6  ;;  %v760_v17 = vunpack.c.h.bf16 %v861_v6 }
  0x36   : > { %872 = vst [vmem:[%s968_s25 + $0x48] sm:$0xff] %v817_v7   ;;  %v401_v18 = vsel %vm337_vm5, %v305_v63, %v369_v10  ;;  %v268_v19 = vmul.f32 %v752_v11, %v936_v0  ;;  %v306_v20 = vadd.f32 %v945_v9, %v267_v12  ;;  %v269_v21 = vmul.f32 %v755_v13, %v936_v0 }
  0x37   : > { %v822_v23 = vpack.c.bf16 %v401_v18, %v400_v14  ;;  %v270_v24 = vmul.f32 %v756_v15, %v936_v0  ;;  %v271_v25 = vmul.f32 %v759_v16, %v936_v0  ;;  %v272_v26 = vmul.f32 %v760_v17, %v936_v0 }
  0x38   : > { %v307_v27 = vadd.f32 %v945_v9, %v268_v19  ;;  %vm338_vm6 = vcmp.gt.f32.partialorder %v306_v20, 0.0  ;;  %v370_v28 = vmul.f32 0.2, %v306_v20  ;;  %v308_v29 = vadd.f32 %v945_v9, %v269_v21 }
  0x39   : > { %873 = vst [vmem:[%s968_s25 + $0x50] sm:$0xff] %v822_v23   ;;  %v309_v30 = vadd.f32 %v945_v9, %v270_v24  ;;  %v310_v31 = vadd.f32 %v945_v9, %v271_v25  ;;  %v311_v32 = vadd.f32 %v945_v9, %v272_v26  ;;  %v763_v33 = vunpack.c.l.bf16 %v862_v22 }
  0x3a   : > { %vm339_vm7 = vcmp.gt.f32.partialorder %v307_v27, 0.0  ;;  %v371_v34 = vmul.f32 0.2, %v307_v27  ;;  %v402_v35 = vsel %vm338_vm6, %v306_v20, %v370_v28  ;;  %vm340_vm8 = vcmp.gt.f32.partialorder %v308_v29, 0.0 }
  0x3b   : > { %vm341_vm9 = vcmp.gt.f32.partialorder %v309_v30, 0.0  ;;  %v372_v36 = vmul.f32 0.2, %v308_v29  ;;  %v373_v37 = vmul.f32 0.2, %v309_v30  ;;  %vm342_vm10 = vcmp.gt.f32.partialorder %v310_v31, 0.0 }
  0x3c   : > { %v403_v38 = vsel %vm339_vm7, %v307_v27, %v371_v34  ;;  %vm343_vm11 = vcmp.gt.f32.partialorder %v311_v32, 0.0  ;;  %v374_v39 = vmul.f32 0.2, %v310_v31  ;;  %v375_v40 = vmul.f32 0.2, %v311_v32 }
  0x3d   : > { %v827_v42 = vpack.c.bf16 %v403_v38, %v402_v35  ;;  %v404_v43 = vsel %vm340_vm8, %v308_v29, %v372_v36  ;;  %v405_v44 = vsel %vm341_vm9, %v309_v30, %v373_v37  ;;  %v764_v45 = vunpack.c.h.bf16 %v862_v22 }
  0x3e   : > { %v832_v46 = vpack.c.bf16 %v405_v44, %v404_v43  ;;  %v406_v47 = vsel %vm342_vm10, %v310_v31, %v374_v39  ;;  %v407_v48 = vsel %vm343_vm11, %v311_v32, %v375_v40  ;;  %v273_v49 = vmul.f32 %v763_v33, %v936_v0 }
  0x3f   : > { %874 = vst [vmem:[%s968_s25 + $0x58] sm:$0xff] %v827_v42   ;;  %v837_v50 = vpack.c.bf16 %v407_v48, %v406_v47  ;;  %v274_v51 = vmul.f32 %v764_v45, %v936_v0  ;;  %v767_v52 = vunpack.c.l.bf16 %v863_v41  ;;  %v768_v53 = vunpack.c.h.bf16 %v863_v41 }
  0x40   : > { %875 = vst [vmem:[%s968_s25 + $0x60] sm:$0xff] %v832_v46   ;;  %v312_v54 = vadd.f32 %v945_v9, %v273_v49 }
  0x41   : > { %876 = vst [vmem:[%s968_s25 + $0x68] sm:$0xff] %v837_v50   ;;  %v313_v55 = vadd.f32 %v945_v9, %v274_v51  ;;  %v275_v56 = vmul.f32 %v767_v52, %v936_v0  ;;  %v276_v57 = vmul.f32 %v768_v53, %v936_v0 }
  0x42   : > { %vm344_vm12 = vcmp.gt.f32.partialorder %v312_v54, 0.0  ;;  %v376_v58 = vmul.f32 0.2, %v312_v54 }
  0x43   : > { %vm345_vm13 = vcmp.gt.f32.partialorder %v313_v55, 0.0  ;;  %v377_v59 = vmul.f32 0.2, %v313_v55  ;;  %v314_v60 = vadd.f32 %v945_v9, %v275_v56  ;;  %v315_v61 = vadd.f32 %v945_v9, %v276_v57 }
  0x44   : > { %v408_v62 = vsel %vm344_vm12, %v312_v54, %v376_v58 }
  0x45   : > { %v409_v63 = vsel %vm345_vm13, %v313_v55, %v377_v59  ;;  %vm346_vm14 = vcmp.gt.f32.partialorder %v314_v60, 0.0  ;;  %vm347_vm15 = vcmp.gt.f32.partialorder %v315_v61, 0.0  ;;  %v378_v1 = vmul.f32 0.2, %v314_v60 }
  0x46   : > { %v842_v2 = vpack.c.bf16 %v409_v63, %v408_v62  ;;  %v379_v3 = vmul.f32 0.2, %v315_v61 }
  0x47   : > { %v410_v4 = vsel %vm346_vm14, %v314_v60, %v378_v1 }
  0x48   : > { %877 = vst [vmem:[%s968_s25 + $0x70] sm:$0xff] %v842_v2   ;;  %v411_v5 = vsel %vm347_vm15, %v315_v61, %v379_v3 }
  0x49   : > { %v847_v0 = vpack.c.bf16 %v411_v5, %v410_v4 }
  0x4b   : > { %878 = vst [vmem:[%s968_s25 + $0x78] sm:$0xff] %v847_v0  }
  0x4c PF: > { %s13_s12 = sadd.s32 1, %s893_s12  }
  0x4d   : > { %p10_p4 = scmp.ge.s32.totalorder %s13_s12, 4  }
  0x4f   :  { %12 = sbr.rel (!%p10_p4) target bundleno = 1 (0x1), region = 62 }

// kernel: discriminator_forward.9
= control target key start
LH: loop header
LB: loop body
LE: loop exit
PB: predicated region body
PF: predicated region fallthrough
CT: control target
= control target key end

     0   :  { %s1451_s12 = smov 0   ;;  %s1773_s0 = inlined_call_operand.vmem [shape: bf16[512,256], index: 0, kind: input, shape index: {}]   ;;  %s1774_s1 = inlined_call_operand.vmem [shape: bf16[256,128], index: 1, kind: input, shape index: {}]   ;;  %s1775_s2 = inlined_call_operand.vmem [shape: bf16[512,128], index: 2, kind: output, shape index: {0}]   ;;  %s1776_s3 = inlined_call_operand.vmem [shape: f32[8,128], index: 3, kind: output, shape index: {1}]  }
   0x1 LB: > { %s1000_s13 = sadd.s32 4294967295, %s1428_s12   ;;  %p1004_p0 = scmp.ge.s32.totalorder %s1428_s12, 1  ;;  %s1428_s12 = sphi %s1451_s12, %s14_s12  }
   0x2   : > { %p137_p1 = scmp.lt.s32.totalorder %s1428_s12, 3 }
   0x4   : > { %p138_p2 = pnand %p1004_p0, %p137_p1 }
   0x5   : > { %v1358_v0 = vld [vmem:[%s1774_s1 + $0x40] sm:$0xff] (!%p138_p2)   ;;  %s1005_s16 = sshll.u32 (!%p138_p2), %s1000_s13, 5  ;;  %v1360_v2 = vld [vmem:[%s1774_s1 + $0x48] sm:$0xff] (!%p138_p2)   ;;  %v1362_v4 = vld [vmem:[%s1774_s1 + $0x50] sm:$0xff] (!%p138_p2)   ;;  %p1058_p4 = scmp.ne.s32.totalorder (!%p138_p2), %s1000_s13, 0 }
   0x6   : > { %141 = sbr.rel (%p138_p2) target bundleno = 392 (0x188), region = 28  ;;  %v1359_v1 = vld [vmem:[%s1774_s1] sm:$0xff] (!%p138_p2)   ;;  %p163_p3 = scmp.lt.s32.totalorder (!%p138_p2), %s1005_s16, 63  ;;  %1221 = vmatprep.subr.bf16.mxu0 (!%p138_p2), %v1358_v0  ;;  %1333 = vmatprep.subr.bf16.mxu1 (!%p138_p2), %v1358_v0  ;;  %v1361_v3 = vld [vmem:[%s1774_s1 + $0x8] sm:$0xff] (!%p138_p2)   ;;  %v1363_v5 = vld [vmem:[%s1774_s1 + $0x10] sm:$0xff] (!%p138_p2)  }
   0x7   : > { %1222 = vmatpush3.bf16.msra.mxu0 (!%p138_p2), %v1359_v1  ;;  %1341 = vmatpush3.bf16.msra.mxu1 (!%p138_p2), %v1359_v1  ;;  %v1364_v6 = vld [vmem:[%s1774_s1 + $0x58] sm:$0xff] (!%p138_p2)   ;;  %v1366_v8 = vld [vmem:[%s1774_s1 + $0x60] sm:$0xff] (!%p138_p2)   ;;  %v1368_v10 = vld [vmem:[%s1774_s1 + $0x68] sm:$0xff] (!%p138_p2)  }
   0x8   : > { %1223 = vmatprep.subr.bf16.mxu0 (!%p138_p2), %v1360_v2  ;;  %1334 = vmatprep.subr.bf16.mxu1 (!%p138_p2), %v1360_v2  ;;  %v1365_v7 = vld [vmem:[%s1774_s1 + $0x18] sm:$0xff] (!%p138_p2)   ;;  %v1367_v9 = vld [vmem:[%s1774_s1 + $0x20] sm:$0xff] (!%p138_p2)   ;;  %v1369_v13 = vld [vmem:[%s1774_s1 + $0x28] sm:$0xff] (!%p138_p2)  }
   0x9   : > { %v1370_v14 = vld [vmem:[%s1774_s1 + $0x70] sm:$0xff] (!%p138_p2)   ;;  %v1372_v16 = vld [vmem:[%s1774_s1 + $0x78] sm:$0xff] (!%p138_p2)  }
   0xa   : > { %v1371_v15 = vld [vmem:[%s1774_s1 + $0x30] sm:$0xff] (!%p138_p2)   ;;  %v1373_v17 = vld [vmem:[%s1774_s1 + $0x38] sm:$0xff] (!%p138_p2)  }
   0xb   : > { %1224 = vmatpush3.bf16.msra.mxu0 (!%p138_p2), %v1361_v3  ;;  %1342 = vmatpush3.bf16.msra.mxu1 (!%p138_p2), %v1361_v3 }
   0xc   : > { %1225 = vmatprep.subr.bf16.mxu0 (!%p138_p2), %v1362_v4  ;;  %1335 = vmatprep.subr.bf16.mxu1 (!%p138_p2), %v1362_v4 }
   0xd   : > { %s1778_s16 = smov (!%p163_p3, %s1005_s16), 63 }
   0xe   : > { %s1009_s25 = sshll.u32 %s1778_s16, 2  ;;  %s1093_s8 = sshll.u32 %s1778_s16, 3 }
   0xf   : > { %s1482_s30 = scalar_lea.vmem %s1775_s2, %s1009_s25  ;;  %1226 = vmatpush3.bf16.msra.mxu0 %v1363_v5  ;;  %1343 = vmatpush3.bf16.msra.mxu1 %v1363_v5  ;;  %s1496_s15 = scalar_lea.vmem %s1773_s0, %s1093_s8 }
  0x10   : > { %1227 = vmatprep.subr.bf16.mxu0 %v1364_v6  ;;  %1336 = vmatprep.subr.bf16.mxu1 %v1364_v6  ;;  %v1376_v11 = vld [vmem:[%s1496_s15 + $0x4] ss:$8 sps:$4 sm:$0xff]   ;;  %v1374_v18 = vld [vmem:[%s1496_s15] ss:$8 sps:$4 sm:$0xff]   ;;  %v1380_v20 = vld [vmem:[%s1496_s15 + $0x14] ss:$8 sps:$4 sm:$0xff]  }
  0x11   : > { %v1379_v12 = vld [vmem:[%s1496_s15 + $0x84] ss:$8 sps:$4 sm:$0xff]   ;;  %528 = vmatprep.mubr.bf16.mxu0 %v1376_v11  ;;  %v1377_v19 = vld [vmem:[%s1496_s15 + $0x80] ss:$8 sps:$4 sm:$0xff]   ;;  %v1382_v21 = vld [vmem:[%s1496_s15 + $0x94] ss:$8 sps:$4 sm:$0xff]  }
  0x12   : > { %592 = vmatprep.mubr.bf16.mxu1 %v1379_v12  ;;  %v1384_v22 = vld [vmem:[%s1496_s15 + $0x10] ss:$8 sps:$4 sm:$0xff]   ;;  %v1386_v24 = vld [vmem:[%s1496_s15 + $0x24] ss:$8 sps:$4 sm:$0xff]   ;;  %v1390_v26 = vld [vmem:[%s1496_s15 + $0x20] ss:$8 sps:$4 sm:$0xff]  }
  0x13   : > { %1228 = vmatpush3.bf16.msra.mxu0 %v1365_v7  ;;  %1344 = vmatpush3.bf16.msra.mxu1 %v1365_v7  ;;  %v1385_v23 = vld [vmem:[%s1496_s15 + $0x90] ss:$8 sps:$4 sm:$0xff]   ;;  %v1388_v25 = vld [vmem:[%s1496_s15 + $0xa4] ss:$8 sps:$4 sm:$0xff]   ;;  %v1391_v27 = vld [vmem:[%s1496_s15 + $0xa0] ss:$8 sps:$4 sm:$0xff]  }
  0x14   : > { %1229 = vmatprep.subr.bf16.mxu0 %v1366_v8  ;;  %1337 = vmatprep.subr.bf16.mxu1 %v1366_v8  ;;  %v1392_v28 = vld [vmem:[%s1496_s15 + $0x34] ss:$8 sps:$4 sm:$0xff]   ;;  %v1396_v30 = vld [vmem:[%s1496_s15 + $0x30] ss:$8 sps:$4 sm:$0xff]   ;;  %v1398_v32 = vld [vmem:[%s1496_s15 + $0x44] ss:$8 sps:$4 sm:$0xff]  }
  0x15   : > { %v1394_v29 = vld [vmem:[%s1496_s15 + $0xb4] ss:$8 sps:$4 sm:$0xff]   ;;  %v1397_v31 = vld [vmem:[%s1496_s15 + $0xb0] ss:$8 sps:$4 sm:$0xff]   ;;  %v1400_v33 = vld [vmem:[%s1496_s15 + $0xc4] ss:$8 sps:$4 sm:$0xff]  }
  0x16   : > { %v1402_v34 = vld [vmem:[%s1496_s15 + $0x40] ss:$8 sps:$4 sm:$0xff]   ;;  %v1404_v36 = vld [vmem:[%s1496_s15 + $0x54] ss:$8 sps:$4 sm:$0xff]   ;;  %v1408_v38 = vld [vmem:[%s1496_s15 + $0x50] ss:$8 sps:$4 sm:$0xff]  }
  0x17   : > { %1230 = vmatpush3.bf16.msra.mxu0 %v1367_v9  ;;  %1345 = vmatpush3.bf16.msra.mxu1 %v1367_v9  ;;  %v1403_v35 = vld [vmem:[%s1496_s15 + $0xc0] ss:$8 sps:$4 sm:$0xff]   ;;  %v1406_v37 = vld [vmem:[%s1496_s15 + $0xd4] ss:$8 sps:$4 sm:$0xff]   ;;  %v1409_v39 = vld [vmem:[%s1496_s15 + $0xd0] ss:$8 sps:$4 sm:$0xff]  }
  0x18   : > { %1231 = vmatprep.subr.bf16.mxu0 %v1368_v10  ;;  %1338 = vmatprep.subr.bf16.mxu1 %v1368_v10  ;;  %v1410_v40 = vld [vmem:[%s1496_s15 + $0x64] ss:$8 sps:$4 sm:$0xff]   ;;  %v1414_v42 = vld [vmem:[%s1496_s15 + $0x60] ss:$8 sps:$4 sm:$0xff]   ;;  %v1416_v44 = vld [vmem:[%s1496_s15 + $0x74] ss:$8 sps:$4 sm:$0xff]  }
  0x19   : > { %v1412_v41 = vld [vmem:[%s1496_s15 + $0xe4] ss:$8 sps:$4 sm:$0xff]   ;;  %v1415_v43 = vld [vmem:[%s1496_s15 + $0xe0] ss:$8 sps:$4 sm:$0xff]   ;;  %v1418_v45 = vld [vmem:[%s1496_s15 + $0xf4] ss:$8 sps:$4 sm:$0xff]  }
  0x1a   : > { %v1420_v46 = vld [vmem:[%s1496_s15 + $0x70] ss:$8 sps:$4 sm:$0xff]  }
  0x1b   : > { %1232 = vmatpush3.bf16.msra.mxu0 %v1369_v13  ;;  %1346 = vmatpush3.bf16.msra.mxu1 %v1369_v13  ;;  %v1421_v47 = vld [vmem:[%s1496_s15 + $0xf0] ss:$8 sps:$4 sm:$0xff]  }
  0x1c   : > { %1233 = vmatprep.subr.bf16.mxu0 %v1370_v14  ;;  %1339 = vmatprep.subr.bf16.mxu1 %v1370_v14 }
  0x1f   : > { %1234 = vmatpush3.bf16.msra.mxu0 %v1371_v15  ;;  %1347 = vmatpush3.bf16.msra.mxu1 %v1371_v15 }
  0x20   : > { %1235 = vmatprep.subr.bf16.mxu0 %v1372_v16  ;;  %1340 = vmatprep.subr.bf16.mxu1 %v1372_v16 }
  0x23   : > { %1236 = vmatpush3.bf16.msra.mxu0 %v1373_v17  ;;  %1348 = vmatpush3.bf16.msra.mxu1 %v1373_v17 }
  0x26   : > { %529 = vmatmul.mubr.bf16.vlgmr.msra.gmra.mrb[0].mxu0 %v1374_v18  ;;  %593 = vmatmul.mubr.bf16.vlgmr.msra.gmra.mrb[0].mxu1 %v1377_v19 }
  0x27   : > { %536 = vmatprep.mubr.bf16.mxu0 %v1380_v20  ;;  %600 = vmatprep.mubr.bf16.mxu1 %v1382_v21 }
  0x2e   : > { %537 = vmatmul.mubr.bf16.gmra.mrb[4].mxu0 %v1384_v22  ;;  %601 = vmatmul.mubr.bf16.gmra.mrb[4].mxu1 %v1385_v23 }
  0x2f   : > { %544 = vmatprep.mubr.bf16.mxu0 %v1386_v24  ;;  %608 = vmatprep.mubr.bf16.mxu1 %v1388_v25 }
  0x36   : > { %545 = vmatmul.mubr.bf16.gmra.mrb[8].mxu0 %v1390_v26  ;;  %609 = vmatmul.mubr.bf16.gmra.mrb[8].mxu1 %v1391_v27 }
  0x37   : > { %552 = vmatprep.mubr.bf16.mxu0 %v1392_v28  ;;  %616 = vmatprep.mubr.bf16.mxu1 %v1394_v29 }
  0x3e   : > { %553 = vmatmul.mubr.bf16.gmra.mrb[12].mxu0 %v1396_v30  ;;  %617 = vmatmul.mubr.bf16.gmra.mrb[12].mxu1 %v1397_v31 }
  0x3f   : > { %560 = vmatprep.mubr.bf16.mxu0 %v1398_v32  ;;  %624 = vmatprep.mubr.bf16.mxu1 %v1400_v33 }
  0x46   : > { %561 = vmatmul.mubr.bf16.gmra.mrb[16].mxu0 %v1402_v34  ;;  %625 = vmatmul.mubr.bf16.gmra.mrb[16].mxu1 %v1403_v35 }
  0x47   : > { %568 = vmatprep.mubr.bf16.mxu0 %v1404_v36  ;;  %632 = vmatprep.mubr.bf16.mxu1 %v1406_v37 }
  0x4e   : > { %569 = vmatmul.mubr.bf16.gmra.mrb[20].mxu0 %v1408_v38  ;;  %633 = vmatmul.mubr.bf16.gmra.mrb[20].mxu1 %v1409_v39 }
  0x4f   : > { %576 = vmatprep.mubr.bf16.mxu0 %v1410_v40  ;;  %640 = vmatprep.mubr.bf16.mxu1 %v1412_v41 }
  0x56   : > { %577 = vmatmul.mubr.bf16.gmra.mrb[24].mxu0 %v1414_v42  ;;  %641 = vmatmul.mubr.bf16.gmra.mrb[24].mxu1 %v1415_v43 }
  0x57   : > { %584 = vmatprep.mubr.bf16.mxu0 %v1416_v44  ;;  %648 = vmatprep.mubr.bf16.mxu1 %v1418_v45 }
  0x5e   : > { %585 = vmatmul.mubr.bf16.gmra.mrb[28].mxu0 %v1420_v46  ;;  %649 = vmatmul.mubr.bf16.gmra.mrb[28].mxu1 %v1421_v47 }
  0xf9   : > { %v1237_v48 = vpop.f32.mrb[0].mxu0  ;;  %v1285_v49 = vpop.f32.mrb[0].mxu1 }
  0xfa   : > { %v1238_v50 = vpop.f32.mrb[1].mxu0  ;;  %v1286_v51 = vpop.f32.mrb[1].mxu1 }
  0xfb   : > { %v1551_v52 = vadd.f32 %v1238_v50, %v1237_v48  ;;  %v1553_v53 = vadd.f32 %v1286_v51, %v1285_v49  ;;  %v1240_v54 = vpop.f32.mrb[2].mxu0  ;;  %v1288_v55 = vpop.f32.mrb[2].mxu1 }
  0xfc   : > { %v1241_v56 = vpop.f32.mrb[3].mxu0  ;;  %v1289_v57 = vpop.f32.mrb[3].mxu1 }
  0xfd   : > { %v1555_v58 = vadd.f32 %v1241_v56, %v1240_v54  ;;  %v1557_v59 = vadd.f32 %v1289_v57, %v1288_v55 }
 0x101   : > { %v1243_v60 = vpop.f32.mrb[4].mxu0  ;;  %v1291_v61 = vpop.f32.mrb[4].mxu1 }
 0x102   : > { %v1244_v62 = vpop.f32.mrb[5].mxu0  ;;  %v1292_v63 = vpop.f32.mrb[5].mxu1 }
 0x103   : > { %v1559_v0 = vadd.f32 %v1244_v62, %v1243_v60  ;;  %v1561_v1 = vadd.f32 %v1292_v63, %v1291_v61  ;;  %v1246_v2 = vpop.f32.mrb[6].mxu0  ;;  %v1294_v3 = vpop.f32.mrb[6].mxu1 }
 0x104   : > { %v1247_v4 = vpop.f32.mrb[7].mxu0  ;;  %v1295_v5 = vpop.f32.mrb[7].mxu1 }
 0x105   : > { %v1563_v6 = vadd.f32 %v1247_v4, %v1246_v2  ;;  %v1565_v7 = vadd.f32 %v1295_v5, %v1294_v3 }
 0x109   : > { %v1249_v8 = vpop.f32.mrb[8].mxu0  ;;  %v1297_v9 = vpop.f32.mrb[8].mxu1 }
 0x10a   : > { %v1250_v10 = vpop.f32.mrb[9].mxu0  ;;  %v1298_v11 = vpop.f32.mrb[9].mxu1 }
 0x10b   : > { %v1567_v12 = vadd.f32 %v1250_v10, %v1249_v8  ;;  %v1569_v13 = vadd.f32 %v1298_v11, %v1297_v9  ;;  %v1252_v14 = vpop.f32.mrb[10].mxu0  ;;  %v1300_v15 = vpop.f32.mrb[10].mxu1 }
 0x10c   : > { %v1253_v16 = vpop.f32.mrb[11].mxu0  ;;  %v1301_v17 = vpop.f32.mrb[11].mxu1 }
 0x10d   : > { %v1571_v18 = vadd.f32 %v1253_v16, %v1252_v14  ;;  %v1573_v19 = vadd.f32 %v1301_v17, %v1300_v15 }
 0x111   : > { %v1255_v20 = vpop.f32.mrb[12].mxu0  ;;  %v1303_v21 = vpop.f32.mrb[12].mxu1 }
 0x112   : > { %v1256_v22 = vpop.f32.mrb[13].mxu0  ;;  %v1304_v23 = vpop.f32.mrb[13].mxu1 }
 0x113   : > { %v1575_v24 = vadd.f32 %v1256_v22, %v1255_v20  ;;  %v1577_v25 = vadd.f32 %v1304_v23, %v1303_v21  ;;  %v1258_v26 = vpop.f32.mrb[14].mxu0  ;;  %v1306_v27 = vpop.f32.mrb[14].mxu1 }
 0x114   : > { %v1259_v28 = vpop.f32.mrb[15].mxu0  ;;  %v1307_v29 = vpop.f32.mrb[15].mxu1 }
 0x115   : > { %v1579_v30 = vadd.f32 %v1259_v28, %v1258_v26  ;;  %v1581_v31 = vadd.f32 %v1307_v29, %v1306_v27 }
 0x119   : > { %v1261_v32 = vpop.f32.mrb[16].mxu0  ;;  %v1309_v33 = vpop.f32.mrb[16].mxu1 }
 0x11a   : > { %v1262_v34 = vpop.f32.mrb[17].mxu0  ;;  %v1310_v35 = vpop.f32.mrb[17].mxu1 }
 0x11b   : > { %v1583_v36 = vadd.f32 %v1262_v34, %v1261_v32  ;;  %v1585_v37 = vadd.f32 %v1310_v35, %v1309_v33  ;;  %v1264_v38 = vpop.f32.mrb[18].mxu0  ;;  %v1312_v39 = vpop.f32.mrb[18].mxu1  ;;  %v1430_v32 = vmov (!%p1058_p4), 0.0  }
 0x11c   : > { %v1265_v40 = vpop.f32.mrb[19].mxu0  ;;  %v1313_v41 = vpop.f32.mrb[19].mxu1  ;;  %661 = vst [vmem:[%s1776_s3] sm:$0xff] (!%p1058_p4), %v1430_v32 }
 0x11d   : > { %v1587_v42 = vadd.f32 %v1265_v40, %v1264_v38  ;;  %v1589_v43 = vadd.f32 %v1313_v41, %v1312_v39 }
 0x121   : > { %v1267_v44 = vpop.f32.mrb[20].mxu0  ;;  %v1315_v45 = vpop.f32.mrb[20].mxu1 }
 0x122   : > { %v1268_v46 = vpop.f32.mrb[21].mxu0  ;;  %v1316_v47 = vpop.f32.mrb[21].mxu1 }
 0x123   : > { %v1591_v48 = vadd.f32 %v1268_v46, %v1267_v44  ;;  %v1593_v49 = vadd.f32 %v1316_v47, %v1315_v45  ;;  %v1270_v50 = vpop.f32.mrb[22].mxu0  ;;  %v1318_v51 = vpop.f32.mrb[22].mxu1 }
 0x124   : > { %v1271_v54 = vpop.f32.mrb[23].mxu0  ;;  %v1319_v55 = vpop.f32.mrb[23].mxu1 }
 0x125   : > { %v1595_v56 = vadd.f32 %v1271_v54, %v1270_v50  ;;  %v1597_v57 = vadd.f32 %v1319_v55, %v1318_v51 }
 0x129   : > { %v1273_v60 = vpop.f32.mrb[24].mxu0  ;;  %v1321_v61 = vpop.f32.mrb[24].mxu1 }
 0x12a   : > { %v1274_v62 = vpop.f32.mrb[25].mxu0  ;;  %v1322_v63 = vpop.f32.mrb[25].mxu1 }
 0x12b   : > { %v1599_v2 = vadd.f32 %v1274_v62, %v1273_v60  ;;  %v1601_v3 = vadd.f32 %v1322_v63, %v1321_v61  ;;  %v1276_v4 = vpop.f32.mrb[26].mxu0  ;;  %v1324_v5 = vpop.f32.mrb[26].mxu1 }
 0x12c   : > { %v1277_v8 = vpop.f32.mrb[27].mxu0  ;;  %v1325_v9 = vpop.f32.mrb[27].mxu1 }
 0x12d   : > { %v1603_v10 = vadd.f32 %v1277_v8, %v1276_v4  ;;  %v1605_v11 = vadd.f32 %v1325_v9, %v1324_v5 }
 0x12f   : > { %660 = sbr.rel (%p1058_p4) target bundleno = 310 (0x136), region = 32 }
 0x131   : > { %v1279_v14 = vpop.f32.mrb[28].mxu0  ;;  %v1327_v15 = vpop.f32.mrb[28].mxu1 }
 0x132   : > { %v1280_v16 = vpop.f32.mrb[29].mxu0  ;;  %v1328_v17 = vpop.f32.mrb[29].mxu1 }
 0x133   : > { %v1607_v20 = vadd.f32 %v1280_v16, %v1279_v14  ;;  %v1609_v21 = vadd.f32 %v1328_v17, %v1327_v15  ;;  %v1282_v22 = vpop.f32.mrb[30].mxu0  ;;  %v1330_v23 = vpop.f32.mrb[30].mxu1 }
 0x134   : > { %v1283_v26 = vpop.f32.mrb[31].mxu0  ;;  %v1331_v27 = vpop.f32.mrb[31].mxu1 }
 0x135   : > { %v1611_v28 = vadd.f32 %v1283_v26, %v1282_v22  ;;  %v1613_v29 = vadd.f32 %v1331_v27, %v1330_v23 }
 0x136 PF: > { %v662_v33 = vadd.f32 %v1555_v58, %v1551_v52  ;;  %v699_v38 = vmul.f32 %v1551_v52, %v1551_v52  ;;  %v700_v39 = vmul.f32 %v1555_v58, %v1555_v58  ;;  %v701_v41 = vmul.f32 %v1559_v0, %v1559_v0 }
 0x137   : > { %v702_v45 = vmul.f32 %v1563_v6, %v1563_v6  ;;  %v1129_v47 = vpack.c.bf16 %v1555_v58, %v1551_v52  ;;  %v1134_v51 = vpack.c.bf16 %v1563_v6, %v1559_v0  ;;  %v1139_v54 = vpack.c.bf16 %v1571_v18, %v1567_v12 }
 0x138   : > { %v663_v34 = vadd.f32 %v1559_v0, %v662_v33  ;;  %v731_v46 = vadd.f32 %v700_v39, %v699_v38  ;;  %v1144_v55 = vpack.c.bf16 %v1579_v30, %v1575_v24  ;;  %v703_v60 = vmul.f32 %v1567_v12, %v1567_v12 }
 0x139   : > { %1130 = vst [vmem:[%s1482_s30] sm:$0xff] %v1129_v47   ;;  %v1149_v52 = vpack.c.bf16 %v1587_v42, %v1583_v36  ;;  %v1154_v58 = vpack.c.bf16 %v1595_v56, %v1591_v48  ;;  %1206 = vst [vmem:[%s1482_s30 + $0x8] sm:$0xff] %v1134_v51   ;;  %v1169_v62 = vpack.c.bf16 %v1557_v59, %v1553_v53 }
 0x13a   : > { %v664_v35 = vadd.f32 %v1563_v6, %v663_v34  ;;  %v732_v61 = vadd.f32 %v731_v46, %v701_v41  ;;  %1207 = vst [vmem:[%s1482_s30 + $0x10] sm:$0xff] %v1139_v54   ;;  %1208 = vst [vmem:[%s1482_s30 + $0x18] sm:$0xff] %v1144_v55   ;;  %v1159_v6 = vpack.c.bf16 %v1603_v10, %v1599_v2 }
 0x13b   : > { %v704_v63 = vmul.f32 %v1571_v18, %v1571_v18  ;;  %v705_v4 = vmul.f32 %v1575_v24, %v1575_v24  ;;  %1209 = vst [vmem:[%s1482_s30 + $0x20] sm:$0xff] %v1149_v52   ;;  %1210 = vst [vmem:[%s1482_s30 + $0x28] sm:$0xff] %v1154_v58   ;;  %v1174_v8 = vpack.c.bf16 %v1565_v7, %v1561_v1 }
 0x13c   : > { %v665_v40 = vadd.f32 %v1567_v12, %v664_v35  ;;  %v1164_v12 = vpack.c.bf16 %v1611_v28, %v1607_v20  ;;  %v733_v5 = vadd.f32 %v732_v61, %v702_v45  ;;  %1211 = vst [vmem:[%s1482_s30 + $0x30] sm:$0xff] %v1159_v6   ;;  %1213 = vst [vmem:[%s1482_s30 + $0x40] sm:$0xff] %v1169_v62  }
 0x13d   : > { %v1189_v14 = vpack.c.bf16 %v1589_v43, %v1585_v37  ;;  %1214 = vst [vmem:[%s1482_s30 + $0x48] sm:$0xff] %v1174_v8   ;;  %v1194_v16 = vpack.c.bf16 %v1597_v57, %v1593_v49  ;;  %v1199_v17 = vpack.c.bf16 %v1605_v11, %v1601_v3  ;;  %v1204_v22 = vpack.c.bf16 %v1613_v29, %v1609_v21 }
 0x13e   : > { %v666_v44 = vadd.f32 %v1571_v18, %v665_v40  ;;  %1212 = vst [vmem:[%s1482_s30 + $0x38] sm:$0xff] %v1164_v12   ;;  %v1179_v18 = vpack.c.bf16 %v1573_v19, %v1569_v13  ;;  %v734_v15 = vadd.f32 %v733_v5, %v703_v60  ;;  %v706_v26 = vmul.f32 %v1579_v30, %v1579_v30 }
 0x13f   : > { %1217 = vst [vmem:[%s1482_s30 + $0x60] sm:$0xff] %v1189_v14   ;;  %1218 = vst [vmem:[%s1482_s30 + $0x68] sm:$0xff] %v1194_v16   ;;  %v707_v33 = vmul.f32 %v1583_v36, %v1583_v36  ;;  %v708_v38 = vmul.f32 %v1587_v42, %v1587_v42  ;;  %v710_v45 = vmul.f32 %v1595_v56, %v1595_v56 }
 0x140   : > { %v667_v50 = vadd.f32 %v1575_v24, %v666_v44  ;;  %v1184_v24 = vpack.c.bf16 %v1581_v31, %v1577_v25  ;;  %1215 = vst [vmem:[%s1482_s30 + $0x50] sm:$0xff] %v1179_v18   ;;  %v735_v27 = vadd.f32 %v734_v15, %v704_v63  ;;  %1219 = vst [vmem:[%s1482_s30 + $0x70] sm:$0xff] %v1199_v17  }
 0x141   : > { %1220 = vst [vmem:[%s1482_s30 + $0x78] sm:$0xff] %v1204_v22   ;;  %v711_v47 = vmul.f32 %v1599_v2, %v1599_v2  ;;  %v712_v51 = vmul.f32 %v1603_v10, %v1603_v10  ;;  %v713_v55 = vmul.f32 %v1607_v20, %v1607_v20  ;;  %v714_v61 = vmul.f32 %v1611_v28, %v1611_v28 }
 0x142   : > { %v668_v0 = vadd.f32 %v1579_v30, %v667_v50  ;;  %1216 = vst [vmem:[%s1482_s30 + $0x58] sm:$0xff] %v1184_v24   ;;  %v736_v34 = vadd.f32 %v735_v27, %v705_v4  ;;  %v709_v30 = vmul.f32 %v1591_v48, %v1591_v48  ;;  %v715_v58 = vmul.f32 %v1553_v53, %v1553_v53 }
 0x143   : > { %v716_v6 = vmul.f32 %v1557_v59, %v1557_v59  ;;  %v717_v62 = vmul.f32 %v1561_v1, %v1561_v1  ;;  %v718_v4 = vmul.f32 %v1565_v7, %v1565_v7  ;;  %v719_v8 = vmul.f32 %v1569_v13, %v1569_v13 }
 0x144   : > { %v669_v9 = vadd.f32 %v1583_v36, %v668_v0  ;;  %v737_v39 = vadd.f32 %v736_v34, %v706_v26  ;;  %v720_v18 = vmul.f32 %v1573_v19, %v1573_v19  ;;  %v721_v14 = vmul.f32 %v1577_v25, %v1577_v25 }
 0x145   : > { %v722_v16 = vmul.f32 %v1581_v31, %v1581_v31  ;;  %v723_v22 = vmul.f32 %v1585_v37, %v1585_v37  ;;  %v724_v26 = vmul.f32 %v1589_v43, %v1589_v43  ;;  %v726_v34 = vmul.f32 %v1597_v57, %v1597_v57 }
 0x146   : > { %v670_v23 = vadd.f32 %v1587_v42, %v669_v9  ;;  %v738_v41 = vadd.f32 %v737_v39, %v707_v33 }
 0x148   : > { %v671_v32 = vadd.f32 %v1591_v48, %v670_v23  ;;  %v739_v46 = vadd.f32 %v738_v41, %v708_v38  ;;  %v727_v38 = vmul.f32 %v1601_v3, %v1601_v3  ;;  %v729_v41 = vmul.f32 %v1609_v21, %v1609_v21 }
 0x14a   : > { %v672_v35 = vadd.f32 %v1595_v56, %v671_v32  ;;  %v740_v50 = vadd.f32 %v739_v46, %v709_v30  ;;  %v725_v32 = vmul.f32 %v1593_v49, %v1593_v49 }
 0x14c   : > { %v673_v40 = vadd.f32 %v1599_v2, %v672_v35  ;;  %v741_v54 = vadd.f32 %v740_v50, %v710_v45 }
 0x14e   : > { %v674_v44 = vadd.f32 %v1603_v10, %v673_v40  ;;  %v742_v60 = vadd.f32 %v741_v54, %v711_v47  ;;  %v728_v40 = vmul.f32 %v1605_v11, %v1605_v11 }
 0x150   : > { %v675_v36 = vadd.f32 %v1607_v20, %v674_v44  ;;  %v743_v52 = vadd.f32 %v742_v60, %v712_v51 }
 0x152   : > { %v676_v42 = vadd.f32 %v1611_v28, %v675_v36  ;;  %v744_v0 = vadd.f32 %v743_v52, %v713_v55 }
 0x154   : > { %v677_v48 = vadd.f32 %v1553_v53, %v676_v42  ;;  %v745_v12 = vadd.f32 %v744_v0, %v714_v61  ;;  %v768_v42 = vlaneseq }
 0x156   : > { %v678_v56 = vadd.f32 %v1557_v59, %v677_v48  ;;  %v746_v63 = vadd.f32 %v745_v12, %v715_v58 }
 0x158   : > { %v679_v2 = vadd.f32 %v1561_v1, %v678_v56  ;;  %v747_v5 = vadd.f32 %v746_v63, %v716_v6 }
 0x15a   : > { %v680_v10 = vadd.f32 %v1565_v7, %v679_v2  ;;  %v748_v9 = vadd.f32 %v747_v5, %v717_v62 }
 0x15c   : > { %v681_v20 = vadd.f32 %v1569_v13, %v680_v10  ;;  %v749_v24 = vadd.f32 %v748_v9, %v718_v4 }
 0x15e   : > { %v682_v28 = vadd.f32 %v1573_v19, %v681_v20  ;;  %v750_v15 = vadd.f32 %v749_v24, %v719_v8 }
 0x160   : > { %v683_v53 = vadd.f32 %v1577_v25, %v682_v28  ;;  %v751_v17 = vadd.f32 %v750_v15, %v720_v18 }
 0x162   : > { %v684_v59 = vadd.f32 %v1581_v31, %v683_v53  ;;  %v752_v23 = vadd.f32 %v751_v17, %v721_v14 }
 0x164   : > { %v685_v1 = vadd.f32 %v1585_v37, %v684_v59  ;;  %v753_v27 = vadd.f32 %v752_v23, %v722_v16 }
 0x166   : > { %v686_v7 = vadd.f32 %v1589_v43, %v685_v1  ;;  %v754_v33 = vadd.f32 %v753_v27, %v723_v22 }
 0x168   : > { %v687_v13 = vadd.f32 %v1593_v49, %v686_v7  ;;  %v755_v35 = vadd.f32 %v754_v33, %v724_v26 }
 0x16a   : > { %v688_v19 = vadd.f32 %v1597_v57, %v687_v13  ;;  %v756_v39 = vadd.f32 %v755_v35, %v725_v32  ;;  %v730_v57 = vmul.f32 %v1613_v29, %v1613_v29 }
 0x16c   : > { %v689_v25 = vadd.f32 %v1601_v3, %v688_v19  ;;  %v757_v30 = vadd.f32 %v756_v39, %v726_v34 }
 0x16e   : > { %v690_v31 = vadd.f32 %v1605_v11, %v689_v25  ;;  %v758_v44 = vadd.f32 %v757_v30, %v727_v38  ;;  %v769_v11 = vshrl.u32 %v768_v42, 7 }
 0x170   : > { %v691_v37 = vadd.f32 %v1609_v21, %v690_v31  ;;  %v759_v46 = vadd.f32 %v758_v44, %v728_v40  ;;  %vm770_vm0 = vcmp.eq.s32.totalorder %v769_v11, 0  ;;  %vm772_vm1 = vcmp.eq.s32.totalorder %v769_v11, 1 }
 0x172   : > { %v692_v43 = vadd.f32 %v1613_v29, %v691_v37  ;;  %v760_v47 = vadd.f32 %v759_v46, %v729_v41  ;;  %v775_v29 = vld [vmem:[%s1776_s3] sm:$0xff] }
 0x174   : > { %v693_v49 = vrot.slane %v692_v43, 4  ;;  %v761_v50 = vadd.f32 %v760_v47, %v730_v57 }
 0x176   : > { %v694_v45 = vadd.f32 %v693_v49, %v692_v43  ;;  %v762_v51 = vrot.slane %v761_v50, 4 }
 0x178   : > { %v695_v36 = vrot.slane %v694_v45, 2  ;;  %v763_v48 = vadd.f32 %v762_v51, %v761_v50 }
 0x17a   : > { %v696_v3 = vadd.f32 %v695_v36, %v694_v45  ;;  %v764_v55 = vrot.slane %v763_v48, 2 }
 0x17c   : > { %v697_v54 = vrot.slane %v696_v3, 1  ;;  %v765_v56 = vadd.f32 %v764_v55, %v763_v48 }
 0x17e   : > { %v698_v60 = vadd.f32 %v697_v54, %v696_v3  ;;  %v766_v21 = vrot.slane %v765_v56, 1 }
 0x180   : > { %v767_v61 = vadd.f32 %v766_v21, %v765_v56  ;;  %v771_v52 = vsel %vm770_vm0, %v698_v60, 0.0 }
 0x182   : > { %v773_v2 = vsel %vm772_vm1, %v767_v61, 0.0 }
 0x183   : > { %v774_v58 = vadd.f32 %v773_v2, %v771_v52 }
 0x185   : > { %v776_v0 = vadd.f32 %v775_v29, %v774_v58 }
 0x187   : > { %777 = vst [vmem:[%s1776_s3] sm:$0xff] %v776_v0 }
 0x188 PF: > { %s14_s12 = sadd.s32 1, %s1428_s12  }
 0x189   : > { %p11_p5 = scmp.ge.s32.totalorder %s14_s12, 4  }
 0x18b   :  { %13 = sbr.rel (!%p11_p5) target bundleno = 1 (0x1), region = 70 }

// kernel: discriminator_forward.12
= control target key start
LH: loop header
LB: loop body
LE: loop exit
PB: predicated region body
PF: predicated region fallthrough
CT: control target
= control target key end

     0   :  { %s455_s0 = inlined_call_operand.vmem [shape: bf16[128,128], index: 0, kind: input, shape index: {}]   ;;  %s456_s1 = inlined_call_operand.vmem [shape: f32[1,128], index: 1, kind: input, shape index: {}]   ;;  %s457_s2 = inlined_call_operand.vmem [shape: f32[1,128], index: 2, kind: input, shape index: {}]   ;;  %s458_s3 = inlined_call_operand.vmem [shape: bf16[128,128], index: 3, kind: output, shape index: {}]  }
   0x1   :  { %v259_v0 = vld [vmem:[%s455_s0] sm:$0xff]   ;;  %v330_v4 = vld [vmem:[%s455_s0 + $0x8] sm:$0xff]   ;;  %v331_v5 = vld [vmem:[%s455_s0 + $0x10] sm:$0xff]  }
   0x2   :  { %v370_v1 = vld [vmem:[%s456_s1] ss:$0 sm:$0xff]  ;;  %v260_v2 = vunpack.c.l.bf16 %v259_v0  ;;  %v261_v3 = vunpack.c.h.bf16 %v259_v0  ;;  %v332_v6 = vld [vmem:[%s455_s0 + $0x18] sm:$0xff]   ;;  %v264_v8 = vunpack.c.l.bf16 %v330_v4  ;;  %v265_v9 = vunpack.c.h.bf16 %v330_v4  ;;  %v334_v35 = vld [vmem:[%s455_s0 + $0x28] sm:$0xff]  }
   0x3   :  { %v384_v7 = vld [vmem:[%s457_s2] ss:$0 sm:$0xff]  ;;  %v268_v10 = vunpack.c.l.bf16 %v331_v5  ;;  %v269_v11 = vunpack.c.h.bf16 %v331_v5  ;;  %v272_v14 = vunpack.c.l.bf16 %v332_v6  ;;  %v273_v15 = vunpack.c.h.bf16 %v332_v6  ;;  %v335_v48 = vld [vmem:[%s455_s0 + $0x30] sm:$0xff]   ;;  %v336_v4 = vld [vmem:[%s455_s0 + $0x38] sm:$0xff]  }
   0x4   :  { %v53_v12 = vmul.f32 %v260_v2, %v370_v1  ;;  %v54_v13 = vmul.f32 %v261_v3, %v370_v1  ;;  %v55_v16 = vmul.f32 %v264_v8, %v370_v1  ;;  %v56_v17 = vmul.f32 %v265_v9, %v370_v1  ;;  %v333_v34 = vld [vmem:[%s455_s0 + $0x20] sm:$0xff]  }
   0x5   :  { %v57_v18 = vmul.f32 %v268_v10, %v370_v1  ;;  %v58_v19 = vmul.f32 %v269_v11, %v370_v1  ;;  %v59_v22 = vmul.f32 %v272_v14, %v370_v1  ;;  %v60_v23 = vmul.f32 %v273_v15, %v370_v1 }
   0x6   :  { %v76_v20 = vadd.f32 %v384_v7, %v53_v12  ;;  %v77_v21 = vadd.f32 %v384_v7, %v54_v13  ;;  %v78_v24 = vadd.f32 %v384_v7, %v55_v16  ;;  %v79_v25 = vadd.f32 %v384_v7, %v56_v17 }
   0x7   :  { %v80_v26 = vadd.f32 %v384_v7, %v57_v18  ;;  %v81_v27 = vadd.f32 %v384_v7, %v58_v19  ;;  %v82_v42 = vadd.f32 %v384_v7, %v59_v22  ;;  %v83_v43 = vadd.f32 %v384_v7, %v60_v23 }
   0x8   :  { %vm92_vm0 = vcmp.gt.f32.partialorder %v76_v20, 0.0  ;;  %vm93_vm1 = vcmp.gt.f32.partialorder %v77_v21, 0.0  ;;  %v108_v28 = vmul.f32 0.2, %v76_v20  ;;  %v109_v29 = vmul.f32 0.2, %v77_v21 }
   0x9   :  { %vm94_vm2 = vcmp.gt.f32.partialorder %v78_v24, 0.0  ;;  %vm95_vm3 = vcmp.gt.f32.partialorder %v79_v25, 0.0  ;;  %v110_v30 = vmul.f32 0.2, %v78_v24  ;;  %v111_v31 = vmul.f32 0.2, %v79_v25 }
   0xa   :  { %v124_v32 = vsel %vm92_vm0, %v76_v20, %v108_v28  ;;  %v125_v33 = vsel %vm93_vm1, %v77_v21, %v109_v29  ;;  %vm96_vm4 = vcmp.gt.f32.partialorder %v80_v26, 0.0  ;;  %vm97_vm5 = vcmp.gt.f32.partialorder %v81_v27, 0.0 }
   0xb   :  { %v293_v36 = vpack.c.bf16 %v125_v33, %v124_v32  ;;  %v126_v37 = vsel %vm94_vm2, %v78_v24, %v110_v30  ;;  %v127_v38 = vsel %vm95_vm3, %v79_v25, %v111_v31  ;;  %v112_v39 = vmul.f32 0.2, %v80_v26 }
   0xc   :  { %v298_v40 = vpack.c.bf16 %v127_v38, %v126_v37  ;;  %v113_v41 = vmul.f32 0.2, %v81_v27  ;;  %v276_v45 = vunpack.c.l.bf16 %v333_v34  ;;  %v277_v46 = vunpack.c.h.bf16 %v333_v34 }
   0xd   :  { %294 = vst [vmem:[%s458_s3] sm:$0xff] %v293_v36   ;;  %v128_v44 = vsel %vm96_vm4, %v80_v26, %v112_v39  ;;  %v280_v47 = vunpack.c.l.bf16 %v334_v35  ;;  %vm98_vm6 = vcmp.gt.f32.partialorder %v82_v42, 0.0  ;;  %vm99_vm7 = vcmp.gt.f32.partialorder %v83_v43, 0.0 }
   0xe   :  { %337 = vst [vmem:[%s458_s3 + $0x8] sm:$0xff] %v298_v40   ;;  %v129_v49 = vsel %vm97_vm5, %v81_v27, %v113_v41  ;;  %v114_v50 = vmul.f32 0.2, %v82_v42  ;;  %v115_v52 = vmul.f32 0.2, %v83_v43  ;;  %v61_v53 = vmul.f32 %v276_v45, %v370_v1 }
   0xf   :  { %v303_v51 = vpack.c.bf16 %v129_v49, %v128_v44  ;;  %v62_v54 = vmul.f32 %v277_v46, %v370_v1  ;;  %v281_v56 = vunpack.c.h.bf16 %v334_v35  ;;  %v63_v57 = vmul.f32 %v280_v47, %v370_v1 }
  0x10   :  { %v130_v55 = vsel %vm98_vm6, %v82_v42, %v114_v50  ;;  %v284_v58 = vunpack.c.l.bf16 %v335_v48  ;;  %v131_v59 = vsel %vm99_vm7, %v83_v43, %v115_v52  ;;  %v84_v60 = vadd.f32 %v384_v7, %v61_v53 }
  0x11   :  { %338 = vst [vmem:[%s458_s3 + $0x10] sm:$0xff] %v303_v51   ;;  %v85_v61 = vadd.f32 %v384_v7, %v62_v54  ;;  %v285_v62 = vunpack.c.h.bf16 %v335_v48  ;;  %v308_v63 = vpack.c.bf16 %v131_v59, %v130_v55  ;;  %v64_v0 = vmul.f32 %v281_v56, %v370_v1 }
  0x12   :  { %v86_v2 = vadd.f32 %v384_v7, %v63_v57  ;;  %v65_v3 = vmul.f32 %v284_v58, %v370_v1  ;;  %vm100_vm8 = vcmp.gt.f32.partialorder %v84_v60, 0.0  ;;  %v116_v5 = vmul.f32 0.2, %v84_v60 }
  0x13   :  { %vm101_vm9 = vcmp.gt.f32.partialorder %v85_v61, 0.0  ;;  %v117_v6 = vmul.f32 0.2, %v85_v61  ;;  %339 = vst [vmem:[%s458_s3 + $0x18] sm:$0xff] %v308_v63   ;;  %v87_v8 = vadd.f32 %v384_v7, %v64_v0  ;;  %v66_v10 = vmul.f32 %v285_v62, %v370_v1 }
  0x14   :  { %vm102_vm10 = vcmp.gt.f32.partialorder %v86_v2, 0.0  ;;  %v118_v9 = vmul.f32 0.2, %v86_v2  ;;  %v132_v11 = vsel %vm100_vm8, %v84_v60, %v116_v5  ;;  %v88_v13 = vadd.f32 %v384_v7, %v65_v3 }
  0x15   :  { %v133_v12 = vsel %vm101_vm9, %v85_v61, %v117_v6  ;;  %v288_v14 = vunpack.c.l.bf16 %v336_v4  ;;  %vm103_vm11 = vcmp.gt.f32.partialorder %v87_v8, 0.0  ;;  %v119_v16 = vmul.f32 0.2, %v87_v8 }
  0x16   :  { %v313_v15 = vpack.c.bf16 %v133_v12, %v132_v11  ;;  %v134_v17 = vsel %vm102_vm10, %v86_v2, %v118_v9  ;;  %v89_v18 = vadd.f32 %v384_v7, %v66_v10  ;;  %vm104_vm12 = vcmp.gt.f32.partialorder %v88_v13, 0.0 }
  0x17   :  { %v120_v19 = vmul.f32 0.2, %v88_v13  ;;  %v289_v20 = vunpack.c.h.bf16 %v336_v4  ;;  %v135_v21 = vsel %vm103_vm11, %v87_v8, %v119_v16  ;;  %v67_v22 = vmul.f32 %v288_v14, %v370_v1 }
  0x18   :  { %340 = vst [vmem:[%s458_s3 + $0x20] sm:$0xff] %v313_v15   ;;  %v318_v23 = vpack.c.bf16 %v135_v21, %v134_v17  ;;  %vm105_vm13 = vcmp.gt.f32.partialorder %v89_v18, 0.0  ;;  %v121_v24 = vmul.f32 0.2, %v89_v18 }
  0x19   :  { %v136_v25 = vsel %vm104_vm12, %v88_v13, %v120_v19  ;;  %v68_v26 = vmul.f32 %v289_v20, %v370_v1  ;;  %v90_v27 = vadd.f32 %v384_v7, %v67_v22 }
  0x1a   :  { %341 = vst [vmem:[%s458_s3 + $0x28] sm:$0xff] %v318_v23   ;;  %v137_v28 = vsel %vm105_vm13, %v89_v18, %v121_v24 }
  0x1b   :  { %v323_v29 = vpack.c.bf16 %v137_v28, %v136_v25  ;;  %v91_v30 = vadd.f32 %v384_v7, %v68_v26  ;;  %vm106_vm14 = vcmp.gt.f32.partialorder %v90_v27, 0.0  ;;  %v122_v31 = vmul.f32 0.2, %v90_v27 }
  0x1d   :  { %342 = vst [vmem:[%s458_s3 + $0x30] sm:$0xff] %v323_v29   ;;  %vm107_vm15 = vcmp.gt.f32.partialorder %v91_v30, 0.0  ;;  %v123_v32 = vmul.f32 0.2, %v91_v30  ;;  %v138_v33 = vsel %vm106_vm14, %v90_v27, %v122_v31 }
  0x1f   :  { %v139_v1 = vsel %vm107_vm15, %v91_v30, %v123_v32 }
  0x20   :  { %v328_v34 = vpack.c.bf16 %v139_v1, %v138_v33 }
  0x22   :  { %343 = vst [vmem:[%s458_s3 + $0x38] sm:$0xff] %v328_v34  }

// kernel: discriminator_forward.11
= control target key start
LH: loop header
LB: loop body
LE: loop exit
PB: predicated region body
PF: predicated region fallthrough
CT: control target
= control target key end

     0   :  { %s1408_s1 = inlined_call_operand.vmem [shape: bf16[512,128], index: 1, kind: input, shape index: {}]   ;;  %s1409_s0 = inlined_call_operand.vmem [shape: bf16[128,512], index: 0, kind: input, shape index: {}]   ;;  %s1410_s2 = inlined_call_operand.vmem [shape: bf16[128,128], index: 2, kind: output, shape index: {0}]   ;;  %s1411_s3 = inlined_call_operand.vmem [shape: f32[8,128], index: 3, kind: output, shape index: {1}]  }
   0x1   :  { %v1089_v0 = vld [vmem:[%s1408_s1 + $0x40] sm:$0xff]   ;;  %v1093_v4 = vld [vmem:[%s1408_s1 + $0x48] sm:$0xff]   ;;  %v1097_v8 = vld [vmem:[%s1408_s1 + $0x50] sm:$0xff]  }
   0x2   :  { %v1090_v1 = vld [vmem:[%s1408_s1 + $0xc0] sm:$0xff]   ;;  %960 = vmatprep.subr.bf16.mxu0 %v1089_v0  ;;  %v1094_v5 = vld [vmem:[%s1408_s1 + $0xc8] sm:$0xff]   ;;  %v1098_v9 = vld [vmem:[%s1408_s1 + $0xd0] sm:$0xff]  }
   0x3   :  { %v1091_v2 = vld [vmem:[%s1408_s1] sm:$0xff]   ;;  %1024 = vmatprep.subr.bf16.mxu1 %v1090_v1  ;;  %v1095_v6 = vld [vmem:[%s1408_s1 + $0x8] sm:$0xff]   ;;  %v1099_v10 = vld [vmem:[%s1408_s1 + $0x10] sm:$0xff]  }
   0x4   :  { %v1092_v3 = vld [vmem:[%s1408_s1 + $0x80] sm:$0xff]   ;;  %961 = vmatpush3.bf16.msra.mxu0 %v1091_v2  ;;  %v1096_v7 = vld [vmem:[%s1408_s1 + $0x88] sm:$0xff]   ;;  %v1100_v11 = vld [vmem:[%s1408_s1 + $0x90] sm:$0xff]  }
   0x5   :  { %1025 = vmatpush3.bf16.msra.mxu1 %v1092_v3  ;;  %962 = vmatprep.subr.bf16.mxu0 %v1093_v4  ;;  %v1101_v12 = vld [vmem:[%s1408_s1 + $0x58] sm:$0xff]   ;;  %v1105_v16 = vld [vmem:[%s1408_s1 + $0x60] sm:$0xff]   ;;  %v1109_v20 = vld [vmem:[%s1408_s1 + $0x68] sm:$0xff]  }
   0x6   :  { %1026 = vmatprep.subr.bf16.mxu1 %v1094_v5  ;;  %v1102_v13 = vld [vmem:[%s1408_s1 + $0xd8] sm:$0xff]   ;;  %v1106_v17 = vld [vmem:[%s1408_s1 + $0xe0] sm:$0xff]   ;;  %v1110_v21 = vld [vmem:[%s1408_s1 + $0xe8] sm:$0xff]  }
   0x7   :  { %v1103_v14 = vld [vmem:[%s1408_s1 + $0x18] sm:$0xff]   ;;  %v1107_v18 = vld [vmem:[%s1408_s1 + $0x20] sm:$0xff]   ;;  %v1111_v22 = vld [vmem:[%s1408_s1 + $0x28] sm:$0xff]  }
   0x8   :  { %963 = vmatpush3.bf16.msra.mxu0 %v1095_v6  ;;  %v1104_v15 = vld [vmem:[%s1408_s1 + $0x98] sm:$0xff]   ;;  %v1108_v19 = vld [vmem:[%s1408_s1 + $0xa0] sm:$0xff]   ;;  %v1112_v23 = vld [vmem:[%s1408_s1 + $0xa8] sm:$0xff]  }
   0x9   :  { %1027 = vmatpush3.bf16.msra.mxu1 %v1096_v7  ;;  %964 = vmatprep.subr.bf16.mxu0 %v1097_v8  ;;  %v1113_v24 = vld [vmem:[%s1408_s1 + $0x70] sm:$0xff]   ;;  %v1117_v28 = vld [vmem:[%s1408_s1 + $0x78] sm:$0xff]  }
   0xa   :  { %1028 = vmatprep.subr.bf16.mxu1 %v1098_v9  ;;  %v1114_v25 = vld [vmem:[%s1408_s1 + $0xf0] sm:$0xff]   ;;  %v1118_v29 = vld [vmem:[%s1408_s1 + $0xf8] sm:$0xff]  }
   0xb   :  { %v1115_v26 = vld [vmem:[%s1408_s1 + $0x30] sm:$0xff]   ;;  %v1119_v30 = vld [vmem:[%s1408_s1 + $0x38] sm:$0xff]  }
   0xc   :  { %965 = vmatpush3.bf16.msra.mxu0 %v1099_v10  ;;  %v1116_v27 = vld [vmem:[%s1408_s1 + $0xb0] sm:$0xff]   ;;  %v1120_v31 = vld [vmem:[%s1408_s1 + $0xb8] sm:$0xff]  }
   0xd   :  { %1029 = vmatpush3.bf16.msra.mxu1 %v1100_v11  ;;  %966 = vmatprep.subr.bf16.mxu0 %v1101_v12  ;;  %v1121_v32 = vld [vmem:[%s1409_s0] ss:$16 sps:$4 sm:$0xff]   ;;  %v1123_v33 = vld [vmem:[%s1409_s0 + $0x4] ss:$16 sps:$4 sm:$0xff]   ;;  %v1124_v34 = vld [vmem:[%s1409_s0 + $0x8] ss:$16 sps:$4 sm:$0xff]  }
   0xe   :  { %1030 = vmatprep.subr.bf16.mxu1 %v1102_v13  ;;  %v1126_v35 = vld [vmem:[%s1409_s0 + $0xc] ss:$16 sps:$4 sm:$0xff]   ;;  %494 = vmatprep.mubr.bf16.mxu0 %v1123_v33  ;;  %v1127_v36 = vld [vmem:[%s1409_s0 + $0x24] ss:$16 sps:$4 sm:$0xff]   ;;  %v1131_v38 = vld [vmem:[%s1409_s0 + $0x20] ss:$16 sps:$4 sm:$0xff]  }
   0xf   :  { %591 = vmatprep.mubr.bf16.mxu1 %v1126_v35  ;;  %v1129_v37 = vld [vmem:[%s1409_s0 + $0x2c] ss:$16 sps:$4 sm:$0xff]   ;;  %v1132_v39 = vld [vmem:[%s1409_s0 + $0x28] ss:$16 sps:$4 sm:$0xff]   ;;  %v1133_v40 = vld [vmem:[%s1409_s0 + $0x44] ss:$16 sps:$4 sm:$0xff]  }
  0x10   :  { %967 = vmatpush3.bf16.msra.mxu0 %v1103_v14  ;;  %v1135_v41 = vld [vmem:[%s1409_s0 + $0x4c] ss:$16 sps:$4 sm:$0xff]   ;;  %v1137_v42 = vld [vmem:[%s1409_s0 + $0x40] ss:$16 sps:$4 sm:$0xff]   ;;  %v1138_v43 = vld [vmem:[%s1409_s0 + $0x48] ss:$16 sps:$4 sm:$0xff]  }
  0x11   :  { %1031 = vmatpush3.bf16.msra.mxu1 %v1104_v15  ;;  %968 = vmatprep.subr.bf16.mxu0 %v1105_v16  ;;  %v1139_v44 = vld [vmem:[%s1409_s0 + $0x64] ss:$16 sps:$4 sm:$0xff]   ;;  %v1141_v45 = vld [vmem:[%s1409_s0 + $0x6c] ss:$16 sps:$4 sm:$0xff]   ;;  %v1143_v46 = vld [vmem:[%s1409_s0 + $0x60] ss:$16 sps:$4 sm:$0xff]  }
  0x12   :  { %1032 = vmatprep.subr.bf16.mxu1 %v1106_v17  ;;  %v1144_v47 = vld [vmem:[%s1409_s0 + $0x68] ss:$16 sps:$4 sm:$0xff]   ;;  %v1145_v48 = vld [vmem:[%s1409_s0 + $0x84] ss:$16 sps:$4 sm:$0xff]   ;;  %v1147_v49 = vld [vmem:[%s1409_s0 + $0x8c] ss:$16 sps:$4 sm:$0xff]  }
  0x13   :  { %v1149_v50 = vld [vmem:[%s1409_s0 + $0x80] ss:$16 sps:$4 sm:$0xff]   ;;  %v1150_v51 = vld [vmem:[%s1409_s0 + $0x88] ss:$16 sps:$4 sm:$0xff]   ;;  %v1151_v52 = vld [vmem:[%s1409_s0 + $0xa4] ss:$16 sps:$4 sm:$0xff]  }
  0x14   :  { %969 = vmatpush3.bf16.msra.mxu0 %v1107_v18  ;;  %v1153_v53 = vld [vmem:[%s1409_s0 + $0xac] ss:$16 sps:$4 sm:$0xff]   ;;  %v1155_v54 = vld [vmem:[%s1409_s0 + $0xa0] ss:$16 sps:$4 sm:$0xff]   ;;  %v1156_v55 = vld [vmem:[%s1409_s0 + $0xa8] ss:$16 sps:$4 sm:$0xff]  }
  0x15   :  { %1033 = vmatpush3.bf16.msra.mxu1 %v1108_v19  ;;  %970 = vmatprep.subr.bf16.mxu0 %v1109_v20  ;;  %v1157_v56 = vld [vmem:[%s1409_s0 + $0xc4] ss:$16 sps:$4 sm:$0xff]   ;;  %v1159_v57 = vld [vmem:[%s1409_s0 + $0xcc] ss:$16 sps:$4 sm:$0xff]   ;;  %v1161_v58 = vld [vmem:[%s1409_s0 + $0xc0] ss:$16 sps:$4 sm:$0xff]  }
  0x16   :  { %1034 = vmatprep.subr.bf16.mxu1 %v1110_v21  ;;  %v1162_v59 = vld [vmem:[%s1409_s0 + $0xc8] ss:$16 sps:$4 sm:$0xff]   ;;  %v1163_v60 = vld [vmem:[%s1409_s0 + $0xe4] ss:$16 sps:$4 sm:$0xff]   ;;  %v1165_v61 = vld [vmem:[%s1409_s0 + $0xec] ss:$16 sps:$4 sm:$0xff]  }
  0x17   :  { %v1167_v62 = vld [vmem:[%s1409_s0 + $0xe0] ss:$16 sps:$4 sm:$0xff]   ;;  %v1168_v63 = vld [vmem:[%s1409_s0 + $0xe8] ss:$16 sps:$4 sm:$0xff]  }
  0x18   :  { %971 = vmatpush3.bf16.msra.mxu0 %v1111_v22 }
  0x19   :  { %1035 = vmatpush3.bf16.msra.mxu1 %v1112_v23  ;;  %972 = vmatprep.subr.bf16.mxu0 %v1113_v24 }
  0x1a   :  { %1036 = vmatprep.subr.bf16.mxu1 %v1114_v25 }
  0x1c   :  { %973 = vmatpush3.bf16.msra.mxu0 %v1115_v26 }
  0x1d   :  { %1037 = vmatpush3.bf16.msra.mxu1 %v1116_v27  ;;  %974 = vmatprep.subr.bf16.mxu0 %v1117_v28 }
  0x1e   :  { %1038 = vmatprep.subr.bf16.mxu1 %v1118_v29 }
  0x20   :  { %975 = vmatpush3.bf16.msra.mxu0 %v1119_v30 }
  0x21   :  { %1039 = vmatpush3.bf16.msra.mxu1 %v1120_v31 }
  0x23   :  { %495 = vmatmul.mubr.bf16.vlgmr.msra.gmra.mrb[0].mxu0 %v1121_v32 }
  0x24   :  { %592 = vmatmul.mubr.bf16.vlgmr.msra.gmra.mrb[0].mxu1 %v1124_v34  ;;  %502 = vmatprep.mubr.bf16.mxu0 %v1127_v36 }
  0x25   :  { %599 = vmatprep.mubr.bf16.mxu1 %v1129_v37 }
  0x2b   :  { %503 = vmatmul.mubr.bf16.gmra.mrb[4].mxu0 %v1131_v38 }
  0x2c   :  { %600 = vmatmul.mubr.bf16.gmra.mrb[4].mxu1 %v1132_v39  ;;  %510 = vmatprep.mubr.bf16.mxu0 %v1133_v40 }
  0x2d   :  { %607 = vmatprep.mubr.bf16.mxu1 %v1135_v41 }
  0x33   :  { %511 = vmatmul.mubr.bf16.gmra.mrb[8].mxu0 %v1137_v42 }
  0x34   :  { %608 = vmatmul.mubr.bf16.gmra.mrb[8].mxu1 %v1138_v43  ;;  %518 = vmatprep.mubr.bf16.mxu0 %v1139_v44 }
  0x35   :  { %615 = vmatprep.mubr.bf16.mxu1 %v1141_v45 }
  0x3b   :  { %519 = vmatmul.mubr.bf16.gmra.mrb[12].mxu0 %v1143_v46 }
  0x3c   :  { %616 = vmatmul.mubr.bf16.gmra.mrb[12].mxu1 %v1144_v47  ;;  %526 = vmatprep.mubr.bf16.mxu0 %v1145_v48 }
  0x3d   :  { %623 = vmatprep.mubr.bf16.mxu1 %v1147_v49 }
  0x43   :  { %527 = vmatmul.mubr.bf16.gmra.mrb[16].mxu0 %v1149_v50 }
  0x44   :  { %624 = vmatmul.mubr.bf16.gmra.mrb[16].mxu1 %v1150_v51  ;;  %534 = vmatprep.mubr.bf16.mxu0 %v1151_v52 }
  0x45   :  { %631 = vmatprep.mubr.bf16.mxu1 %v1153_v53 }
  0x4b   :  { %535 = vmatmul.mubr.bf16.gmra.mrb[20].mxu0 %v1155_v54 }
  0x4c   :  { %632 = vmatmul.mubr.bf16.gmra.mrb[20].mxu1 %v1156_v55  ;;  %542 = vmatprep.mubr.bf16.mxu0 %v1157_v56 }
  0x4d   :  { %639 = vmatprep.mubr.bf16.mxu1 %v1159_v57 }
  0x53   :  { %543 = vmatmul.mubr.bf16.gmra.mrb[24].mxu0 %v1161_v58 }
  0x54   :  { %640 = vmatmul.mubr.bf16.gmra.mrb[24].mxu1 %v1162_v59  ;;  %550 = vmatprep.mubr.bf16.mxu0 %v1163_v60 }
  0x55   :  { %647 = vmatprep.mubr.bf16.mxu1 %v1165_v61 }
  0x5b   :  { %551 = vmatmul.mubr.bf16.gmra.mrb[28].mxu0 %v1167_v62 }
  0x5c   :  { %648 = vmatmul.mubr.bf16.gmra.mrb[28].mxu1 %v1168_v63 }
  0xf6   :  { %v976_v0 = vpop.f32.mrb[0].mxu0 }
  0xf7   :  { %v1040_v1 = vpop.f32.mrb[0].mxu1  ;;  %v977_v2 = vpop.f32.mrb[1].mxu0 }
  0xf8   :  { %v978_v3 = vadd.f32 %v977_v2, %v976_v0  ;;  %v1041_v4 = vpop.f32.mrb[1].mxu1  ;;  %v979_v5 = vpop.f32.mrb[2].mxu0 }
  0xf9   :  { %v1042_v6 = vadd.f32 %v1041_v4, %v1040_v1  ;;  %v1043_v7 = vpop.f32.mrb[2].mxu1  ;;  %v980_v8 = vpop.f32.mrb[3].mxu0 }
  0xfa   :  { %v981_v9 = vadd.f32 %v980_v8, %v979_v5  ;;  %v1044_v10 = vpop.f32.mrb[3].mxu1 }
  0xfb   :  { %v594_v11 = vadd.f32 %v1042_v6, %v978_v3  ;;  %v1045_v12 = vadd.f32 %v1044_v10, %v1043_v7 }
  0xfd   :  { %v597_v13 = vadd.f32 %v1045_v12, %v981_v9  ;;  %v682_v15 = vmul.f32 %v594_v11, %v594_v11 }
  0xfe   :  { %v982_v14 = vpop.f32.mrb[4].mxu0 }
  0xff   :  { %v661_v16 = vadd.f32 %v597_v13, %v594_v11  ;;  %v683_v17 = vmul.f32 %v597_v13, %v597_v13  ;;  %v916_v18 = vpack.c.bf16 %v597_v13, %v594_v11  ;;  %v1046_v19 = vpop.f32.mrb[4].mxu1  ;;  %v983_v20 = vpop.f32.mrb[5].mxu0 }
 0x100   :  { %v984_v21 = vadd.f32 %v983_v20, %v982_v14  ;;  %v1047_v22 = vpop.f32.mrb[5].mxu1  ;;  %v985_v23 = vpop.f32.mrb[6].mxu0 }
 0x101   :  { %v698_v24 = vadd.f32 %v683_v17, %v682_v15  ;;  %917 = vst [vmem:[%s1410_s2] sm:$0xff] %v916_v18   ;;  %v1048_v25 = vadd.f32 %v1047_v22, %v1046_v19  ;;  %v1049_v26 = vpop.f32.mrb[6].mxu1  ;;  %v986_v27 = vpop.f32.mrb[7].mxu0 }
 0x102   :  { %v987_v28 = vadd.f32 %v986_v27, %v985_v23  ;;  %v1050_v29 = vpop.f32.mrb[7].mxu1 }
 0x103   :  { %v602_v30 = vadd.f32 %v1048_v25, %v984_v21  ;;  %v1051_v31 = vadd.f32 %v1050_v29, %v1049_v26 }
 0x105   :  { %v662_v32 = vadd.f32 %v661_v16, %v602_v30  ;;  %v684_v33 = vmul.f32 %v602_v30, %v602_v30  ;;  %v605_v34 = vadd.f32 %v1051_v31, %v987_v28 }
 0x106   :  { %v988_v35 = vpop.f32.mrb[8].mxu0 }
 0x107   :  { %v699_v36 = vadd.f32 %v698_v24, %v684_v33  ;;  %v663_v37 = vadd.f32 %v662_v32, %v605_v34  ;;  %v685_v38 = vmul.f32 %v605_v34, %v605_v34  ;;  %v921_v39 = vpack.c.bf16 %v605_v34, %v602_v30  ;;  %v1052_v40 = vpop.f32.mrb[8].mxu1  ;;  %v989_v41 = vpop.f32.mrb[9].mxu0 }
 0x108   :  { %v990_v42 = vadd.f32 %v989_v41, %v988_v35  ;;  %v1053_v43 = vpop.f32.mrb[9].mxu1  ;;  %v991_v44 = vpop.f32.mrb[10].mxu0 }
 0x109   :  { %v700_v45 = vadd.f32 %v699_v36, %v685_v38  ;;  %953 = vst [vmem:[%s1410_s2 + $0x8] sm:$0xff] %v921_v39   ;;  %v1054_v46 = vadd.f32 %v1053_v43, %v1052_v40  ;;  %v1055_v47 = vpop.f32.mrb[10].mxu1  ;;  %v992_v48 = vpop.f32.mrb[11].mxu0 }
 0x10a   :  { %v993_v49 = vadd.f32 %v992_v48, %v991_v44  ;;  %v1056_v50 = vpop.f32.mrb[11].mxu1 }
 0x10b   :  { %v610_v51 = vadd.f32 %v1054_v46, %v990_v42  ;;  %v1057_v52 = vadd.f32 %v1056_v50, %v1055_v47 }
 0x10d   :  { %v664_v53 = vadd.f32 %v663_v37, %v610_v51  ;;  %v686_v54 = vmul.f32 %v610_v51, %v610_v51  ;;  %v613_v55 = vadd.f32 %v1057_v52, %v993_v49 }
 0x10e   :  { %v994_v56 = vpop.f32.mrb[12].mxu0 }
 0x10f   :  { %v701_v57 = vadd.f32 %v700_v45, %v686_v54  ;;  %v665_v58 = vadd.f32 %v664_v53, %v613_v55  ;;  %v687_v59 = vmul.f32 %v613_v55, %v613_v55  ;;  %v926_v60 = vpack.c.bf16 %v613_v55, %v610_v51  ;;  %v1058_v61 = vpop.f32.mrb[12].mxu1  ;;  %v995_v62 = vpop.f32.mrb[13].mxu0 }
 0x110   :  { %v996_v63 = vadd.f32 %v995_v62, %v994_v56  ;;  %v1059_v0 = vpop.f32.mrb[13].mxu1  ;;  %v997_v1 = vpop.f32.mrb[14].mxu0 }
 0x111   :  { %v702_v2 = vadd.f32 %v701_v57, %v687_v59  ;;  %954 = vst [vmem:[%s1410_s2 + $0x10] sm:$0xff] %v926_v60   ;;  %v1060_v3 = vadd.f32 %v1059_v0, %v1058_v61  ;;  %v1061_v4 = vpop.f32.mrb[14].mxu1  ;;  %v998_v5 = vpop.f32.mrb[15].mxu0 }
 0x112   :  { %v999_v6 = vadd.f32 %v998_v5, %v997_v1  ;;  %v1062_v7 = vpop.f32.mrb[15].mxu1 }
 0x113   :  { %v618_v8 = vadd.f32 %v1060_v3, %v996_v63  ;;  %v1063_v9 = vadd.f32 %v1062_v7, %v1061_v4 }
 0x115   :  { %v666_v10 = vadd.f32 %v665_v58, %v618_v8  ;;  %v688_v11 = vmul.f32 %v618_v8, %v618_v8  ;;  %v621_v12 = vadd.f32 %v1063_v9, %v999_v6 }
 0x116   :  { %v1000_v13 = vpop.f32.mrb[16].mxu0 }
 0x117   :  { %v703_v14 = vadd.f32 %v702_v2, %v688_v11  ;;  %v667_v15 = vadd.f32 %v666_v10, %v621_v12  ;;  %v689_v16 = vmul.f32 %v621_v12, %v621_v12  ;;  %v931_v17 = vpack.c.bf16 %v621_v12, %v618_v8  ;;  %v1064_v18 = vpop.f32.mrb[16].mxu1  ;;  %v1001_v19 = vpop.f32.mrb[17].mxu0 }
 0x118   :  { %v1002_v20 = vadd.f32 %v1001_v19, %v1000_v13  ;;  %v1065_v21 = vpop.f32.mrb[17].mxu1  ;;  %v1003_v22 = vpop.f32.mrb[18].mxu0 }
 0x119   :  { %v704_v23 = vadd.f32 %v703_v14, %v689_v16  ;;  %955 = vst [vmem:[%s1410_s2 + $0x18] sm:$0xff] %v931_v17   ;;  %v1066_v24 = vadd.f32 %v1065_v21, %v1064_v18  ;;  %v1067_v25 = vpop.f32.mrb[18].mxu1  ;;  %v1004_v26 = vpop.f32.mrb[19].mxu0 }
 0x11a   :  { %v1005_v27 = vadd.f32 %v1004_v26, %v1003_v22  ;;  %v1068_v28 = vpop.f32.mrb[19].mxu1 }
 0x11b   :  { %v626_v29 = vadd.f32 %v1066_v24, %v1002_v20  ;;  %v1069_v30 = vadd.f32 %v1068_v28, %v1067_v25 }
 0x11d   :  { %v668_v31 = vadd.f32 %v667_v15, %v626_v29  ;;  %v690_v32 = vmul.f32 %v626_v29, %v626_v29  ;;  %v629_v33 = vadd.f32 %v1069_v30, %v1005_v27 }
 0x11e   :  { %v1006_v34 = vpop.f32.mrb[20].mxu0 }
 0x11f   :  { %v705_v35 = vadd.f32 %v704_v23, %v690_v32  ;;  %v669_v36 = vadd.f32 %v668_v31, %v629_v33  ;;  %v691_v37 = vmul.f32 %v629_v33, %v629_v33  ;;  %v936_v38 = vpack.c.bf16 %v629_v33, %v626_v29  ;;  %v1070_v39 = vpop.f32.mrb[20].mxu1  ;;  %v1007_v40 = vpop.f32.mrb[21].mxu0 }
 0x120   :  { %v1008_v41 = vadd.f32 %v1007_v40, %v1006_v34  ;;  %v1071_v42 = vpop.f32.mrb[21].mxu1  ;;  %v1009_v43 = vpop.f32.mrb[22].mxu0 }
 0x121   :  { %v706_v44 = vadd.f32 %v705_v35, %v691_v37  ;;  %956 = vst [vmem:[%s1410_s2 + $0x20] sm:$0xff] %v936_v38   ;;  %v1072_v45 = vadd.f32 %v1071_v42, %v1070_v39  ;;  %v1073_v46 = vpop.f32.mrb[22].mxu1  ;;  %v1010_v47 = vpop.f32.mrb[23].mxu0 }
 0x122   :  { %v1011_v48 = vadd.f32 %v1010_v47, %v1009_v43  ;;  %v1074_v49 = vpop.f32.mrb[23].mxu1 }
 0x123   :  { %v634_v50 = vadd.f32 %v1072_v45, %v1008_v41  ;;  %v1075_v51 = vadd.f32 %v1074_v49, %v1073_v46  ;;  %v719_v41 = vlaneseq }
 0x125   :  { %v670_v52 = vadd.f32 %v669_v36, %v634_v50  ;;  %v692_v53 = vmul.f32 %v634_v50, %v634_v50  ;;  %v637_v54 = vadd.f32 %v1075_v51, %v1011_v48  ;;  %v720_v46 = vshrl.u32 %v719_v41, 7 }
 0x126   :  { %v1012_v55 = vpop.f32.mrb[24].mxu0 }
 0x127   :  { %v707_v56 = vadd.f32 %v706_v44, %v692_v53  ;;  %v671_v57 = vadd.f32 %v670_v52, %v637_v54  ;;  %v693_v58 = vmul.f32 %v637_v54, %v637_v54  ;;  %v941_v59 = vpack.c.bf16 %v637_v54, %v634_v50  ;;  %v1076_v60 = vpop.f32.mrb[24].mxu1  ;;  %v1013_v61 = vpop.f32.mrb[25].mxu0 }
 0x128   :  { %v1014_v62 = vadd.f32 %v1013_v61, %v1012_v55  ;;  %v1077_v63 = vpop.f32.mrb[25].mxu1  ;;  %v1015_v0 = vpop.f32.mrb[26].mxu0  ;;  %vm721_vm0 = vcmp.eq.s32.totalorder %v720_v46, 0  ;;  %vm723_vm1 = vcmp.eq.s32.totalorder %v720_v46, 1 }
 0x129   :  { %v708_v1 = vadd.f32 %v707_v56, %v693_v58  ;;  %957 = vst [vmem:[%s1410_s2 + $0x28] sm:$0xff] %v941_v59   ;;  %v1078_v2 = vadd.f32 %v1077_v63, %v1076_v60  ;;  %v1079_v3 = vpop.f32.mrb[26].mxu1  ;;  %v1016_v4 = vpop.f32.mrb[27].mxu0 }
 0x12a   :  { %v1017_v5 = vadd.f32 %v1016_v4, %v1015_v0  ;;  %v1080_v6 = vpop.f32.mrb[27].mxu1 }
 0x12b   :  { %v642_v7 = vadd.f32 %v1078_v2, %v1014_v62  ;;  %v1081_v8 = vadd.f32 %v1080_v6, %v1079_v3 }
 0x12d   :  { %v672_v9 = vadd.f32 %v671_v57, %v642_v7  ;;  %v694_v10 = vmul.f32 %v642_v7, %v642_v7  ;;  %v645_v11 = vadd.f32 %v1081_v8, %v1017_v5 }
 0x12e   :  { %v1018_v12 = vpop.f32.mrb[28].mxu0 }
 0x12f   :  { %v709_v13 = vadd.f32 %v708_v1, %v694_v10  ;;  %v673_v14 = vadd.f32 %v672_v9, %v645_v11  ;;  %v695_v15 = vmul.f32 %v645_v11, %v645_v11  ;;  %v946_v16 = vpack.c.bf16 %v645_v11, %v642_v7  ;;  %v1082_v17 = vpop.f32.mrb[28].mxu1  ;;  %v1019_v18 = vpop.f32.mrb[29].mxu0 }
 0x130   :  { %v1020_v19 = vadd.f32 %v1019_v18, %v1018_v12  ;;  %v1083_v20 = vpop.f32.mrb[29].mxu1  ;;  %v1021_v21 = vpop.f32.mrb[30].mxu0 }
 0x131   :  { %v710_v22 = vadd.f32 %v709_v13, %v695_v15  ;;  %958 = vst [vmem:[%s1410_s2 + $0x30] sm:$0xff] %v946_v16   ;;  %v1084_v23 = vadd.f32 %v1083_v20, %v1082_v17  ;;  %v1085_v24 = vpop.f32.mrb[30].mxu1  ;;  %v1022_v25 = vpop.f32.mrb[31].mxu0 }
 0x132   :  { %v1023_v26 = vadd.f32 %v1022_v25, %v1021_v21  ;;  %v1086_v27 = vpop.f32.mrb[31].mxu1 }
 0x133   :  { %v650_v28 = vadd.f32 %v1084_v23, %v1020_v19  ;;  %v1087_v29 = vadd.f32 %v1086_v27, %v1085_v24 }
 0x135   :  { %v674_v30 = vadd.f32 %v673_v14, %v650_v28  ;;  %v696_v31 = vmul.f32 %v650_v28, %v650_v28  ;;  %v653_v32 = vadd.f32 %v1087_v29, %v1023_v26 }
 0x137   :  { %v711_v33 = vadd.f32 %v710_v22, %v696_v31  ;;  %v675_v34 = vadd.f32 %v674_v30, %v653_v32  ;;  %v697_v35 = vmul.f32 %v653_v32, %v653_v32  ;;  %v951_v36 = vpack.c.bf16 %v653_v32, %v650_v28 }
 0x139   :  { %v676_v37 = vrot.slane %v675_v34, 4  ;;  %v712_v38 = vadd.f32 %v711_v33, %v697_v35  ;;  %959 = vst [vmem:[%s1410_s2 + $0x38] sm:$0xff] %v951_v36  }
 0x13b   :  { %v677_v39 = vadd.f32 %v676_v37, %v675_v34  ;;  %v713_v40 = vrot.slane %v712_v38, 4 }
 0x13d   :  { %v678_v42 = vrot.slane %v677_v39, 2  ;;  %v714_v43 = vadd.f32 %v713_v40, %v712_v38 }
 0x13f   :  { %v679_v44 = vadd.f32 %v678_v42, %v677_v39  ;;  %v715_v45 = vrot.slane %v714_v43, 2 }
 0x141   :  { %v680_v47 = vrot.slane %v679_v44, 1  ;;  %v716_v48 = vadd.f32 %v715_v45, %v714_v43 }
 0x143   :  { %v681_v49 = vadd.f32 %v680_v47, %v679_v44  ;;  %v717_v50 = vrot.slane %v716_v48, 1 }
 0x145   :  { %v718_v51 = vadd.f32 %v717_v50, %v716_v48  ;;  %v722_v52 = vsel %vm721_vm0, %v681_v49, 0.0 }
 0x147   :  { %v724_v53 = vsel %vm723_vm1, %v718_v51, 0.0 }
 0x148   :  { %v725_v54 = vadd.f32 %v724_v53, %v722_v52 }
 0x14a   :  { %728 = vst [vmem:[%s1411_s3] sm:$0xff] %v725_v54 }

// kernel: discriminator_forward.14
= control target key start
LH: loop header
LB: loop body
LE: loop exit
PB: predicated region body
PF: predicated region fallthrough
CT: control target
= control target key end

     0   :  { %s380_s0 = inlined_call_operand.vmem [shape: bf16[104,128], index: 0, kind: input, shape index: {}]   ;;  %s381_s1 = inlined_call_operand.vmem [shape: f32[1,128], index: 1, kind: input, shape index: {}]   ;;  %s382_s2 = inlined_call_operand.vmem [shape: f32[1,128], index: 2, kind: input, shape index: {}]   ;;  %s383_s3 = inlined_call_operand.vmem [shape: bf16[104,128], index: 3, kind: output, shape index: {}]  }
   0x1   :  { %v218_v0 = vld [vmem:[%s380_s0] sm:$0xff]   ;;  %v271_v4 = vld [vmem:[%s380_s0 + $0x8] sm:$0xff]   ;;  %v272_v5 = vld [vmem:[%s380_s0 + $0x10] sm:$0xff]  }
   0x2   :  { %v307_v1 = vld [vmem:[%s381_s1] ss:$0 sm:$0xff]  ;;  %v219_v2 = vunpack.c.l.bf16 %v218_v0  ;;  %v220_v3 = vunpack.c.h.bf16 %v218_v0  ;;  %v273_v6 = vld [vmem:[%s380_s0 + $0x18] sm:$0xff]   ;;  %v223_v8 = vunpack.c.l.bf16 %v271_v4  ;;  %v224_v9 = vunpack.c.h.bf16 %v271_v4  ;;  %v275_v35 = vld [vmem:[%s380_s0 + $0x28] sm:$0xff]  }
   0x3   :  { %v321_v7 = vld [vmem:[%s382_s2] ss:$0 sm:$0xff]  ;;  %v227_v10 = vunpack.c.l.bf16 %v272_v5  ;;  %v228_v11 = vunpack.c.h.bf16 %v272_v5  ;;  %v231_v14 = vunpack.c.l.bf16 %v273_v6  ;;  %v232_v15 = vunpack.c.h.bf16 %v273_v6  ;;  %v26_v48 = vld [vmem:[%s380_s0 + $0x30] sm:$0xf] }
   0x4   :  { %v47_v12 = vmul.f32 %v219_v2, %v307_v1  ;;  %v48_v13 = vmul.f32 %v220_v3, %v307_v1  ;;  %v49_v16 = vmul.f32 %v223_v8, %v307_v1  ;;  %v50_v17 = vmul.f32 %v224_v9, %v307_v1  ;;  %v274_v34 = vld [vmem:[%s380_s0 + $0x20] sm:$0xff]  }
   0x5   :  { %v51_v18 = vmul.f32 %v227_v10, %v307_v1  ;;  %v52_v19 = vmul.f32 %v228_v11, %v307_v1  ;;  %v53_v22 = vmul.f32 %v231_v14, %v307_v1  ;;  %v54_v23 = vmul.f32 %v232_v15, %v307_v1 }
   0x6   :  { %v67_v20 = vadd.f32 %v321_v7, %v47_v12  ;;  %v68_v21 = vadd.f32 %v321_v7, %v48_v13  ;;  %v69_v24 = vadd.f32 %v321_v7, %v49_v16  ;;  %v70_v25 = vadd.f32 %v321_v7, %v50_v17 }
   0x7   :  { %v71_v26 = vadd.f32 %v321_v7, %v51_v18  ;;  %v72_v27 = vadd.f32 %v321_v7, %v52_v19  ;;  %v73_v42 = vadd.f32 %v321_v7, %v53_v22  ;;  %v74_v43 = vadd.f32 %v321_v7, %v54_v23 }
   0x8   :  { %vm80_vm0 = vcmp.gt.f32.partialorder %v67_v20, 0.0  ;;  %vm81_vm1 = vcmp.gt.f32.partialorder %v68_v21, 0.0  ;;  %v93_v28 = vmul.f32 0.2, %v67_v20  ;;  %v94_v29 = vmul.f32 0.2, %v68_v21 }
   0x9   :  { %vm82_vm2 = vcmp.gt.f32.partialorder %v69_v24, 0.0  ;;  %vm83_vm3 = vcmp.gt.f32.partialorder %v70_v25, 0.0  ;;  %v95_v30 = vmul.f32 0.2, %v69_v24  ;;  %v96_v31 = vmul.f32 0.2, %v70_v25 }
   0xa   :  { %v106_v32 = vsel %vm80_vm0, %v67_v20, %v93_v28  ;;  %v107_v33 = vsel %vm81_vm1, %v68_v21, %v94_v29  ;;  %vm84_vm4 = vcmp.gt.f32.partialorder %v71_v26, 0.0  ;;  %vm85_vm5 = vcmp.gt.f32.partialorder %v72_v27, 0.0 }
   0xb   :  { %v244_v36 = vpack.c.bf16 %v107_v33, %v106_v32  ;;  %v108_v37 = vsel %vm82_vm2, %v69_v24, %v95_v30  ;;  %v109_v38 = vsel %vm83_vm3, %v70_v25, %v96_v31  ;;  %v97_v39 = vmul.f32 0.2, %v71_v26 }
   0xc   :  { %v249_v40 = vpack.c.bf16 %v109_v38, %v108_v37  ;;  %v98_v41 = vmul.f32 0.2, %v72_v27  ;;  %v235_v45 = vunpack.c.l.bf16 %v274_v34  ;;  %v236_v46 = vunpack.c.h.bf16 %v274_v34 }
   0xd   :  { %245 = vst [vmem:[%s383_s3] sm:$0xff] %v244_v36   ;;  %v110_v44 = vsel %vm84_vm4, %v71_v26, %v97_v39  ;;  %v239_v47 = vunpack.c.l.bf16 %v275_v35  ;;  %vm86_vm6 = vcmp.gt.f32.partialorder %v73_v42, 0.0  ;;  %vm87_vm7 = vcmp.gt.f32.partialorder %v74_v43, 0.0 }
   0xe   :  { %276 = vst [vmem:[%s383_s3 + $0x8] sm:$0xff] %v249_v40   ;;  %v111_v49 = vsel %vm85_vm5, %v72_v27, %v98_v41  ;;  %v99_v50 = vmul.f32 0.2, %v73_v42  ;;  %v100_v52 = vmul.f32 0.2, %v74_v43  ;;  %v55_v53 = vmul.f32 %v235_v45, %v307_v1 }
   0xf   :  { %v254_v51 = vpack.c.bf16 %v111_v49, %v110_v44  ;;  %v56_v54 = vmul.f32 %v236_v46, %v307_v1  ;;  %v240_v56 = vunpack.c.h.bf16 %v275_v35  ;;  %v57_v57 = vmul.f32 %v239_v47, %v307_v1 }
  0x10   :  { %v112_v55 = vsel %vm86_vm6, %v73_v42, %v99_v50  ;;  %v39_v58 = vunpack.c.l.bf16 %v26_v48  ;;  %v113_v59 = vsel %vm87_vm7, %v74_v43, %v100_v52  ;;  %v75_v60 = vadd.f32 %v321_v7, %v55_v53 }
  0x11   :  { %277 = vst [vmem:[%s383_s3 + $0x10] sm:$0xff] %v254_v51   ;;  %v76_v61 = vadd.f32 %v321_v7, %v56_v54  ;;  %v259_v62 = vpack.c.bf16 %v113_v59, %v112_v55  ;;  %v58_v63 = vmul.f32 %v240_v56, %v307_v1  ;;  %v77_v0 = vadd.f32 %v321_v7, %v57_v57 }
  0x12   :  { %v59_v2 = vmul.f32 %v307_v1, %v39_v58  ;;  %vm88_vm8 = vcmp.gt.f32.partialorder %v75_v60, 0.0  ;;  %v101_v3 = vmul.f32 0.2, %v75_v60 }
  0x13   :  { %vm89_vm9 = vcmp.gt.f32.partialorder %v76_v61, 0.0  ;;  %v102_v4 = vmul.f32 0.2, %v76_v61  ;;  %278 = vst [vmem:[%s383_s3 + $0x18] sm:$0xff] %v259_v62   ;;  %v78_v5 = vadd.f32 %v321_v7, %v58_v63  ;;  %vm90_vm10 = vcmp.gt.f32.partialorder %v77_v0, 0.0 }
  0x14   :  { %v103_v6 = vmul.f32 0.2, %v77_v0  ;;  %v79_v8 = vadd.f32 %v321_v7, %v59_v2  ;;  %v114_v9 = vsel %vm88_vm8, %v75_v60, %v101_v3 }
  0x15   :  { %v115_v10 = vsel %vm89_vm9, %v76_v61, %v102_v4  ;;  %vm91_vm11 = vcmp.gt.f32.partialorder %v78_v5, 0.0  ;;  %v104_v12 = vmul.f32 0.2, %v78_v5 }
  0x16   :  { %v264_v11 = vpack.c.bf16 %v115_v10, %v114_v9  ;;  %v116_v1 = vsel %vm90_vm10, %v77_v0, %v103_v6  ;;  %vm92_vm12 = vcmp.gt.f32.partialorder %v79_v8, 0.0  ;;  %v105_v13 = vmul.f32 0.2, %v79_v8 }
  0x17   :  { %v117_v14 = vsel %vm91_vm11, %v78_v5, %v104_v12 }
  0x18   :  { %279 = vst [vmem:[%s383_s3 + $0x20] sm:$0xff] %v264_v11   ;;  %v269_v15 = vpack.c.bf16 %v117_v14, %v116_v1  ;;  %v118_v16 = vsel %vm92_vm12, %v79_v8, %v105_v13 }
  0x19   :  { %v216_v17 = vpack.c.bf16 %v118_v16, %v118_v16 }
  0x1a   :  { %280 = vst [vmem:[%s383_s3 + $0x28] sm:$0xff] %v269_v15  }
  0x1b   :  { %184 = vst [vmem:[%s383_s3 + $0x30] sm:$0xf] %v216_v17 }

// kernel: discriminator_forward.13
= control target key start
LH: loop header
LB: loop body
LE: loop exit
PB: predicated region body
PF: predicated region fallthrough
CT: control target
= control target key end

     0   :  { %s2253_s1 = inlined_call_operand.vmem [shape: bf16[1024,128], index: 1, kind: input, shape index: {}]   ;;  %s2254_s0 = inlined_call_operand.vmem [shape: bf16[104,1024], index: 0, kind: input, shape index: {}]   ;;  %s2255_s2 = inlined_call_operand.vmem [shape: bf16[104,128], index: 2, kind: output, shape index: {0}]   ;;  %s2256_s3 = inlined_call_operand.vmem [shape: f32[8,128], index: 3, kind: output, shape index: {1}]  }
   0x1   :  { %v1750_v0 = vld [vmem:[%s2253_s1 + $0x40] sm:$0xff]   ;;  %v1754_v4 = vld [vmem:[%s2253_s1 + $0x48] sm:$0xff]   ;;  %v1758_v8 = vld [vmem:[%s2253_s1 + $0x50] sm:$0xff]  }
   0x2   :  { %v1751_v1 = vld [vmem:[%s2253_s1 + $0xc0] sm:$0xff]   ;;  %1517 = vmatprep.subr.bf16.mxu0 %v1750_v0  ;;  %v1755_v5 = vld [vmem:[%s2253_s1 + $0xc8] sm:$0xff]   ;;  %v1759_v9 = vld [vmem:[%s2253_s1 + $0xd0] sm:$0xff]  }
   0x3   :  { %v1752_v2 = vld [vmem:[%s2253_s1] sm:$0xff]   ;;  %1575 = vmatprep.subr.bf16.mxu1 %v1751_v1  ;;  %v1756_v6 = vld [vmem:[%s2253_s1 + $0x8] sm:$0xff]   ;;  %v1760_v10 = vld [vmem:[%s2253_s1 + $0x10] sm:$0xff]  }
   0x4   :  { %v1753_v3 = vld [vmem:[%s2253_s1 + $0x80] sm:$0xff]   ;;  %1518 = vmatpush3.bf16.msra.mxu0 %v1752_v2  ;;  %v1757_v7 = vld [vmem:[%s2253_s1 + $0x88] sm:$0xff]   ;;  %v1761_v11 = vld [vmem:[%s2253_s1 + $0x90] sm:$0xff]  }
   0x5   :  { %1576 = vmatpush3.bf16.msra.mxu1 %v1753_v3  ;;  %1519 = vmatprep.subr.bf16.mxu0 %v1754_v4  ;;  %v1762_v12 = vld [vmem:[%s2253_s1 + $0x58] sm:$0xff]   ;;  %v1766_v16 = vld [vmem:[%s2253_s1 + $0x60] sm:$0xff]   ;;  %v1770_v20 = vld [vmem:[%s2253_s1 + $0x68] sm:$0xff]  }
   0x6   :  { %1577 = vmatprep.subr.bf16.mxu1 %v1755_v5  ;;  %v1763_v13 = vld [vmem:[%s2253_s1 + $0xd8] sm:$0xff]   ;;  %v1767_v17 = vld [vmem:[%s2253_s1 + $0xe0] sm:$0xff]   ;;  %v1771_v21 = vld [vmem:[%s2253_s1 + $0xe8] sm:$0xff]  }
   0x7   :  { %v1764_v14 = vld [vmem:[%s2253_s1 + $0x18] sm:$0xff]   ;;  %v1768_v18 = vld [vmem:[%s2253_s1 + $0x20] sm:$0xff]   ;;  %v1772_v22 = vld [vmem:[%s2253_s1 + $0x28] sm:$0xff]  }
   0x8   :  { %1520 = vmatpush3.bf16.msra.mxu0 %v1756_v6  ;;  %v1765_v15 = vld [vmem:[%s2253_s1 + $0x98] sm:$0xff]   ;;  %v1769_v19 = vld [vmem:[%s2253_s1 + $0xa0] sm:$0xff]   ;;  %v1773_v23 = vld [vmem:[%s2253_s1 + $0xa8] sm:$0xff]  }
   0x9   :  { %1578 = vmatpush3.bf16.msra.mxu1 %v1757_v7  ;;  %1521 = vmatprep.subr.bf16.mxu0 %v1758_v8  ;;  %v1774_v24 = vld [vmem:[%s2253_s1 + $0x70] sm:$0xff]   ;;  %v1778_v28 = vld [vmem:[%s2253_s1 + $0x78] sm:$0xff]   ;;  %v14_v32 = vld [vmem:[%s2254_s0] sm:$0xff] }
   0xa   :  { %1579 = vmatprep.subr.bf16.mxu1 %v1759_v9  ;;  %v1775_v25 = vld [vmem:[%s2253_s1 + $0xf0] sm:$0xff]   ;;  %v1779_v29 = vld [vmem:[%s2253_s1 + $0xf8] sm:$0xff]   ;;  %v18_v33 = vld [vmem:[%s2254_s0 + $0x20] sm:$0xff] }
   0xb   :  { %v1776_v26 = vld [vmem:[%s2253_s1 + $0x30] sm:$0xff]   ;;  %v1780_v30 = vld [vmem:[%s2253_s1 + $0x38] sm:$0xff]   ;;  %v15_v34 = vld [vmem:[%s2254_s0 + $0x8] sm:$0xff]  ;;  %v1336_v35 = vcombine.low %v14_v32, %v18_v33  ;;  %v1337_v36 = vcombine.high %v14_v32, %v18_v33 }
   0xc   :  { %1522 = vmatpush3.bf16.msra.mxu0 %v1760_v10  ;;  %v1777_v27 = vld [vmem:[%s2253_s1 + $0xb0] sm:$0xff]   ;;  %v1781_v31 = vld [vmem:[%s2253_s1 + $0xb8] sm:$0xff]   ;;  %v19_v37 = vld [vmem:[%s2254_s0 + $0x28] sm:$0xff] }
   0xd   :  { %1580 = vmatpush3.bf16.msra.mxu1 %v1761_v11  ;;  %1523 = vmatprep.subr.bf16.mxu0 %v1762_v12  ;;  %v1338_v38 = vcombine.low %v15_v34, %v19_v37  ;;  %v1339_v39 = vcombine.high %v15_v34, %v19_v37  ;;  %v1782_v40 = vld [vmem:[%s2253_s1 + $0x140] sm:$0xff]   ;;  %v23_v47 = vld [vmem:[%s2254_s0 + $0x48] sm:$0xff]  ;;  %v1790_v56 = vld [vmem:[%s2253_s1 + $0x150] sm:$0xff]  }
   0xe   :  { %1581 = vmatprep.subr.bf16.mxu1 %v1763_v13  ;;  %878 = vmatprep.mubr.bf16.mxu0 %v1337_v36  ;;  %v1783_v41 = vld [vmem:[%s2253_s1 + $0x100] sm:$0xff]   ;;  %v27_v48 = vld [vmem:[%s2254_s0 + $0x68] sm:$0xff]  ;;  %v1791_v63 = vld [vmem:[%s2253_s1 + $0x110] sm:$0xff]  }
   0xf   :  { %966 = vmatprep.mubr.bf16.mxu1 %v1339_v39  ;;  %v1784_v42 = vld [vmem:[%s2253_s1 + $0x1c0] sm:$0xff]   ;;  %v1347_v49 = vcombine.high %v23_v47, %v27_v48  ;;  %v1786_v50 = vld [vmem:[%s2253_s1 + $0x148] sm:$0xff]   ;;  %v1346_v53 = vcombine.low %v23_v47, %v27_v48  ;;  %v1792_v0 = vld [vmem:[%s2253_s1 + $0x1d0] sm:$0xff]  }
  0x10   :  { %1524 = vmatpush3.bf16.msra.mxu0 %v1764_v14  ;;  %v1785_v43 = vld [vmem:[%s2253_s1 + $0x180] sm:$0xff]   ;;  %v1787_v52 = vld [vmem:[%s2253_s1 + $0x108] sm:$0xff]   ;;  %v1793_v1 = vld [vmem:[%s2253_s1 + $0x190] sm:$0xff]  }
  0x11   :  { %1582 = vmatpush3.bf16.msra.mxu1 %v1765_v15  ;;  %1525 = vmatprep.subr.bf16.mxu0 %v1766_v16  ;;  %v22_v44 = vld [vmem:[%s2254_s0 + $0x40] sm:$0xff]  ;;  %v1788_v54 = vld [vmem:[%s2253_s1 + $0x1c8] sm:$0xff]   ;;  %v1794_v3 = vld [vmem:[%s2253_s1 + $0x158] sm:$0xff]  }
  0x12   :  { %1583 = vmatprep.subr.bf16.mxu1 %v1767_v17  ;;  %v26_v45 = vld [vmem:[%s2254_s0 + $0x60] sm:$0xff]  ;;  %v1789_v55 = vld [vmem:[%s2253_s1 + $0x188] sm:$0xff]   ;;  %v1795_v5 = vld [vmem:[%s2253_s1 + $0x118] sm:$0xff]  }
  0x13   :  { %v1345_v46 = vcombine.high %v22_v44, %v26_v45  ;;  %v1344_v51 = vcombine.low %v22_v44, %v26_v45  ;;  %v30_v57 = vld [vmem:[%s2254_s0 + $0x80] sm:$0xff]  ;;  %v31_v59 = vld [vmem:[%s2254_s0 + $0x88] sm:$0xff]  ;;  %v1796_v12 = vld [vmem:[%s2253_s1 + $0x1d8] sm:$0xff]  }
  0x14   :  { %1526 = vmatpush3.bf16.msra.mxu0 %v1768_v18  ;;  %v34_v58 = vld [vmem:[%s2254_s0 + $0xa0] sm:$0xff]  ;;  %v35_v60 = vld [vmem:[%s2254_s0 + $0xa8] sm:$0xff]  ;;  %v1797_v13 = vld [vmem:[%s2253_s1 + $0x198] sm:$0xff]  }
  0x15   :  { %1584 = vmatpush3.bf16.msra.mxu1 %v1769_v19  ;;  %1527 = vmatprep.subr.bf16.mxu0 %v1770_v20  ;;  %v1353_v61 = vcombine.high %v30_v57, %v34_v58  ;;  %v1355_v62 = vcombine.high %v31_v59, %v35_v60  ;;  %v1352_v2 = vcombine.low %v30_v57, %v34_v58  ;;  %v38_v6 = vld [vmem:[%s2254_s0 + $0xc0] sm:$0xff]  ;;  %v39_v8 = vld [vmem:[%s2254_s0 + $0xc8] sm:$0xff]  ;;  %v1814_v44 = vld [vmem:[%s2253_s1 + $0x178] sm:$0xff]  }
  0x16   :  { %1585 = vmatprep.subr.bf16.mxu1 %v1771_v21  ;;  %v1354_v4 = vcombine.low %v31_v59, %v35_v60  ;;  %v42_v7 = vld [vmem:[%s2254_s0 + $0xe0] sm:$0xff]  ;;  %v43_v10 = vld [vmem:[%s2254_s0 + $0xe8] sm:$0xff]  ;;  %v1815_v45 = vld [vmem:[%s2253_s1 + $0x138] sm:$0xff]  }
  0x17   :  { %v1361_v9 = vcombine.high %v38_v6, %v42_v7  ;;  %v1363_v11 = vcombine.high %v39_v8, %v43_v10  ;;  %v1798_v14 = vld [vmem:[%s2253_s1 + $0x160] sm:$0xff]   ;;  %v1360_v16 = vcombine.low %v38_v6, %v42_v7  ;;  %v1362_v20 = vcombine.low %v39_v8, %v43_v10  ;;  %v55_v32 = vld [vmem:[%s2254_s0 + $0x148] sm:$0xff]  ;;  %v1817_v48 = vld [vmem:[%s2253_s1 + $0x1b8] sm:$0xff]  }
  0x18   :  { %1528 = vmatpush3.bf16.msra.mxu0 %v1772_v22  ;;  %v1799_v15 = vld [vmem:[%s2253_s1 + $0x120] sm:$0xff]   ;;  %v47_v22 = vld [vmem:[%s2254_s0 + $0x108] sm:$0xff]  ;;  %v24_v60 = vld [vmem:[%s2254_s0 + $0x50] sm:$0xff] }
  0x19   :  { %1586 = vmatpush3.bf16.msra.mxu1 %v1773_v23  ;;  %1529 = vmatprep.subr.bf16.mxu0 %v1774_v24  ;;  %v1800_v17 = vld [vmem:[%s2253_s1 + $0x1e0] sm:$0xff]   ;;  %v51_v23 = vld [vmem:[%s2254_s0 + $0x128] sm:$0xff]  ;;  %v33_v6 = vld [vmem:[%s2254_s0 + $0x98] sm:$0xff] }
  0x1a   :  { %1587 = vmatprep.subr.bf16.mxu1 %v1775_v25  ;;  %v46_v18 = vld [vmem:[%s2254_s0 + $0x100] sm:$0xff]  ;;  %v1371_v24 = vcombine.high %v47_v22, %v51_v23  ;;  %v59_v33 = vld [vmem:[%s2254_s0 + $0x168] sm:$0xff]  ;;  %v1370_v36 = vcombine.low %v47_v22, %v51_v23  ;;  %v37_v7 = vld [vmem:[%s2254_s0 + $0xb8] sm:$0xff] }
  0x1b   :  { %v50_v19 = vld [vmem:[%s2254_s0 + $0x120] sm:$0xff]  ;;  %v1379_v39 = vcombine.high %v55_v32, %v59_v33  ;;  %v49_v22 = vld [vmem:[%s2254_s0 + $0x118] sm:$0xff] }
  0x1c   :  { %1530 = vmatpush3.bf16.msra.mxu0 %v1776_v26  ;;  %v1369_v21 = vcombine.high %v46_v18, %v50_v19  ;;  %v1801_v25 = vld [vmem:[%s2253_s1 + $0x1a0] sm:$0xff]   ;;  %v1802_v26 = vld [vmem:[%s2253_s1 + $0x168] sm:$0xff]   ;;  %v1368_v34 = vcombine.low %v46_v18, %v50_v19  ;;  %v53_v23 = vld [vmem:[%s2254_s0 + $0x138] sm:$0xff] }
  0x1d   :  { %1588 = vmatpush3.bf16.msra.mxu1 %v1777_v27  ;;  %1531 = vmatprep.subr.bf16.mxu0 %v1778_v28  ;;  %v1803_v27 = vld [vmem:[%s2253_s1 + $0x128] sm:$0xff]  }
  0x1e   :  { %1589 = vmatprep.subr.bf16.mxu1 %v1779_v29  ;;  %v1804_v28 = vld [vmem:[%s2253_s1 + $0x1e8] sm:$0xff]  }
  0x1f   :  { %v1805_v29 = vld [vmem:[%s2253_s1 + $0x1a8] sm:$0xff]  }
  0x20   :  { %1532 = vmatpush3.bf16.msra.mxu0 %v1780_v30  ;;  %v54_v30 = vld [vmem:[%s2254_s0 + $0x140] sm:$0xff] }
  0x21   :  { %1590 = vmatpush3.bf16.msra.mxu1 %v1781_v31  ;;  %1633 = vmatprep.subr.bf16.mxu0 %v1782_v40  ;;  %v58_v31 = vld [vmem:[%s2254_s0 + $0x160] sm:$0xff]  ;;  %v1808_v40 = vld [vmem:[%s2253_s1 + $0x1f0] sm:$0xff]  }
  0x22   :  { %1691 = vmatprep.subr.bf16.mxu1 %v1784_v42  ;;  %v1377_v37 = vcombine.high %v54_v30, %v58_v31  ;;  %v62_v42 = vld [vmem:[%s2254_s0 + $0x180] sm:$0xff]  ;;  %v1376_v47 = vcombine.low %v54_v30, %v58_v31  ;;  %v57_v30 = vld [vmem:[%s2254_s0 + $0x158] sm:$0xff] }
  0x23   :  { %879 = vmatmul.mubr.bf16.vlgmr.msra.gmra.mrb[0].mxu0 %v1336_v35  ;;  %v1806_v35 = vld [vmem:[%s2253_s1 + $0x170] sm:$0xff]   ;;  %v61_v31 = vld [vmem:[%s2254_s0 + $0x178] sm:$0xff] }
  0x24   :  { %967 = vmatmul.mubr.bf16.vlgmr.msra.gmra.mrb[0].mxu1 %v1338_v38  ;;  %1634 = vmatpush3.bf16.msra.mxu0 %v1783_v41  ;;  %v1807_v38 = vld [vmem:[%s2253_s1 + $0x130] sm:$0xff]  }
  0x25   :  { %1692 = vmatpush3.bf16.msra.mxu1 %v1785_v43  ;;  %886 = vmatprep.mubr.bf16.mxu0 %v1345_v46  ;;  %v1809_v41 = vld [vmem:[%s2253_s1 + $0x1b0] sm:$0xff]   ;;  %v63_v43 = vld [vmem:[%s2254_s0 + $0x188] sm:$0xff]  ;;  %v1816_v46 = vld [vmem:[%s2253_s1 + $0x1f8] sm:$0xff]  }
  0x26   :  { %974 = vmatprep.mubr.bf16.mxu1 %v1347_v49  ;;  %1635 = vmatprep.subr.bf16.mxu0 %v1786_v50  ;;  %v1378_v49 = vcombine.low %v55_v32, %v59_v33  ;;  %v1385_v50 = vcombine.high %v62_v42, %v62_v42  ;;  %v1386_v57 = vcombine.low %v63_v43, %v63_v43 }
  0x27   :  { %1693 = vmatprep.subr.bf16.mxu1 %v1788_v54  ;;  %v17_v54 = vld [vmem:[%s2254_s0 + $0x18] sm:$0xff]  ;;  %v1374_v33 = vcombine.low %v49_v22, %v53_v23 }
  0x28   :  { %1636 = vmatpush3.bf16.msra.mxu0 %v1787_v52  ;;  %v16_v52 = vld [vmem:[%s2254_s0 + $0x10] sm:$0xff] }
  0x29   :  { %1694 = vmatpush3.bf16.msra.mxu1 %v1789_v55  ;;  %1637 = vmatprep.subr.bf16.mxu0 %v1790_v56  ;;  %v21_v55 = vld [vmem:[%s2254_s0 + $0x38] sm:$0xff]  ;;  %v1384_v56 = vcombine.low %v62_v42, %v62_v42 }
  0x2a   :  { %1695 = vmatprep.subr.bf16.mxu1 %v1792_v0  ;;  %v1343_v59 = vcombine.high %v17_v54, %v21_v55 }
  0x2b   :  { %887 = vmatmul.mubr.bf16.gmra.mrb[4].mxu0 %v1344_v51  ;;  %v1387_v51 = vcombine.high %v63_v43, %v63_v43 }
  0x2c   :  { %975 = vmatmul.mubr.bf16.gmra.mrb[4].mxu1 %v1346_v53  ;;  %894 = vmatprep.mubr.bf16.mxu0 %v1353_v61  ;;  %v20_v53 = vld [vmem:[%s2254_s0 + $0x30] sm:$0xff] }
  0x2d   :  { %982 = vmatprep.mubr.bf16.mxu1 %v1355_v62  ;;  %1638 = vmatpush3.bf16.msra.mxu0 %v1791_v63  ;;  %v1341_v58 = vcombine.high %v16_v52, %v20_v53  ;;  %v28_v61 = vld [vmem:[%s2254_s0 + $0x70] sm:$0xff]  ;;  %v25_v62 = vld [vmem:[%s2254_s0 + $0x58] sm:$0xff]  ;;  %v1340_v0 = vcombine.low %v16_v52, %v20_v53 }
  0x2e   :  { %1696 = vmatpush3.bf16.msra.mxu1 %v1793_v1  ;;  %1639 = vmatprep.subr.bf16.mxu0 %v1794_v3  ;;  %v29_v63 = vld [vmem:[%s2254_s0 + $0x78] sm:$0xff]  ;;  %v1342_v1 = vcombine.low %v17_v54, %v21_v55  ;;  %v1348_v8 = vcombine.low %v24_v60, %v28_v61 }
  0x2f   :  { %1697 = vmatprep.subr.bf16.mxu1 %v1796_v12  ;;  %v1351_v3 = vcombine.high %v25_v62, %v29_v63  ;;  %v40_v12 = vld [vmem:[%s2254_s0 + $0xd0] sm:$0xff] }
  0x31   :  { %1640 = vmatpush3.bf16.msra.mxu0 %v1795_v5  ;;  %v36_v5 = vld [vmem:[%s2254_s0 + $0xb0] sm:$0xff] }
  0x32   :  { %1698 = vmatpush3.bf16.msra.mxu1 %v1797_v13  ;;  %1641 = vmatprep.subr.bf16.mxu0 %v1798_v14  ;;  %v44_v13 = vld [vmem:[%s2254_s0 + $0xf0] sm:$0xff]  ;;  %v41_v14 = vld [vmem:[%s2254_s0 + $0xd8] sm:$0xff] }
  0x33   :  { %895 = vmatmul.mubr.bf16.gmra.mrb[8].mxu0 %v1352_v2  ;;  %1699 = vmatprep.subr.bf16.mxu1 %v1800_v17  ;;  %v1349_v2 = vcombine.high %v24_v60, %v28_v61  ;;  %v1358_v17 = vcombine.low %v33_v6, %v37_v7  ;;  %v1365_v18 = vcombine.high %v40_v12, %v44_v13 }
  0x34   :  { %983 = vmatmul.mubr.bf16.gmra.mrb[8].mxu1 %v1354_v4  ;;  %902 = vmatprep.mubr.bf16.mxu0 %v1361_v9  ;;  %v32_v4 = vld [vmem:[%s2254_s0 + $0x90] sm:$0xff]  ;;  %v1350_v9 = vcombine.low %v25_v62, %v29_v63 }
  0x35   :  { %990 = vmatprep.mubr.bf16.mxu1 %v1363_v11  ;;  %1642 = vmatpush3.bf16.msra.mxu0 %v1799_v15  ;;  %v1357_v10 = vcombine.high %v32_v4, %v36_v5  ;;  %v1359_v11 = vcombine.high %v33_v6, %v37_v7  ;;  %v45_v15 = vld [vmem:[%s2254_s0 + $0xf8] sm:$0xff] }
  0x36   :  { %1700 = vmatpush3.bf16.msra.mxu1 %v1801_v25  ;;  %1643 = vmatprep.subr.bf16.mxu0 %v1802_v26  ;;  %v1367_v19 = vcombine.high %v41_v14, %v45_v15  ;;  %v1366_v25 = vcombine.low %v41_v14, %v45_v15 }
  0x37   :  { %1701 = vmatprep.subr.bf16.mxu1 %v1804_v28  ;;  %v56_v28 = vld [vmem:[%s2254_s0 + $0x150] sm:$0xff] }
  0x39   :  { %1644 = vmatpush3.bf16.msra.mxu0 %v1803_v27  ;;  %v1375_v27 = vcombine.high %v49_v22, %v53_v23 }
  0x3a   :  { %1702 = vmatpush3.bf16.msra.mxu1 %v1805_v29  ;;  %1645 = vmatprep.subr.bf16.mxu0 %v1806_v35  ;;  %v60_v29 = vld [vmem:[%s2254_s0 + $0x170] sm:$0xff]  ;;  %v1383_v35 = vcombine.high %v57_v30, %v61_v31 }
  0x3b   :  { %903 = vmatmul.mubr.bf16.gmra.mrb[12].mxu0 %v1360_v16  ;;  %1703 = vmatprep.subr.bf16.mxu1 %v1808_v40  ;;  %v1356_v16 = vcombine.low %v32_v4, %v36_v5 }
  0x3c   :  { %991 = vmatmul.mubr.bf16.gmra.mrb[12].mxu1 %v1362_v20  ;;  %910 = vmatprep.mubr.bf16.mxu0 %v1369_v21  ;;  %v48_v20 = vld [vmem:[%s2254_s0 + $0x110] sm:$0xff] }
  0x3d   :  { %998 = vmatprep.mubr.bf16.mxu1 %v1371_v24  ;;  %1646 = vmatpush3.bf16.msra.mxu0 %v1807_v38  ;;  %v52_v21 = vld [vmem:[%s2254_s0 + $0x130] sm:$0xff]  ;;  %v1364_v24 = vcombine.low %v40_v12, %v44_v13  ;;  %v1380_v38 = vcombine.low %v56_v28, %v60_v29 }
  0x3e   :  { %1704 = vmatpush3.bf16.msra.mxu1 %v1809_v41  ;;  %1647 = vmatprep.subr.bf16.mxu0 %v1814_v44  ;;  %v1373_v26 = vcombine.high %v48_v20, %v52_v21  ;;  %v1372_v32 = vcombine.low %v48_v20, %v52_v21 }
  0x3f   :  { %1705 = vmatprep.subr.bf16.mxu1 %v1816_v46 }
  0x41   :  { %1648 = vmatpush3.bf16.msra.mxu0 %v1815_v45 }
  0x42   :  { %1706 = vmatpush3.bf16.msra.mxu1 %v1817_v48 }
  0x43   :  { %911 = vmatmul.mubr.bf16.gmra.mrb[16].mxu0 %v1368_v34  ;;  %v1381_v34 = vcombine.high %v56_v28, %v60_v29 }
  0x44   :  { %999 = vmatmul.mubr.bf16.gmra.mrb[16].mxu1 %v1370_v36  ;;  %918 = vmatprep.mubr.bf16.mxu0 %v1377_v37  ;;  %v64_v36 = vld [vmem:[%s2254_s0 + $0x190] sm:$0xff]  ;;  %v65_v37 = vld [vmem:[%s2254_s0 + $0x198] sm:$0xff] }
  0x45   :  { %1006 = vmatprep.mubr.bf16.mxu1 %v1379_v39  ;;  %v1382_v39 = vcombine.low %v57_v30, %v61_v31  ;;  %v1389_v40 = vcombine.high %v64_v36, %v64_v36  ;;  %v1391_v41 = vcombine.high %v65_v37, %v65_v37  ;;  %v1388_v42 = vcombine.low %v64_v36, %v64_v36 }
  0x46   :  { %v1390_v43 = vcombine.low %v65_v37, %v65_v37 }
  0x4b   :  { %919 = vmatmul.mubr.bf16.gmra.mrb[20].mxu0 %v1376_v47 }
  0x4c   :  { %1007 = vmatmul.mubr.bf16.gmra.mrb[20].mxu1 %v1378_v49  ;;  %926 = vmatprep.mubr.bf16.mxu0 %v1385_v50 }
  0x4d   :  { %1014 = vmatprep.mubr.bf16.mxu1 %v1387_v51 }
  0x53   :  { %927 = vmatmul.mubr.bf16.gmra.mrb[24].mxu0 %v1384_v56 }
  0x54   :  { %1015 = vmatmul.mubr.bf16.gmra.mrb[24].mxu1 %v1386_v57  ;;  %1054 = vmatprep.mubr.bf16.mxu0 %v1341_v58 }
  0x55   :  { %1142 = vmatprep.mubr.bf16.mxu1 %v1343_v59 }
  0x5b   :  { %1055 = vmatmul.mubr.bf16.vlgmr.msra.gmra.mrb[28].mxu0 %v1340_v0 }
  0x5c   :  { %1143 = vmatmul.mubr.bf16.vlgmr.msra.gmra.mrb[28].mxu1 %v1342_v1  ;;  %1062 = vmatprep.mubr.bf16.mxu0 %v1349_v2 }
  0x5d   :  { %1150 = vmatprep.mubr.bf16.mxu1 %v1351_v3 }
  0x63   :  { %1063 = vmatmul.mubr.bf16.gmra.mrb[32].mxu0 %v1348_v8 }
  0x64   :  { %1151 = vmatmul.mubr.bf16.gmra.mrb[32].mxu1 %v1350_v9  ;;  %1070 = vmatprep.mubr.bf16.mxu0 %v1357_v10 }
  0x65   :  { %1158 = vmatprep.mubr.bf16.mxu1 %v1359_v11 }
  0x6b   :  { %1071 = vmatmul.mubr.bf16.gmra.mrb[36].mxu0 %v1356_v16 }
  0x6c   :  { %1159 = vmatmul.mubr.bf16.gmra.mrb[36].mxu1 %v1358_v17  ;;  %1078 = vmatprep.mubr.bf16.mxu0 %v1365_v18 }
  0x6d   :  { %1166 = vmatprep.mubr.bf16.mxu1 %v1367_v19 }
  0x73   :  { %1079 = vmatmul.mubr.bf16.gmra.mrb[40].mxu0 %v1364_v24 }
  0x74   :  { %1167 = vmatmul.mubr.bf16.gmra.mrb[40].mxu1 %v1366_v25  ;;  %1086 = vmatprep.mubr.bf16.mxu0 %v1373_v26 }
  0x75   :  { %1174 = vmatprep.mubr.bf16.mxu1 %v1375_v27 }
  0x7b   :  { %1087 = vmatmul.mubr.bf16.gmra.mrb[44].mxu0 %v1372_v32 }
  0x7c   :  { %1175 = vmatmul.mubr.bf16.gmra.mrb[44].mxu1 %v1374_v33  ;;  %1094 = vmatprep.mubr.bf16.mxu0 %v1381_v34 }
  0x7d   :  { %1182 = vmatprep.mubr.bf16.mxu1 %v1383_v35 }
  0x83   :  { %1095 = vmatmul.mubr.bf16.gmra.mrb[48].mxu0 %v1380_v38 }
  0x84   :  { %1183 = vmatmul.mubr.bf16.gmra.mrb[48].mxu1 %v1382_v39  ;;  %1102 = vmatprep.mubr.bf16.mxu0 %v1389_v40 }
  0x85   :  { %1190 = vmatprep.mubr.bf16.mxu1 %v1391_v41 }
  0x8b   :  { %1103 = vmatmul.mubr.bf16.gmra.mrb[52].mxu0 %v1388_v42 }
  0x8c   :  { %1191 = vmatmul.mubr.bf16.gmra.mrb[52].mxu1 %v1390_v43 }
  0xf6   :  { %v1533_v44 = vpop.f32.mrb[0].mxu0 }
  0xf7   :  { %v1591_v45 = vpop.f32.mrb[0].mxu1  ;;  %v1534_v46 = vpop.f32.mrb[1].mxu0 }
  0xf8   :  { %v1535_v47 = vadd.f32 %v1534_v46, %v1533_v44  ;;  %v1592_v48 = vpop.f32.mrb[1].mxu1  ;;  %v1536_v49 = vpop.f32.mrb[2].mxu0 }
  0xf9   :  { %v1593_v50 = vadd.f32 %v1592_v48, %v1591_v45  ;;  %v1594_v51 = vpop.f32.mrb[2].mxu1  ;;  %v1537_v52 = vpop.f32.mrb[3].mxu0 }
  0xfa   :  { %v1538_v53 = vadd.f32 %v1537_v52, %v1536_v49  ;;  %v1595_v54 = vpop.f32.mrb[3].mxu1 }
  0xfb   :  { %v2190_v55 = vadd.f32 %v1593_v50, %v1535_v47  ;;  %v1596_v56 = vadd.f32 %v1595_v54, %v1594_v51 }
  0xfd   :  { %v2192_v57 = vadd.f32 %v1596_v56, %v1538_v53 }
  0xfe   :  { %v1539_v58 = vpop.f32.mrb[4].mxu0 }
  0xff   :  { %v1597_v59 = vpop.f32.mrb[4].mxu1  ;;  %v1540_v60 = vpop.f32.mrb[5].mxu0 }
 0x100   :  { %v1541_v61 = vadd.f32 %v1540_v60, %v1539_v58  ;;  %v1598_v62 = vpop.f32.mrb[5].mxu1  ;;  %v1542_v63 = vpop.f32.mrb[6].mxu0 }
 0x101   :  { %v1599_v0 = vadd.f32 %v1598_v62, %v1597_v59  ;;  %v1600_v1 = vpop.f32.mrb[6].mxu1  ;;  %v1543_v2 = vpop.f32.mrb[7].mxu0 }
 0x102   :  { %v1544_v3 = vadd.f32 %v1543_v2, %v1542_v63  ;;  %v1601_v4 = vpop.f32.mrb[7].mxu1 }
 0x103   :  { %v2194_v5 = vadd.f32 %v1599_v0, %v1541_v61  ;;  %v1602_v6 = vadd.f32 %v1601_v4, %v1600_v1 }
 0x105   :  { %v2196_v7 = vadd.f32 %v1602_v6, %v1544_v3 }
 0x106   :  { %v1545_v8 = vpop.f32.mrb[8].mxu0 }
 0x107   :  { %v1603_v9 = vpop.f32.mrb[8].mxu1  ;;  %v1546_v10 = vpop.f32.mrb[9].mxu0 }
 0x108   :  { %v1547_v11 = vadd.f32 %v1546_v10, %v1545_v8  ;;  %v1604_v12 = vpop.f32.mrb[9].mxu1  ;;  %v1548_v13 = vpop.f32.mrb[10].mxu0 }
 0x109   :  { %v1605_v14 = vadd.f32 %v1604_v12, %v1603_v9  ;;  %v1606_v15 = vpop.f32.mrb[10].mxu1  ;;  %v1549_v16 = vpop.f32.mrb[11].mxu0 }
 0x10a   :  { %v1550_v17 = vadd.f32 %v1549_v16, %v1548_v13  ;;  %v1607_v18 = vpop.f32.mrb[11].mxu1 }
 0x10b   :  { %v2198_v19 = vadd.f32 %v1605_v14, %v1547_v11  ;;  %v1608_v20 = vadd.f32 %v1607_v18, %v1606_v15 }
 0x10d   :  { %v2200_v21 = vadd.f32 %v1608_v20, %v1550_v17 }
 0x10e   :  { %v1551_v22 = vpop.f32.mrb[12].mxu0 }
 0x10f   :  { %v1609_v23 = vpop.f32.mrb[12].mxu1  ;;  %v1552_v24 = vpop.f32.mrb[13].mxu0 }
 0x110   :  { %v1553_v25 = vadd.f32 %v1552_v24, %v1551_v22  ;;  %v1610_v26 = vpop.f32.mrb[13].mxu1  ;;  %v1554_v27 = vpop.f32.mrb[14].mxu0 }
 0x111   :  { %v1611_v28 = vadd.f32 %v1610_v26, %v1609_v23  ;;  %v1612_v29 = vpop.f32.mrb[14].mxu1  ;;  %v1555_v30 = vpop.f32.mrb[15].mxu0 }
 0x112   :  { %v1556_v31 = vadd.f32 %v1555_v30, %v1554_v27  ;;  %v1613_v32 = vpop.f32.mrb[15].mxu1 }
 0x113   :  { %v2202_v33 = vadd.f32 %v1611_v28, %v1553_v25  ;;  %v1614_v34 = vadd.f32 %v1613_v32, %v1612_v29 }
 0x115   :  { %v2204_v35 = vadd.f32 %v1614_v34, %v1556_v31 }
 0x116   :  { %v1557_v36 = vpop.f32.mrb[16].mxu0 }
 0x117   :  { %v1615_v37 = vpop.f32.mrb[16].mxu1  ;;  %v1558_v38 = vpop.f32.mrb[17].mxu0 }
 0x118   :  { %v1559_v39 = vadd.f32 %v1558_v38, %v1557_v36  ;;  %v1616_v40 = vpop.f32.mrb[17].mxu1  ;;  %v1560_v41 = vpop.f32.mrb[18].mxu0 }
 0x119   :  { %v1617_v42 = vadd.f32 %v1616_v40, %v1615_v37  ;;  %v1618_v43 = vpop.f32.mrb[18].mxu1  ;;  %v1561_v44 = vpop.f32.mrb[19].mxu0 }
 0x11a   :  { %v1562_v45 = vadd.f32 %v1561_v44, %v1560_v41  ;;  %v1619_v46 = vpop.f32.mrb[19].mxu1 }
 0x11b   :  { %v2206_v47 = vadd.f32 %v1617_v42, %v1559_v39  ;;  %v1620_v48 = vadd.f32 %v1619_v46, %v1618_v43 }
 0x11d   :  { %v2208_v49 = vadd.f32 %v1620_v48, %v1562_v45 }
 0x11e   :  { %v1563_v50 = vpop.f32.mrb[20].mxu0 }
 0x11f   :  { %v1621_v51 = vpop.f32.mrb[20].mxu1  ;;  %v1564_v52 = vpop.f32.mrb[21].mxu0 }
 0x120   :  { %v1565_v53 = vadd.f32 %v1564_v52, %v1563_v50  ;;  %v1622_v54 = vpop.f32.mrb[21].mxu1  ;;  %v1566_v56 = vpop.f32.mrb[22].mxu0 }
 0x121   :  { %v1623_v58 = vadd.f32 %v1622_v54, %v1621_v51  ;;  %v1624_v59 = vpop.f32.mrb[22].mxu1  ;;  %v1567_v60 = vpop.f32.mrb[23].mxu0 }
 0x122   :  { %v1568_v61 = vadd.f32 %v1567_v60, %v1566_v56  ;;  %v1625_v62 = vpop.f32.mrb[23].mxu1 }
 0x123   :  { %v2210_v63 = vadd.f32 %v1623_v58, %v1565_v53  ;;  %v1626_v0 = vadd.f32 %v1625_v62, %v1624_v59 }
 0x125   :  { %v2212_v1 = vadd.f32 %v1626_v0, %v1568_v61 }
 0x126   :  { %v1569_v2 = vpop.f32.mrb[24].mxu0 }
 0x127   :  { %v1627_v3 = vpop.f32.mrb[24].mxu1  ;;  %v1570_v4 = vpop.f32.mrb[25].mxu0 }
 0x128   :  { %v1571_v6 = vadd.f32 %v1570_v4, %v1569_v2  ;;  %v1628_v8 = vpop.f32.mrb[25].mxu1  ;;  %v1572_v9 = vpop.f32.mrb[26].mxu0 }
 0x129   :  { %v1629_v10 = vadd.f32 %v1628_v8, %v1627_v3  ;;  %v1630_v11 = vpop.f32.mrb[26].mxu1  ;;  %v1573_v12 = vpop.f32.mrb[27].mxu0 }
 0x12a   :  { %v1631_v13 = vpop.f32.mrb[27].mxu1 }
 0x12b   :  { %v2214_v14 = vadd.f32 %v1629_v10, %v1571_v6 }
 0x12e   :  { %v1649_v15 = vpop.f32.mrb[28].mxu0 }
 0x12f   :  { %v1707_v16 = vpop.f32.mrb[28].mxu1  ;;  %v1650_v17 = vpop.f32.mrb[29].mxu0 }
 0x130   :  { %v1651_v18 = vadd.f32 %v1650_v17, %v1649_v15  ;;  %v1708_v20 = vpop.f32.mrb[29].mxu1  ;;  %v1652_v22 = vpop.f32.mrb[30].mxu0 }
 0x131   :  { %v1709_v23 = vadd.f32 %v1708_v20, %v1707_v16  ;;  %v1710_v24 = vpop.f32.mrb[30].mxu1  ;;  %v1653_v25 = vpop.f32.mrb[31].mxu0 }
 0x132   :  { %v1057_v26 = vadd.f32 %v1651_v18, %v2190_v55  ;;  %v1654_v27 = vadd.f32 %v1653_v25, %v1652_v22  ;;  %v1711_v28 = vpop.f32.mrb[31].mxu1 }
 0x133   :  { %v1712_v29 = vadd.f32 %v1711_v28, %v1710_v24 }
 0x134   :  { %v1145_v30 = vadd.f32 %v1709_v23, %v1057_v26  ;;  %v1060_v31 = vadd.f32 %v1654_v27, %v2192_v57 }
 0x136   :  { %v1148_v32 = vadd.f32 %v1712_v29, %v1060_v31  ;;  %v1655_v34 = vpop.f32.mrb[32].mxu0  ;;  %v1221_v36 = vmul.f32 %v1145_v30, %v1145_v30 }
 0x137   :  { %v1713_v37 = vpop.f32.mrb[32].mxu1  ;;  %v1656_v38 = vpop.f32.mrb[33].mxu0 }
 0x138   :  { %v1203_v39 = vadd.f32 %v1148_v32, %v1145_v30  ;;  %v1222_v40 = vmul.f32 %v1148_v32, %v1148_v32  ;;  %v1485_v41 = vpack.c.bf16 %v1148_v32, %v1145_v30  ;;  %v1657_v42 = vadd.f32 %v1656_v38, %v1655_v34  ;;  %v1714_v43 = vpop.f32.mrb[33].mxu1  ;;  %v1658_v44 = vpop.f32.mrb[34].mxu0 }
 0x139   :  { %v1715_v45 = vadd.f32 %v1714_v43, %v1713_v37  ;;  %v1716_v46 = vpop.f32.mrb[34].mxu1  ;;  %v1659_v55 = vpop.f32.mrb[35].mxu0 }
 0x13a   :  { %v1234_v48 = vadd.f32 %v1222_v40, %v1221_v36  ;;  %1486 = vst [vmem:[%s2255_s2] sm:$0xff] %v1485_v41   ;;  %v1065_v57 = vadd.f32 %v1657_v42, %v2194_v5  ;;  %v1660_v50 = vadd.f32 %v1659_v55, %v1658_v44  ;;  %v1717_v51 = vpop.f32.mrb[35].mxu1 }
 0x13b   :  { %v1718_v52 = vadd.f32 %v1717_v51, %v1716_v46 }
 0x13c   :  { %v1153_v53 = vadd.f32 %v1715_v45, %v1065_v57  ;;  %v1068_v54 = vadd.f32 %v1660_v50, %v2196_v7 }
 0x13e   :  { %v1204_v56 = vadd.f32 %v1203_v39, %v1153_v53  ;;  %v1223_v58 = vmul.f32 %v1153_v53, %v1153_v53  ;;  %v1156_v59 = vadd.f32 %v1718_v52, %v1068_v54  ;;  %v1661_v60 = vpop.f32.mrb[36].mxu0 }
 0x13f   :  { %v1719_v61 = vpop.f32.mrb[36].mxu1  ;;  %v1662_v62 = vpop.f32.mrb[37].mxu0 }
 0x140   :  { %v1235_v0 = vadd.f32 %v1234_v48, %v1223_v58  ;;  %v1205_v2 = vadd.f32 %v1204_v56, %v1156_v59  ;;  %v1224_v3 = vmul.f32 %v1156_v59, %v1156_v59  ;;  %v1490_v4 = vpack.c.bf16 %v1156_v59, %v1153_v53  ;;  %v1720_v6 = vpop.f32.mrb[37].mxu1  ;;  %v1664_v8 = vpop.f32.mrb[38].mxu0 }
 0x141   :  { %v1663_v9 = vadd.f32 %v1662_v62, %v1661_v60  ;;  %v1721_v5 = vadd.f32 %v1720_v6, %v1719_v61  ;;  %v1722_v10 = vpop.f32.mrb[38].mxu1  ;;  %v1665_v11 = vpop.f32.mrb[39].mxu0 }
 0x142   :  { %v1236_v12 = vadd.f32 %v1235_v0, %v1224_v3  ;;  %1512 = vst [vmem:[%s2255_s2 + $0x8] sm:$0xff] %v1490_v4   ;;  %v1666_v7 = vadd.f32 %v1665_v11, %v1664_v8  ;;  %v1723_v13 = vpop.f32.mrb[39].mxu1 }
 0x143   :  { %v1073_v15 = vadd.f32 %v1663_v9, %v2198_v19  ;;  %v1724_v16 = vadd.f32 %v1723_v13, %v1722_v10 }
 0x144   :  { %v1076_v17 = vadd.f32 %v1666_v7, %v2200_v21 }
 0x145   :  { %v1161_v18 = vadd.f32 %v1721_v5, %v1073_v15 }
 0x146   :  { %v1164_v20 = vadd.f32 %v1724_v16, %v1076_v17  ;;  %v1667_v22 = vpop.f32.mrb[40].mxu0 }
 0x147   :  { %v1206_v23 = vadd.f32 %v1205_v2, %v1161_v18  ;;  %v1225_v24 = vmul.f32 %v1161_v18, %v1161_v18  ;;  %v1725_v25 = vpop.f32.mrb[40].mxu1  ;;  %v1668_v26 = vpop.f32.mrb[41].mxu0 }
 0x148   :  { %v1226_v27 = vmul.f32 %v1164_v20, %v1164_v20  ;;  %v1495_v28 = vpack.c.bf16 %v1164_v20, %v1161_v18  ;;  %v1669_v29 = vadd.f32 %v1668_v26, %v1667_v22  ;;  %v1726_v30 = vpop.f32.mrb[41].mxu1  ;;  %v1670_v31 = vpop.f32.mrb[42].mxu0 }
 0x149   :  { %v1237_v32 = vadd.f32 %v1236_v12, %v1225_v24  ;;  %v1207_v34 = vadd.f32 %v1206_v23, %v1164_v20  ;;  %v1727_v36 = vadd.f32 %v1726_v30, %v1725_v25  ;;  %v1728_v37 = vpop.f32.mrb[42].mxu1  ;;  %v1671_v19 = vpop.f32.mrb[43].mxu0 }
 0x14a   :  { %1513 = vst [vmem:[%s2255_s2 + $0x10] sm:$0xff] %v1495_v28   ;;  %v1081_v21 = vadd.f32 %v1669_v29, %v2202_v33  ;;  %v1672_v38 = vadd.f32 %v1671_v19, %v1670_v31  ;;  %v1729_v39 = vpop.f32.mrb[43].mxu1 }
 0x14b   :  { %v1238_v40 = vadd.f32 %v1237_v32, %v1226_v27  ;;  %v1730_v41 = vadd.f32 %v1729_v39, %v1728_v37 }
 0x14c   :  { %v1169_v42 = vadd.f32 %v1727_v36, %v1081_v21  ;;  %v1084_v43 = vadd.f32 %v1672_v38, %v2204_v35 }
 0x14e   :  { %v1208_v44 = vadd.f32 %v1207_v34, %v1169_v42  ;;  %v1227_v45 = vmul.f32 %v1169_v42, %v1169_v42  ;;  %v1172_v46 = vadd.f32 %v1730_v41, %v1084_v43  ;;  %v1673_v55 = vpop.f32.mrb[44].mxu0 }
 0x14f   :  { %v1731_v48 = vpop.f32.mrb[44].mxu1  ;;  %v1674_v57 = vpop.f32.mrb[45].mxu0 }
 0x150   :  { %v1239_v50 = vadd.f32 %v1238_v40, %v1227_v45  ;;  %v1209_v51 = vadd.f32 %v1208_v44, %v1172_v46  ;;  %v1228_v52 = vmul.f32 %v1172_v46, %v1172_v46  ;;  %v1500_v53 = vpack.c.bf16 %v1172_v46, %v1169_v42  ;;  %v1732_v54 = vpop.f32.mrb[45].mxu1  ;;  %v1676_v56 = vpop.f32.mrb[46].mxu0 }
 0x151   :  { %v1675_v33 = vadd.f32 %v1674_v57, %v1673_v55  ;;  %v1733_v58 = vadd.f32 %v1732_v54, %v1731_v48  ;;  %v1734_v59 = vpop.f32.mrb[46].mxu1  ;;  %v1677_v60 = vpop.f32.mrb[47].mxu0  ;;  %v1252_v54 = vlaneseq }
 0x152   :  { %v1240_v61 = vadd.f32 %v1239_v50, %v1228_v52  ;;  %1514 = vst [vmem:[%s2255_s2 + $0x18] sm:$0xff] %v1500_v53   ;;  %v1678_v35 = vadd.f32 %v1677_v60, %v1676_v56  ;;  %v1735_v62 = vpop.f32.mrb[47].mxu1 }
 0x153   :  { %v1089_v0 = vadd.f32 %v1675_v33, %v2206_v47  ;;  %v1736_v2 = vadd.f32 %v1735_v62, %v1734_v59  ;;  %v1253_v60 = vshrl.u32 %v1252_v54, 7 }
 0x154   :  { %v1092_v3 = vadd.f32 %v1678_v35, %v2208_v49 }
 0x155   :  { %v1177_v4 = vadd.f32 %v1733_v58, %v1089_v0  ;;  %vm1254_vm0 = vcmp.eq.s32.totalorder %v1253_v60, 0  ;;  %vm1256_vm1 = vcmp.eq.s32.totalorder %v1253_v60, 1 }
 0x156   :  { %v1180_v6 = vadd.f32 %v1736_v2, %v1092_v3  ;;  %v1679_v8 = vpop.f32.mrb[48].mxu0 }
 0x157   :  { %v1210_v9 = vadd.f32 %v1209_v51, %v1177_v4  ;;  %v1229_v5 = vmul.f32 %v1177_v4, %v1177_v4  ;;  %v1737_v10 = vpop.f32.mrb[48].mxu1  ;;  %v1680_v11 = vpop.f32.mrb[49].mxu0 }
 0x158   :  { %v1230_v12 = vmul.f32 %v1180_v6, %v1180_v6  ;;  %v1505_v7 = vpack.c.bf16 %v1180_v6, %v1177_v4  ;;  %v1681_v13 = vadd.f32 %v1680_v11, %v1679_v8  ;;  %v1738_v15 = vpop.f32.mrb[49].mxu1  ;;  %v1682_v16 = vpop.f32.mrb[50].mxu0 }
 0x159   :  { %v1241_v17 = vadd.f32 %v1240_v61, %v1229_v5  ;;  %v1211_v18 = vadd.f32 %v1210_v9, %v1180_v6  ;;  %v1739_v20 = vadd.f32 %v1738_v15, %v1737_v10  ;;  %v1740_v22 = vpop.f32.mrb[50].mxu1  ;;  %v1683_v47 = vpop.f32.mrb[51].mxu0 }
 0x15a   :  { %1515 = vst [vmem:[%s2255_s2 + $0x20] sm:$0xff] %v1505_v7   ;;  %v1097_v49 = vadd.f32 %v1681_v13, %v2210_v63  ;;  %v1684_v23 = vadd.f32 %v1683_v47, %v1682_v16  ;;  %v1741_v24 = vpop.f32.mrb[51].mxu1 }
 0x15b   :  { %v1242_v25 = vadd.f32 %v1241_v17, %v1230_v12  ;;  %v1742_v26 = vadd.f32 %v1741_v24, %v1740_v22 }
 0x15c   :  { %v1185_v27 = vadd.f32 %v1739_v20, %v1097_v49  ;;  %v1100_v28 = vadd.f32 %v1684_v23, %v2212_v1 }
 0x15e   :  { %v1212_v29 = vadd.f32 %v1211_v18, %v1185_v27  ;;  %v1231_v30 = vmul.f32 %v1185_v27, %v1185_v27  ;;  %v1188_v31 = vadd.f32 %v1742_v26, %v1100_v28  ;;  %v1685_v32 = vpop.f32.mrb[52].mxu0 }
 0x15f   :  { %v1743_v34 = vpop.f32.mrb[52].mxu1  ;;  %v1686_v36 = vpop.f32.mrb[53].mxu0 }
 0x160   :  { %v1243_v37 = vadd.f32 %v1242_v25, %v1231_v30  ;;  %v1213_v19 = vadd.f32 %v1212_v29, %v1188_v31  ;;  %v1232_v21 = vmul.f32 %v1188_v31, %v1188_v31  ;;  %v1510_v38 = vpack.c.bf16 %v1188_v31, %v1185_v27  ;;  %v1744_v39 = vpop.f32.mrb[53].mxu1  ;;  %v1688_v40 = vpop.f32.mrb[54].mxu0 }
 0x161   :  { %v1687_v63 = vadd.f32 %v1686_v36, %v1685_v32  ;;  %v1745_v41 = vadd.f32 %v1744_v39, %v1743_v34  ;;  %v1746_v42 = vpop.f32.mrb[54].mxu1  ;;  %v1689_v43 = vpop.f32.mrb[55].mxu0 }
 0x162   :  { %v1244_v44 = vadd.f32 %v1243_v37, %v1232_v21  ;;  %1516 = vst [vmem:[%s2255_s2 + $0x28] sm:$0xff] %v1510_v38   ;;  %v1747_v1 = vpop.f32.mrb[55].mxu1 }
 0x163   :  { %v1105_v45 = vadd.f32 %v1687_v63, %v2214_v14 }
 0x165   :  { %v1193_v46 = vadd.f32 %v1745_v41, %v1105_v45 }
 0x167   :  { %v1214_v55 = vadd.f32 %v1213_v19, %v1193_v46  ;;  %v1233_v48 = vmul.f32 %v1193_v46, %v1193_v46  ;;  %v1481_v57 = vpack.c.bf16 %v1193_v46, %v1193_v46 }
 0x169   :  { %v1215_v50 = vrot.slane %v1214_v55, 4  ;;  %v1245_v51 = vadd.f32 %v1244_v44, %v1233_v48  ;;  %1327 = vst [vmem:[%s2255_s2 + $0x30] sm:$0xf] %v1481_v57 }
 0x16b   :  { %v1216_v52 = vadd.f32 %v1215_v50, %v1214_v55  ;;  %v1246_v53 = vrot.slane %v1245_v51, 4 }
 0x16d   :  { %v1217_v56 = vrot.slane %v1216_v52, 2  ;;  %v1247_v33 = vadd.f32 %v1246_v53, %v1245_v51 }
 0x16f   :  { %v1218_v58 = vadd.f32 %v1217_v56, %v1216_v52  ;;  %v1248_v59 = vrot.slane %v1247_v33, 2 }
 0x171   :  { %v1219_v61 = vrot.slane %v1218_v58, 1  ;;  %v1249_v14 = vadd.f32 %v1248_v59, %v1247_v33 }
 0x173   :  { %v1220_v35 = vadd.f32 %v1219_v61, %v1218_v58  ;;  %v1250_v62 = vrot.slane %v1249_v14, 1 }
 0x175   :  { %v1251_v0 = vadd.f32 %v1250_v62, %v1249_v14  ;;  %v1255_v2 = vsel %vm1254_vm0, %v1220_v35, 0.0 }
 0x177   :  { %v1257_v3 = vsel %vm1256_vm1, %v1251_v0, 0.0 }
 0x178   :  { %v1258_v4 = vadd.f32 %v1257_v3, %v1255_v2 }
 0x17a   :  { %1261 = vst [vmem:[%s2256_s3] sm:$0xff] %v1258_v4 }

// kernel: discriminator_forward.15
= control target key start
LH: loop header
LB: loop body
LE: loop exit
PB: predicated region body
PF: predicated region fallthrough
CT: control target
= control target key end

     0   :  { %s3546_s1 = inlined_call_operand.vmem [shape: bf16[2048,128], index: 1, kind: input, shape index: {}]   ;;  %s3547_s0 = inlined_call_operand.vmem [shape: bf16[72,2048], index: 0, kind: input, shape index: {}]   ;;  %s3548_s2 = inlined_call_operand.vmem [shape: f32[1,128], index: 2, kind: input, shape index: {}]   ;;  %s3549_s3 = inlined_call_operand.vmem [shape: f32[72,128], index: 3, kind: output, shape index: {}]  }
   0x1   :  { %v2660_v0 = vld [vmem:[%s3546_s1 + $0x40] sm:$0xff]   ;;  %v2664_v4 = vld [vmem:[%s3546_s1 + $0x48] sm:$0xff]   ;;  %v2668_v8 = vld [vmem:[%s3546_s1 + $0x50] sm:$0xff]  }
   0x2   :  { %v2661_v1 = vld [vmem:[%s3546_s1 + $0xc0] sm:$0xff]   ;;  %2292 = vmatprep.subr.bf16.mxu0 %v2660_v0  ;;  %v2665_v5 = vld [vmem:[%s3546_s1 + $0xc8] sm:$0xff]   ;;  %v2669_v9 = vld [vmem:[%s3546_s1 + $0xd0] sm:$0xff]  }
   0x3   :  { %v2662_v2 = vld [vmem:[%s3546_s1] sm:$0xff]   ;;  %2338 = vmatprep.subr.bf16.mxu1 %v2661_v1  ;;  %v2666_v6 = vld [vmem:[%s3546_s1 + $0x8] sm:$0xff]   ;;  %v2670_v10 = vld [vmem:[%s3546_s1 + $0x10] sm:$0xff]  }
   0x4   :  { %v2663_v3 = vld [vmem:[%s3546_s1 + $0x80] sm:$0xff]   ;;  %2293 = vmatpush3.bf16.msra.mxu0 %v2662_v2  ;;  %v2667_v7 = vld [vmem:[%s3546_s1 + $0x88] sm:$0xff]   ;;  %v2671_v11 = vld [vmem:[%s3546_s1 + $0x90] sm:$0xff]  }
   0x5   :  { %2339 = vmatpush3.bf16.msra.mxu1 %v2663_v3  ;;  %2294 = vmatprep.subr.bf16.mxu0 %v2664_v4  ;;  %v2672_v12 = vld [vmem:[%s3546_s1 + $0x58] sm:$0xff]   ;;  %v2676_v16 = vld [vmem:[%s3546_s1 + $0x60] sm:$0xff]   ;;  %v2680_v20 = vld [vmem:[%s3546_s1 + $0x68] sm:$0xff]  }
   0x6   :  { %2340 = vmatprep.subr.bf16.mxu1 %v2665_v5  ;;  %v2673_v13 = vld [vmem:[%s3546_s1 + $0xd8] sm:$0xff]   ;;  %v2677_v17 = vld [vmem:[%s3546_s1 + $0xe0] sm:$0xff]   ;;  %v2681_v21 = vld [vmem:[%s3546_s1 + $0xe8] sm:$0xff]  }
   0x7   :  { %v2674_v14 = vld [vmem:[%s3546_s1 + $0x18] sm:$0xff]   ;;  %v2678_v18 = vld [vmem:[%s3546_s1 + $0x20] sm:$0xff]   ;;  %v2682_v22 = vld [vmem:[%s3546_s1 + $0x28] sm:$0xff]  }
   0x8   :  { %2295 = vmatpush3.bf16.msra.mxu0 %v2666_v6  ;;  %v2675_v15 = vld [vmem:[%s3546_s1 + $0x98] sm:$0xff]   ;;  %v2679_v19 = vld [vmem:[%s3546_s1 + $0xa0] sm:$0xff]   ;;  %v2683_v23 = vld [vmem:[%s3546_s1 + $0xa8] sm:$0xff]  }
   0x9   :  { %2341 = vmatpush3.bf16.msra.mxu1 %v2667_v7  ;;  %2296 = vmatprep.subr.bf16.mxu0 %v2668_v8  ;;  %v2684_v24 = vld [vmem:[%s3546_s1 + $0x70] sm:$0xff]   ;;  %v2688_v28 = vld [vmem:[%s3546_s1 + $0x78] sm:$0xff]   ;;  %v15_v32 = vld [vmem:[%s3547_s0] sm:$0xff] }
   0xa   :  { %2342 = vmatprep.subr.bf16.mxu1 %v2669_v9  ;;  %v2685_v25 = vld [vmem:[%s3546_s1 + $0xf0] sm:$0xff]   ;;  %v2689_v29 = vld [vmem:[%s3546_s1 + $0xf8] sm:$0xff]   ;;  %v23_v33 = vld [vmem:[%s3547_s0 + $0x40] sm:$0xff] }
   0xb   :  { %v2686_v26 = vld [vmem:[%s3546_s1 + $0x30] sm:$0xff]   ;;  %v2690_v30 = vld [vmem:[%s3546_s1 + $0x38] sm:$0xff]   ;;  %v16_v34 = vld [vmem:[%s3547_s0 + $0x8] sm:$0xff]  ;;  %v2084_v35 = vcombine.low %v15_v32, %v23_v33  ;;  %v2085_v36 = vcombine.high %v15_v32, %v23_v33 }
   0xc   :  { %2297 = vmatpush3.bf16.msra.mxu0 %v2670_v10  ;;  %v2687_v27 = vld [vmem:[%s3546_s1 + $0xb0] sm:$0xff]   ;;  %v2691_v31 = vld [vmem:[%s3546_s1 + $0xb8] sm:$0xff]   ;;  %v24_v37 = vld [vmem:[%s3547_s0 + $0x48] sm:$0xff] }
   0xd   :  { %2343 = vmatpush3.bf16.msra.mxu1 %v2671_v11  ;;  %2298 = vmatprep.subr.bf16.mxu0 %v2672_v12  ;;  %v2086_v38 = vcombine.low %v16_v34, %v24_v37  ;;  %v2087_v39 = vcombine.high %v16_v34, %v24_v37  ;;  %v2692_v40 = vld [vmem:[%s3546_s1 + $0x140] sm:$0xff]   ;;  %v2696_v44 = vld [vmem:[%s3546_s1 + $0x148] sm:$0xff]   ;;  %v2700_v56 = vld [vmem:[%s3546_s1 + $0x150] sm:$0xff]  }
   0xe   :  { %2344 = vmatprep.subr.bf16.mxu1 %v2673_v13  ;;  %1526 = vmatprep.mubr.bf16.mxu0 %v2085_v36  ;;  %v2693_v41 = vld [vmem:[%s3546_s1 + $0x100] sm:$0xff]   ;;  %v2697_v45 = vld [vmem:[%s3546_s1 + $0x108] sm:$0xff]   ;;  %v2701_v57 = vld [vmem:[%s3546_s1 + $0x110] sm:$0xff]  }
   0xf   :  { %1598 = vmatprep.mubr.bf16.mxu1 %v2087_v39  ;;  %v2694_v42 = vld [vmem:[%s3546_s1 + $0x1c0] sm:$0xff]   ;;  %v32_v49 = vld [vmem:[%s3547_s0 + $0x88] sm:$0xff]  ;;  %v2702_v58 = vld [vmem:[%s3546_s1 + $0x1d0] sm:$0xff]  }
  0x10   :  { %2299 = vmatpush3.bf16.msra.mxu0 %v2674_v14  ;;  %v2695_v43 = vld [vmem:[%s3546_s1 + $0x180] sm:$0xff]   ;;  %v40_v50 = vld [vmem:[%s3547_s0 + $0xc8] sm:$0xff]  ;;  %v2703_v59 = vld [vmem:[%s3546_s1 + $0x190] sm:$0xff]  }
  0x11   :  { %2345 = vmatpush3.bf16.msra.mxu1 %v2675_v15  ;;  %2300 = vmatprep.subr.bf16.mxu0 %v2676_v16  ;;  %v31_v46 = vld [vmem:[%s3547_s0 + $0x80] sm:$0xff]  ;;  %v2103_v52 = vcombine.high %v32_v49, %v40_v50  ;;  %v2698_v53 = vld [vmem:[%s3546_s1 + $0x1c8] sm:$0xff]   ;;  %v2102_v54 = vcombine.low %v32_v49, %v40_v50  ;;  %v2704_v2 = vld [vmem:[%s3546_s1 + $0x158] sm:$0xff]  }
  0x12   :  { %2346 = vmatprep.subr.bf16.mxu1 %v2677_v17  ;;  %v39_v47 = vld [vmem:[%s3547_s0 + $0xc0] sm:$0xff]  ;;  %v2699_v55 = vld [vmem:[%s3546_s1 + $0x188] sm:$0xff]   ;;  %v2705_v5 = vld [vmem:[%s3546_s1 + $0x118] sm:$0xff]  }
  0x13   :  { %v2101_v48 = vcombine.high %v31_v46, %v39_v47  ;;  %v2100_v51 = vcombine.low %v31_v46, %v39_v47  ;;  %v47_v60 = vld [vmem:[%s3547_s0 + $0x100] sm:$0xff]  ;;  %v48_v62 = vld [vmem:[%s3547_s0 + $0x108] sm:$0xff]  ;;  %v2706_v6 = vld [vmem:[%s3546_s1 + $0x1d8] sm:$0xff]  }
  0x14   :  { %2301 = vmatpush3.bf16.msra.mxu0 %v2678_v18  ;;  %v55_v61 = vld [vmem:[%s3547_s0 + $0x140] sm:$0xff]  ;;  %v56_v63 = vld [vmem:[%s3547_s0 + $0x148] sm:$0xff]  ;;  %v2707_v7 = vld [vmem:[%s3546_s1 + $0x198] sm:$0xff]  }
  0x15   :  { %2347 = vmatpush3.bf16.msra.mxu1 %v2679_v19  ;;  %2302 = vmatprep.subr.bf16.mxu0 %v2680_v20  ;;  %v2117_v0 = vcombine.high %v47_v60, %v55_v61  ;;  %v2119_v1 = vcombine.high %v48_v62, %v56_v63  ;;  %v2116_v3 = vcombine.low %v47_v60, %v55_v61  ;;  %v2708_v8 = vld [vmem:[%s3546_s1 + $0x160] sm:$0xff]   ;;  %v64_v13 = vld [vmem:[%s3547_s0 + $0x188] sm:$0xff]  ;;  %v2723_v33 = vld [vmem:[%s3546_s1 + $0x1b0] sm:$0xff]  }
  0x16   :  { %2348 = vmatprep.subr.bf16.mxu1 %v2681_v21  ;;  %v2118_v4 = vcombine.low %v48_v62, %v56_v63  ;;  %v2709_v9 = vld [vmem:[%s3546_s1 + $0x120] sm:$0xff]   ;;  %v72_v15 = vld [vmem:[%s3547_s0 + $0x1c8] sm:$0xff]  ;;  %v2724_v34 = vld [vmem:[%s3546_s1 + $0x178] sm:$0xff]  }
  0x17   :  { %v2710_v10 = vld [vmem:[%s3546_s1 + $0x1e0] sm:$0xff]   ;;  %v2135_v17 = vcombine.high %v64_v13, %v72_v15  ;;  %v2134_v19 = vcombine.low %v64_v13, %v72_v15  ;;  %v2712_v20 = vld [vmem:[%s3546_s1 + $0x168] sm:$0xff]   ;;  %v2726_v36 = vld [vmem:[%s3546_s1 + $0x1f8] sm:$0xff]  }
  0x18   :  { %2303 = vmatpush3.bf16.msra.mxu0 %v2682_v22  ;;  %v63_v11 = vld [vmem:[%s3547_s0 + $0x180] sm:$0xff]  ;;  %v2713_v21 = vld [vmem:[%s3546_s1 + $0x128] sm:$0xff]   ;;  %v2727_v37 = vld [vmem:[%s3546_s1 + $0x1b8] sm:$0xff]  }
  0x19   :  { %2349 = vmatpush3.bf16.msra.mxu1 %v2683_v23  ;;  %2304 = vmatprep.subr.bf16.mxu0 %v2684_v24  ;;  %v71_v12 = vld [vmem:[%s3547_s0 + $0x1c0] sm:$0xff]  ;;  %v2714_v22 = vld [vmem:[%s3546_s1 + $0x1e8] sm:$0xff]   ;;  %v2716_v24 = vld [vmem:[%s3546_s1 + $0x170] sm:$0xff]  }
  0x1a   :  { %2350 = vmatprep.subr.bf16.mxu1 %v2685_v25  ;;  %v2133_v14 = vcombine.high %v63_v11, %v71_v12  ;;  %v2132_v16 = vcombine.low %v63_v11, %v71_v12  ;;  %v2711_v18 = vld [vmem:[%s3546_s1 + $0x1a0] sm:$0xff]   ;;  %v2715_v23 = vld [vmem:[%s3546_s1 + $0x1a8] sm:$0xff]   ;;  %v25_v39 = vld [vmem:[%s3547_s0 + $0x50] sm:$0xff] }
  0x1b   :  { %v79_v25 = vld [vmem:[%s3547_s0 + $0x200] sm:$0xff]  ;;  %v2732_v50 = vld [vmem:[%s3546_s1 + $0x248] sm:$0xff]   ;;  %v2736_v62 = vld [vmem:[%s3546_s1 + $0x250] sm:$0xff]  }
  0x1c   :  { %2305 = vmatpush3.bf16.msra.mxu0 %v2686_v26  ;;  %v80_v26 = vld [vmem:[%s3547_s0 + $0x208] sm:$0xff]  ;;  %v2729_v47 = vld [vmem:[%s3546_s1 + $0x200] sm:$0xff]   ;;  %v2737_v63 = vld [vmem:[%s3546_s1 + $0x210] sm:$0xff]  }
  0x1d   :  { %2351 = vmatpush3.bf16.msra.mxu1 %v2687_v27  ;;  %2306 = vmatprep.subr.bf16.mxu0 %v2688_v28  ;;  %v2149_v27 = vcombine.high %v79_v25, %v79_v25  ;;  %v2151_v28 = vcombine.high %v80_v26, %v80_v26  ;;  %v2150_v32 = vcombine.low %v80_v26, %v80_v26  ;;  %v2731_v49 = vld [vmem:[%s3546_s1 + $0x280] sm:$0xff]   ;;  %v2735_v60 = vld [vmem:[%s3546_s1 + $0x288] sm:$0xff]   ;;  %v2742_v11 = vld [vmem:[%s3546_s1 + $0x2d8] sm:$0xff]  }
  0x1e   :  { %2352 = vmatprep.subr.bf16.mxu1 %v2689_v29  ;;  %v2719_v29 = vld [vmem:[%s3546_s1 + $0x130] sm:$0xff]   ;;  %v2743_v13 = vld [vmem:[%s3546_s1 + $0x298] sm:$0xff]   ;;  %v2745_v15 = vld [vmem:[%s3546_s1 + $0x220] sm:$0xff]  }
  0x20   :  { %2307 = vmatpush3.bf16.msra.mxu0 %v2690_v30  ;;  %v2148_v30 = vcombine.low %v79_v25, %v79_v25  ;;  %v2748_v25 = vld [vmem:[%s3546_s1 + $0x268] sm:$0xff]  }
  0x21   :  { %2353 = vmatpush3.bf16.msra.mxu1 %v2691_v31  ;;  %2384 = vmatprep.subr.bf16.mxu0 %v2692_v40  ;;  %v2722_v31 = vld [vmem:[%s3546_s1 + $0x1f0] sm:$0xff]   ;;  %v18_v40 = vld [vmem:[%s3547_s0 + $0x18] sm:$0xff] }
  0x22   :  { %2430 = vmatprep.subr.bf16.mxu1 %v2694_v42  ;;  %v26_v42 = vld [vmem:[%s3547_s0 + $0x58] sm:$0xff] }
  0x23   :  { %1527 = vmatmul.mubr.bf16.vlgmr.msra.gmra.mrb[0].mxu0 %v2084_v35  ;;  %v2725_v35 = vld [vmem:[%s3546_s1 + $0x138] sm:$0xff]   ;;  %v2090_v46 = vcombine.low %v18_v40, %v26_v42 }
  0x24   :  { %1599 = vmatmul.mubr.bf16.vlgmr.msra.gmra.mrb[0].mxu1 %v2086_v38  ;;  %2385 = vmatpush3.bf16.msra.mxu0 %v2693_v41  ;;  %v17_v38 = vld [vmem:[%s3547_s0 + $0x10] sm:$0xff] }
  0x25   :  { %2431 = vmatpush3.bf16.msra.mxu1 %v2695_v43  ;;  %2386 = vmatprep.subr.bf16.mxu0 %v2696_v44  ;;  %v2089_v41 = vcombine.high %v17_v38, %v25_v39  ;;  %v2088_v43 = vcombine.low %v17_v38, %v25_v39  ;;  %v2091_v44 = vcombine.high %v18_v40, %v26_v42  ;;  %v2760_v39 = vld [vmem:[%s3546_s1 + $0x278] sm:$0xff]  }
  0x26   :  { %1534 = vmatprep.mubr.bf16.mxu0 %v2101_v48  ;;  %1606 = vmatprep.mubr.bf16.mxu1 %v2103_v52  ;;  %v2730_v48 = vld [vmem:[%s3546_s1 + $0x2c0] sm:$0xff]   ;;  %v33_v52 = vld [vmem:[%s3547_s0 + $0x90] sm:$0xff]  ;;  %v2762_v42 = vld [vmem:[%s3546_s1 + $0x2f8] sm:$0xff]  }
  0x27   :  { %2432 = vmatprep.subr.bf16.mxu1 %v2698_v53  ;;  %v41_v53 = vld [vmem:[%s3547_s0 + $0xd0] sm:$0xff] }
  0x28   :  { %2387 = vmatpush3.bf16.msra.mxu0 %v2697_v45  ;;  %v2728_v45 = vld [vmem:[%s3546_s1 + $0x240] sm:$0xff]  }
  0x29   :  { %2433 = vmatpush3.bf16.msra.mxu1 %v2699_v55  ;;  %2388 = vmatprep.subr.bf16.mxu0 %v2700_v56  ;;  %v34_v55 = vld [vmem:[%s3547_s0 + $0x98] sm:$0xff] }
  0x2a   :  { %2434 = vmatprep.subr.bf16.mxu1 %v2702_v58  ;;  %v42_v56 = vld [vmem:[%s3547_s0 + $0xd8] sm:$0xff]  ;;  %v2734_v58 = vld [vmem:[%s3546_s1 + $0x2c8] sm:$0xff]  }
  0x2b   :  { %1535 = vmatmul.mubr.bf16.gmra.mrb[4].mxu0 %v2100_v51  ;;  %v2733_v51 = vld [vmem:[%s3546_s1 + $0x208] sm:$0xff]   ;;  %v2106_v61 = vcombine.low %v34_v55, %v42_v56 }
  0x2c   :  { %1607 = vmatmul.mubr.bf16.gmra.mrb[4].mxu1 %v2102_v54  ;;  %2389 = vmatpush3.bf16.msra.mxu0 %v2701_v57  ;;  %v2105_v54 = vcombine.high %v33_v52, %v41_v53  ;;  %v2107_v57 = vcombine.high %v34_v55, %v42_v56  ;;  %v2767_v55 = vld [vmem:[%s3546_s1 + $0x380] sm:$0xff]   ;;  %v2768_v56 = vld [vmem:[%s3546_s1 + $0x348] sm:$0xff]  }
  0x2d   :  { %2435 = vmatpush3.bf16.msra.mxu1 %v2703_v59  ;;  %1542 = vmatprep.mubr.bf16.mxu0 %v2117_v0  ;;  %v2104_v59 = vcombine.low %v33_v52, %v41_v53  ;;  %v2738_v0 = vld [vmem:[%s3546_s1 + $0x2d0] sm:$0xff]   ;;  %v2766_v53 = vld [vmem:[%s3546_s1 + $0x3c0] sm:$0xff]  }
  0x2e   :  { %1614 = vmatprep.mubr.bf16.mxu1 %v2119_v1  ;;  %2390 = vmatprep.subr.bf16.mxu0 %v2704_v2  ;;  %v2739_v1 = vld [vmem:[%s3546_s1 + $0x290] sm:$0xff]  }
  0x2f   :  { %2436 = vmatprep.subr.bf16.mxu1 %v2706_v6  ;;  %v49_v2 = vld [vmem:[%s3547_s0 + $0x110] sm:$0xff] }
  0x30   :  { %2391 = vmatpush3.bf16.msra.mxu0 %v2705_v5  ;;  %v58_v5 = vld [vmem:[%s3547_s0 + $0x158] sm:$0xff] }
  0x31   :  { %2437 = vmatpush3.bf16.msra.mxu1 %v2707_v7  ;;  %2392 = vmatprep.subr.bf16.mxu0 %v2708_v8  ;;  %v2740_v8 = vld [vmem:[%s3546_s1 + $0x258] sm:$0xff]  }
  0x32   :  { %2438 = vmatprep.subr.bf16.mxu1 %v2710_v10 }
  0x33   :  { %1543 = vmatmul.mubr.bf16.gmra.mrb[8].mxu0 %v2116_v3  ;;  %v57_v3 = vld [vmem:[%s3547_s0 + $0x150] sm:$0xff] }
  0x34   :  { %1615 = vmatmul.mubr.bf16.gmra.mrb[8].mxu1 %v2118_v4  ;;  %2393 = vmatpush3.bf16.msra.mxu0 %v2709_v9  ;;  %v50_v4 = vld [vmem:[%s3547_s0 + $0x118] sm:$0xff]  ;;  %v2121_v6 = vcombine.high %v49_v2, %v57_v3  ;;  %v2120_v10 = vcombine.low %v49_v2, %v57_v3  ;;  %v2772_v2 = vld [vmem:[%s3546_s1 + $0x350] sm:$0xff]  }
  0x35   :  { %1550 = vmatprep.mubr.bf16.mxu0 %v2133_v14  ;;  %1622 = vmatprep.mubr.bf16.mxu1 %v2135_v17  ;;  %v2123_v7 = vcombine.high %v50_v4, %v58_v5  ;;  %v2741_v9 = vld [vmem:[%s3546_s1 + $0x218] sm:$0xff]   ;;  %v2122_v12 = vcombine.low %v50_v4, %v58_v5  ;;  %v2744_v14 = vld [vmem:[%s3546_s1 + $0x260] sm:$0xff]   ;;  %v65_v17 = vld [vmem:[%s3547_s0 + $0x190] sm:$0xff] }
  0x36   :  { %2439 = vmatpush3.bf16.msra.mxu1 %v2711_v18  ;;  %2394 = vmatprep.subr.bf16.mxu0 %v2712_v20  ;;  %v73_v18 = vld [vmem:[%s3547_s0 + $0x1d0] sm:$0xff] }
  0x37   :  { %2440 = vmatprep.subr.bf16.mxu1 %v2714_v22  ;;  %v2137_v20 = vcombine.high %v65_v17, %v73_v18  ;;  %v2773_v4 = vld [vmem:[%s3546_s1 + $0x310] sm:$0xff]  }
  0x38   :  { %2395 = vmatpush3.bf16.msra.mxu0 %v2713_v21  ;;  %v74_v21 = vld [vmem:[%s3547_s0 + $0x1d8] sm:$0xff] }
  0x39   :  { %2396 = vmatprep.subr.bf16.mxu0 %v2716_v24  ;;  %v2136_v24 = vcombine.low %v65_v17, %v73_v18  ;;  %v2779_v17 = vld [vmem:[%s3546_s1 + $0x398] sm:$0xff]  }
  0x3a   :  { %2441 = vmatpush3.bf16.msra.mxu1 %v2715_v23  ;;  %v2747_v23 = vld [vmem:[%s3546_s1 + $0x2a0] sm:$0xff]  }
  0x3b   :  { %1551 = vmatmul.mubr.bf16.gmra.mrb[12].mxu0 %v2132_v16  ;;  %2442 = vmatprep.subr.bf16.mxu1 %v2722_v31  ;;  %v2746_v16 = vld [vmem:[%s3546_s1 + $0x2e0] sm:$0xff]   ;;  %v81_v31 = vld [vmem:[%s3547_s0 + $0x210] sm:$0xff] }
  0x3c   :  { %1623 = vmatmul.mubr.bf16.gmra.mrb[12].mxu1 %v2134_v19  ;;  %1558 = vmatprep.mubr.bf16.mxu0 %v2149_v27  ;;  %v66_v19 = vld [vmem:[%s3547_s0 + $0x198] sm:$0xff]  ;;  %v2749_v27 = vld [vmem:[%s3546_s1 + $0x228] sm:$0xff]   ;;  %v2152_v38 = vcombine.low %v81_v31, %v81_v31 }
  0x3d   :  { %1630 = vmatprep.mubr.bf16.mxu1 %v2151_v28  ;;  %2397 = vmatpush3.bf16.msra.mxu0 %v2719_v29  ;;  %v2139_v22 = vcombine.high %v66_v19, %v74_v21  ;;  %v2138_v26 = vcombine.low %v66_v19, %v74_v21  ;;  %v2750_v28 = vld [vmem:[%s3546_s1 + $0x2e8] sm:$0xff]   ;;  %v2780_v19 = vld [vmem:[%s3546_s1 + $0x360] sm:$0xff]  }
  0x3e   :  { %2443 = vmatpush3.bf16.msra.mxu1 %v2723_v33  ;;  %2398 = vmatprep.subr.bf16.mxu0 %v2724_v34  ;;  %v2751_v29 = vld [vmem:[%s3546_s1 + $0x2a8] sm:$0xff]   ;;  %v2153_v33 = vcombine.high %v81_v31, %v81_v31  ;;  %v2781_v21 = vld [vmem:[%s3546_s1 + $0x320] sm:$0xff]  }
  0x3f   :  { %2444 = vmatprep.subr.bf16.mxu1 %v2726_v36  ;;  %v2758_v36 = vld [vmem:[%s3546_s1 + $0x2f0] sm:$0xff]   ;;  %v2785_v31 = vld [vmem:[%s3546_s1 + $0x328] sm:$0xff]  }
  0x41   :  { %2399 = vmatpush3.bf16.msra.mxu0 %v2725_v35  ;;  %v2755_v35 = vld [vmem:[%s3546_s1 + $0x230] sm:$0xff]  }
  0x42   :  { %2445 = vmatpush3.bf16.msra.mxu1 %v2727_v37  ;;  %2476 = vmatprep.subr.bf16.mxu0 %v2728_v45  ;;  %v2759_v37 = vld [vmem:[%s3546_s1 + $0x2b0] sm:$0xff]   ;;  %v27_v45 = vld [vmem:[%s3547_s0 + $0x60] sm:$0xff] }
  0x43   :  { %1559 = vmatmul.mubr.bf16.gmra.mrb[16].mxu0 %v2148_v30  ;;  %2522 = vmatprep.subr.bf16.mxu1 %v2730_v48  ;;  %v2752_v30 = vld [vmem:[%s3546_s1 + $0x270] sm:$0xff]   ;;  %v28_v48 = vld [vmem:[%s3547_s0 + $0x68] sm:$0xff] }
  0x44   :  { %1631 = vmatmul.mubr.bf16.gmra.mrb[16].mxu1 %v2150_v32  ;;  %1670 = vmatprep.mubr.bf16.mxu0 %v2089_v41  ;;  %v82_v32 = vld [vmem:[%s3547_s0 + $0x218] sm:$0xff] }
  0x45   :  { %1742 = vmatprep.mubr.bf16.mxu1 %v2091_v44  ;;  %v2155_v34 = vcombine.high %v82_v32, %v82_v32  ;;  %v2154_v40 = vcombine.low %v82_v32, %v82_v32  ;;  %v2761_v41 = vld [vmem:[%s3546_s1 + $0x238] sm:$0xff]   ;;  %v19_v44 = vld [vmem:[%s3547_s0 + $0x20] sm:$0xff] }
  0x46   :  { %v2092_v52 = vcombine.low %v19_v44, %v27_v45 }
  0x4b   :  { %1671 = vmatmul.mubr.bf16.vlgmr.msra.gmra.mrb[20].mxu0 %v2088_v43  ;;  %v2763_v43 = vld [vmem:[%s3546_s1 + $0x2b8] sm:$0xff]  }
  0x4c   :  { %1743 = vmatmul.mubr.bf16.vlgmr.msra.gmra.mrb[20].mxu1 %v2090_v46  ;;  %2477 = vmatpush3.bf16.msra.mxu0 %v2729_v47  ;;  %v20_v46 = vld [vmem:[%s3547_s0 + $0x28] sm:$0xff]  ;;  %v2093_v47 = vcombine.high %v19_v44, %v27_v45  ;;  %v2796_v44 = vld [vmem:[%s3546_s1 + $0x378] sm:$0xff]  }
  0x4d   :  { %2523 = vmatpush3.bf16.msra.mxu1 %v2731_v49  ;;  %2478 = vmatprep.subr.bf16.mxu0 %v2732_v50  ;;  %v2095_v49 = vcombine.high %v20_v46, %v28_v48  ;;  %v2764_v50 = vld [vmem:[%s3546_s1 + $0x340] sm:$0xff]   ;;  %v2797_v45 = vld [vmem:[%s3546_s1 + $0x338] sm:$0xff]  }
  0x4e   :  { %1678 = vmatprep.mubr.bf16.mxu0 %v2105_v54  ;;  %1750 = vmatprep.mubr.bf16.mxu1 %v2107_v57  ;;  %v2094_v54 = vcombine.low %v20_v46, %v28_v48  ;;  %v2769_v57 = vld [vmem:[%s3546_s1 + $0x308] sm:$0xff]  }
  0x4f   :  { %2524 = vmatprep.subr.bf16.mxu1 %v2734_v58  ;;  %v35_v58 = vld [vmem:[%s3547_s0 + $0xa0] sm:$0xff] }
  0x50   :  { %2479 = vmatpush3.bf16.msra.mxu0 %v2733_v51  ;;  %v2765_v51 = vld [vmem:[%s3546_s1 + $0x300] sm:$0xff]  }
  0x51   :  { %2525 = vmatpush3.bf16.msra.mxu1 %v2735_v60  ;;  %2480 = vmatprep.subr.bf16.mxu0 %v2736_v62  ;;  %v44_v62 = vld [vmem:[%s3547_s0 + $0xe8] sm:$0xff] }
  0x52   :  { %2526 = vmatprep.subr.bf16.mxu1 %v2738_v0  ;;  %v2770_v0 = vld [vmem:[%s3546_s1 + $0x3c8] sm:$0xff]  }
  0x53   :  { %1679 = vmatmul.mubr.bf16.gmra.mrb[24].mxu0 %v2104_v59  ;;  %v43_v59 = vld [vmem:[%s3547_s0 + $0xe0] sm:$0xff] }
  0x54   :  { %1751 = vmatmul.mubr.bf16.gmra.mrb[24].mxu1 %v2106_v61  ;;  %2481 = vmatpush3.bf16.msra.mxu0 %v2737_v63  ;;  %v2109_v60 = vcombine.high %v35_v58, %v43_v59  ;;  %v36_v61 = vld [vmem:[%s3547_s0 + $0xa8] sm:$0xff]  ;;  %v2108_v3 = vcombine.low %v35_v58, %v43_v59  ;;  %v38_v58 = vld [vmem:[%s3547_s0 + $0xb8] sm:$0xff] }
  0x55   :  { %2527 = vmatpush3.bf16.msra.mxu1 %v2739_v1  ;;  %1686 = vmatprep.mubr.bf16.mxu0 %v2121_v6  ;;  %v2111_v63 = vcombine.high %v36_v61, %v44_v62  ;;  %v2771_v1 = vld [vmem:[%s3546_s1 + $0x388] sm:$0xff]   ;;  %v2110_v5 = vcombine.low %v36_v61, %v44_v62  ;;  %v2774_v6 = vld [vmem:[%s3546_s1 + $0x3d0] sm:$0xff]   ;;  %v46_v59 = vld [vmem:[%s3547_s0 + $0xf8] sm:$0xff] }
  0x56   :  { %1758 = vmatprep.mubr.bf16.mxu1 %v2123_v7  ;;  %2482 = vmatprep.subr.bf16.mxu0 %v2740_v8  ;;  %v2775_v7 = vld [vmem:[%s3546_s1 + $0x390] sm:$0xff]   ;;  %v51_v8 = vld [vmem:[%s3547_s0 + $0x120] sm:$0xff] }
  0x57   :  { %2528 = vmatprep.subr.bf16.mxu1 %v2742_v11  ;;  %v60_v11 = vld [vmem:[%s3547_s0 + $0x168] sm:$0xff] }
  0x58   :  { %2483 = vmatpush3.bf16.msra.mxu0 %v2741_v9  ;;  %v59_v9 = vld [vmem:[%s3547_s0 + $0x160] sm:$0xff] }
  0x59   :  { %2529 = vmatpush3.bf16.msra.mxu1 %v2743_v13  ;;  %2484 = vmatprep.subr.bf16.mxu0 %v2744_v14  ;;  %v2776_v14 = vld [vmem:[%s3546_s1 + $0x358] sm:$0xff]   ;;  %v2124_v18 = vcombine.low %v51_v8, %v59_v9 }
  0x5a   :  { %2530 = vmatprep.subr.bf16.mxu1 %v2746_v16  ;;  %v2778_v16 = vld [vmem:[%s3546_s1 + $0x3d8] sm:$0xff]  }
  0x5b   :  { %1687 = vmatmul.mubr.bf16.gmra.mrb[28].mxu0 %v2120_v10  ;;  %v52_v10 = vld [vmem:[%s3547_s0 + $0x128] sm:$0xff] }
  0x5c   :  { %1759 = vmatmul.mubr.bf16.gmra.mrb[28].mxu1 %v2122_v12  ;;  %2485 = vmatpush3.bf16.msra.mxu0 %v2745_v15  ;;  %v2125_v12 = vcombine.high %v51_v8, %v59_v9  ;;  %v2127_v13 = vcombine.high %v52_v10, %v60_v11  ;;  %v2777_v15 = vld [vmem:[%s3546_s1 + $0x318] sm:$0xff]   ;;  %v69_v8 = vld [vmem:[%s3547_s0 + $0x1b0] sm:$0xff] }
  0x5d   :  { %1694 = vmatprep.mubr.bf16.mxu0 %v2137_v20  ;;  %1766 = vmatprep.mubr.bf16.mxu1 %v2139_v22  ;;  %v2126_v20 = vcombine.low %v52_v10, %v60_v11  ;;  %v2782_v22 = vld [vmem:[%s3546_s1 + $0x3e0] sm:$0xff]   ;;  %v77_v9 = vld [vmem:[%s3547_s0 + $0x1f0] sm:$0xff]  ;;  %v70_v10 = vld [vmem:[%s3547_s0 + $0x1b8] sm:$0xff] }
  0x5e   :  { %2531 = vmatpush3.bf16.msra.mxu1 %v2747_v23  ;;  %2486 = vmatprep.subr.bf16.mxu0 %v2748_v25  ;;  %v67_v23 = vld [vmem:[%s3547_s0 + $0x1a0] sm:$0xff]  ;;  %v68_v25 = vld [vmem:[%s3547_s0 + $0x1a8] sm:$0xff]  ;;  %v78_v11 = vld [vmem:[%s3547_s0 + $0x1f8] sm:$0xff] }
  0x5f   :  { %2532 = vmatprep.subr.bf16.mxu1 %v2750_v28 }
  0x60   :  { %2487 = vmatpush3.bf16.msra.mxu0 %v2749_v27  ;;  %v76_v27 = vld [vmem:[%s3547_s0 + $0x1e8] sm:$0xff] }
  0x61   :  { %2488 = vmatprep.subr.bf16.mxu0 %v2752_v30  ;;  %v2143_v28 = vcombine.high %v68_v25, %v76_v27  ;;  %v2784_v30 = vld [vmem:[%s3546_s1 + $0x368] sm:$0xff]  }
  0x62   :  { %2533 = vmatpush3.bf16.msra.mxu1 %v2751_v29  ;;  %v2783_v29 = vld [vmem:[%s3546_s1 + $0x3a0] sm:$0xff]  }
  0x63   :  { %1695 = vmatmul.mubr.bf16.gmra.mrb[32].mxu0 %v2136_v24  ;;  %2534 = vmatprep.subr.bf16.mxu1 %v2758_v36  ;;  %v75_v24 = vld [vmem:[%s3547_s0 + $0x1e0] sm:$0xff]  ;;  %v2788_v36 = vld [vmem:[%s3546_s1 + $0x370] sm:$0xff]  }
  0x64   :  { %1767 = vmatmul.mubr.bf16.gmra.mrb[32].mxu1 %v2138_v26  ;;  %1702 = vmatprep.mubr.bf16.mxu0 %v2153_v33  ;;  %v2141_v26 = vcombine.high %v67_v23, %v75_v24  ;;  %v2140_v32 = vcombine.low %v67_v23, %v75_v24  ;;  %v2786_v33 = vld [vmem:[%s3546_s1 + $0x3e8] sm:$0xff]  }
  0x65   :  { %1774 = vmatprep.mubr.bf16.mxu1 %v2155_v34  ;;  %2489 = vmatpush3.bf16.msra.mxu0 %v2755_v35  ;;  %v2142_v34 = vcombine.low %v68_v25, %v76_v27  ;;  %v2787_v35 = vld [vmem:[%s3546_s1 + $0x3a8] sm:$0xff]  }
  0x66   :  { %2535 = vmatpush3.bf16.msra.mxu1 %v2759_v37  ;;  %2490 = vmatprep.subr.bf16.mxu0 %v2760_v39  ;;  %v83_v37 = vld [vmem:[%s3547_s0 + $0x220] sm:$0xff] }
  0x67   :  { %2536 = vmatprep.subr.bf16.mxu1 %v2762_v42  ;;  %v2157_v39 = vcombine.high %v83_v37, %v83_v37  ;;  %v2794_v42 = vld [vmem:[%s3546_s1 + $0x3f0] sm:$0xff]   ;;  %v2156_v46 = vcombine.low %v83_v37, %v83_v37 }
  0x69   :  { %2491 = vmatpush3.bf16.msra.mxu0 %v2761_v41  ;;  %v2791_v41 = vld [vmem:[%s3546_s1 + $0x330] sm:$0xff]  }
  0x6a   :  { %2537 = vmatpush3.bf16.msra.mxu1 %v2763_v43  ;;  %2568 = vmatprep.subr.bf16.mxu0 %v2764_v50  ;;  %v2795_v43 = vld [vmem:[%s3546_s1 + $0x3b0] sm:$0xff]  }
  0x6b   :  { %1703 = vmatmul.mubr.bf16.gmra.mrb[36].mxu0 %v2152_v38  ;;  %2614 = vmatprep.subr.bf16.mxu1 %v2766_v53  ;;  %v84_v38 = vld [vmem:[%s3547_s0 + $0x228] sm:$0xff]  ;;  %v21_v50 = vld [vmem:[%s3547_s0 + $0x30] sm:$0xff] }
  0x6c   :  { %1775 = vmatmul.mubr.bf16.gmra.mrb[36].mxu1 %v2154_v40  ;;  %1814 = vmatprep.mubr.bf16.mxu0 %v2093_v47  ;;  %v2159_v40 = vcombine.high %v84_v38, %v84_v38  ;;  %v2798_v47 = vld [vmem:[%s3546_s1 + $0x3f8] sm:$0xff]   ;;  %v2158_v48 = vcombine.low %v84_v38, %v84_v38 }
  0x6d   :  { %1886 = vmatprep.mubr.bf16.mxu1 %v2095_v49  ;;  %v2799_v49 = vld [vmem:[%s3546_s1 + $0x3b8] sm:$0xff]  }
  0x73   :  { %1815 = vmatmul.mubr.bf16.vlgmr.msra.gmra.mrb[40].mxu0 %v2092_v52  ;;  %v22_v52 = vld [vmem:[%s3547_s0 + $0x38] sm:$0xff] }
  0x74   :  { %1887 = vmatmul.mubr.bf16.vlgmr.msra.gmra.mrb[40].mxu1 %v2094_v54  ;;  %2569 = vmatpush3.bf16.msra.mxu0 %v2765_v51  ;;  %v29_v51 = vld [vmem:[%s3547_s0 + $0x70] sm:$0xff]  ;;  %v30_v54 = vld [vmem:[%s3547_s0 + $0x78] sm:$0xff] }
  0x75   :  { %2615 = vmatpush3.bf16.msra.mxu1 %v2767_v55  ;;  %2570 = vmatprep.subr.bf16.mxu0 %v2768_v56  ;;  %v2097_v53 = vcombine.high %v21_v50, %v29_v51  ;;  %v2099_v55 = vcombine.high %v22_v52, %v30_v54  ;;  %v37_v56 = vld [vmem:[%s3547_s0 + $0xb0] sm:$0xff]  ;;  %v2098_v61 = vcombine.low %v22_v52, %v30_v54 }
  0x76   :  { %1822 = vmatprep.mubr.bf16.mxu0 %v2109_v60  ;;  %1894 = vmatprep.mubr.bf16.mxu1 %v2111_v63  ;;  %v2096_v60 = vcombine.low %v21_v50, %v29_v51  ;;  %v2115_v63 = vcombine.high %v38_v58, %v46_v59 }
  0x77   :  { %2616 = vmatprep.subr.bf16.mxu1 %v2770_v0  ;;  %v53_v0 = vld [vmem:[%s3547_s0 + $0x130] sm:$0xff] }
  0x78   :  { %2571 = vmatpush3.bf16.msra.mxu0 %v2769_v57  ;;  %v45_v57 = vld [vmem:[%s3547_s0 + $0xf0] sm:$0xff] }
  0x79   :  { %2617 = vmatpush3.bf16.msra.mxu1 %v2771_v1  ;;  %2572 = vmatprep.subr.bf16.mxu0 %v2772_v2  ;;  %v2113_v62 = vcombine.high %v37_v56, %v45_v57  ;;  %v61_v1 = vld [vmem:[%s3547_s0 + $0x170] sm:$0xff]  ;;  %v54_v2 = vld [vmem:[%s3547_s0 + $0x138] sm:$0xff] }
  0x7a   :  { %2618 = vmatprep.subr.bf16.mxu1 %v2774_v6  ;;  %v2129_v6 = vcombine.high %v53_v0, %v61_v1 }
  0x7b   :  { %1823 = vmatmul.mubr.bf16.gmra.mrb[44].mxu0 %v2108_v3  ;;  %v62_v3 = vld [vmem:[%s3547_s0 + $0x178] sm:$0xff] }
  0x7c   :  { %1895 = vmatmul.mubr.bf16.gmra.mrb[44].mxu1 %v2110_v5  ;;  %2573 = vmatpush3.bf16.msra.mxu0 %v2773_v4  ;;  %v2112_v4 = vcombine.low %v37_v56, %v45_v57  ;;  %v2114_v5 = vcombine.low %v38_v58, %v46_v59 }
  0x7d   :  { %2619 = vmatpush3.bf16.msra.mxu1 %v2775_v7  ;;  %1830 = vmatprep.mubr.bf16.mxu0 %v2125_v12  ;;  %v2131_v7 = vcombine.high %v54_v2, %v62_v3  ;;  %v2128_v12 = vcombine.low %v53_v0, %v61_v1 }
  0x7e   :  { %1902 = vmatprep.mubr.bf16.mxu1 %v2127_v13  ;;  %2574 = vmatprep.subr.bf16.mxu0 %v2776_v14  ;;  %v2130_v13 = vcombine.low %v54_v2, %v62_v3  ;;  %v2145_v14 = vcombine.high %v69_v8, %v77_v9 }
  0x7f   :  { %2620 = vmatprep.subr.bf16.mxu1 %v2778_v16  ;;  %v85_v16 = vld [vmem:[%s3547_s0 + $0x230] sm:$0xff] }
  0x80   :  { %2575 = vmatpush3.bf16.msra.mxu0 %v2777_v15  ;;  %v2147_v15 = vcombine.high %v70_v10, %v78_v11 }
  0x81   :  { %2621 = vmatpush3.bf16.msra.mxu1 %v2779_v17  ;;  %2576 = vmatprep.subr.bf16.mxu0 %v2780_v19  ;;  %v86_v17 = vld [vmem:[%s3547_s0 + $0x238] sm:$0xff]  ;;  %v2146_v19 = vcombine.low %v70_v10, %v78_v11 }
  0x82   :  { %2622 = vmatprep.subr.bf16.mxu1 %v2782_v22  ;;  %v2160_v22 = vcombine.low %v85_v16, %v85_v16  ;;  %v2162_v23 = vcombine.low %v86_v17, %v86_v17 }
  0x83   :  { %1831 = vmatmul.mubr.bf16.gmra.mrb[48].mxu0 %v2124_v18  ;;  %v2144_v18 = vcombine.low %v69_v8, %v77_v9 }
  0x84   :  { %1903 = vmatmul.mubr.bf16.gmra.mrb[48].mxu1 %v2126_v20  ;;  %2577 = vmatpush3.bf16.msra.mxu0 %v2781_v21  ;;  %v2161_v20 = vcombine.high %v85_v16, %v85_v16  ;;  %v2163_v21 = vcombine.high %v86_v17, %v86_v17 }
  0x85   :  { %1838 = vmatprep.mubr.bf16.mxu0 %v2141_v26  ;;  %1910 = vmatprep.mubr.bf16.mxu1 %v2143_v28  ;;  %v3427_v26 = vld [vmem:[%s3548_s2] ss:$0 sm:$0xff] }
  0x86   :  { %2623 = vmatpush3.bf16.msra.mxu1 %v2783_v29  ;;  %2578 = vmatprep.subr.bf16.mxu0 %v2784_v30 }
  0x87   :  { %2624 = vmatprep.subr.bf16.mxu1 %v2786_v33 }
  0x88   :  { %2579 = vmatpush3.bf16.msra.mxu0 %v2785_v31 }
  0x89   :  { %2580 = vmatprep.subr.bf16.mxu0 %v2788_v36 }
  0x8a   :  { %2625 = vmatpush3.bf16.msra.mxu1 %v2787_v35 }
  0x8b   :  { %1839 = vmatmul.mubr.bf16.gmra.mrb[52].mxu0 %v2140_v32  ;;  %2626 = vmatprep.subr.bf16.mxu1 %v2794_v42 }
  0x8c   :  { %1911 = vmatmul.mubr.bf16.gmra.mrb[52].mxu1 %v2142_v34  ;;  %1846 = vmatprep.mubr.bf16.mxu0 %v2157_v39 }
  0x8d   :  { %1918 = vmatprep.mubr.bf16.mxu1 %v2159_v40  ;;  %2581 = vmatpush3.bf16.msra.mxu0 %v2791_v41 }
  0x8e   :  { %2627 = vmatpush3.bf16.msra.mxu1 %v2795_v43  ;;  %2582 = vmatprep.subr.bf16.mxu0 %v2796_v44 }
  0x8f   :  { %2628 = vmatprep.subr.bf16.mxu1 %v2798_v47 }
  0x91   :  { %2583 = vmatpush3.bf16.msra.mxu0 %v2797_v45 }
  0x92   :  { %2629 = vmatpush3.bf16.msra.mxu1 %v2799_v49 }
  0x93   :  { %1847 = vmatmul.mubr.bf16.gmra.mrb[56].mxu0 %v2156_v46 }
  0x94   :  { %1919 = vmatmul.mubr.bf16.gmra.mrb[56].mxu1 %v2158_v48  ;;  %1958 = vmatprep.mubr.bf16.mxu0 %v2097_v53 }
  0x95   :  { %2030 = vmatprep.mubr.bf16.mxu1 %v2099_v55 }
  0x9b   :  { %1959 = vmatmul.mubr.bf16.vlgmr.msra.gmra.mrb[60].mxu0 %v2096_v60 }
  0x9c   :  { %2031 = vmatmul.mubr.bf16.vlgmr.msra.gmra.mrb[60].mxu1 %v2098_v61  ;;  %1966 = vmatprep.mubr.bf16.mxu0 %v2113_v62 }
  0x9d   :  { %2038 = vmatprep.mubr.bf16.mxu1 %v2115_v63 }
  0xa3   :  { %1967 = vmatmul.mubr.bf16.gmra.mrb[64].mxu0 %v2112_v4 }
  0xa4   :  { %2039 = vmatmul.mubr.bf16.gmra.mrb[64].mxu1 %v2114_v5  ;;  %1974 = vmatprep.mubr.bf16.mxu0 %v2129_v6 }
  0xa5   :  { %2046 = vmatprep.mubr.bf16.mxu1 %v2131_v7 }
  0xab   :  { %1975 = vmatmul.mubr.bf16.gmra.mrb[68].mxu0 %v2128_v12 }
  0xac   :  { %2047 = vmatmul.mubr.bf16.gmra.mrb[68].mxu1 %v2130_v13  ;;  %1982 = vmatprep.mubr.bf16.mxu0 %v2145_v14 }
  0xad   :  { %2054 = vmatprep.mubr.bf16.mxu1 %v2147_v15 }
  0xb3   :  { %1983 = vmatmul.mubr.bf16.gmra.mrb[72].mxu0 %v2144_v18 }
  0xb4   :  { %2055 = vmatmul.mubr.bf16.gmra.mrb[72].mxu1 %v2146_v19  ;;  %1990 = vmatprep.mubr.bf16.mxu0 %v2161_v20 }
  0xb5   :  { %2062 = vmatprep.mubr.bf16.mxu1 %v2163_v21 }
  0xbb   :  { %1991 = vmatmul.mubr.bf16.gmra.mrb[76].mxu0 %v2160_v22 }
  0xbc   :  { %2063 = vmatmul.mubr.bf16.gmra.mrb[76].mxu1 %v2162_v23 }
  0xf6   :  { %v2308_v24 = vpop.f32.mrb[0].mxu0 }
  0xf7   :  { %v2354_v25 = vpop.f32.mrb[0].mxu1  ;;  %v2309_v27 = vpop.f32.mrb[1].mxu0 }
  0xf8   :  { %v2310_v28 = vadd.f32 %v2309_v27, %v2308_v24  ;;  %v2355_v29 = vpop.f32.mrb[1].mxu1  ;;  %v2311_v30 = vpop.f32.mrb[2].mxu0 }
  0xf9   :  { %v2356_v31 = vadd.f32 %v2355_v29, %v2354_v25  ;;  %v2357_v32 = vpop.f32.mrb[2].mxu1  ;;  %v2312_v33 = vpop.f32.mrb[3].mxu0 }
  0xfa   :  { %v1529_v34 = vadd.f32 %v2310_v28, %v3427_v26  ;;  %v2313_v35 = vadd.f32 %v2312_v33, %v2311_v30  ;;  %v2358_v36 = vpop.f32.mrb[3].mxu1 }
  0xfb   :  { %v2359_v37 = vadd.f32 %v2358_v36, %v2357_v32 }
  0xfc   :  { %v3430_v38 = vadd.f32 %v2356_v31, %v1529_v34  ;;  %v1532_v39 = vadd.f32 %v2313_v35, %v3427_v26 }
  0xfe   :  { %v3433_v40 = vadd.f32 %v2359_v37, %v1532_v39  ;;  %v2314_v41 = vpop.f32.mrb[4].mxu0 }
  0xff   :  { %v2360_v42 = vpop.f32.mrb[4].mxu1  ;;  %v2315_v43 = vpop.f32.mrb[5].mxu0 }
 0x100   :  { %v2316_v44 = vadd.f32 %v2315_v43, %v2314_v41  ;;  %v2361_v45 = vpop.f32.mrb[5].mxu1  ;;  %v2317_v46 = vpop.f32.mrb[6].mxu0 }
 0x101   :  { %v2362_v47 = vadd.f32 %v2361_v45, %v2360_v42  ;;  %v2363_v48 = vpop.f32.mrb[6].mxu1  ;;  %v2318_v49 = vpop.f32.mrb[7].mxu0 }
 0x102   :  { %v1537_v50 = vadd.f32 %v2316_v44, %v3427_v26  ;;  %v2319_v51 = vadd.f32 %v2318_v49, %v2317_v46  ;;  %v2364_v52 = vpop.f32.mrb[7].mxu1 }
 0x103   :  { %v2365_v53 = vadd.f32 %v2364_v52, %v2363_v48 }
 0x104   :  { %v3436_v54 = vadd.f32 %v2362_v47, %v1537_v50  ;;  %v1540_v55 = vadd.f32 %v2319_v51, %v3427_v26 }
 0x106   :  { %v3439_v56 = vadd.f32 %v2365_v53, %v1540_v55  ;;  %v2320_v57 = vpop.f32.mrb[8].mxu0 }
 0x107   :  { %v2366_v58 = vpop.f32.mrb[8].mxu1  ;;  %v2321_v59 = vpop.f32.mrb[9].mxu0 }
 0x108   :  { %v2322_v60 = vadd.f32 %v2321_v59, %v2320_v57  ;;  %v2367_v61 = vpop.f32.mrb[9].mxu1  ;;  %v2323_v62 = vpop.f32.mrb[10].mxu0 }
 0x109   :  { %v2368_v63 = vadd.f32 %v2367_v61, %v2366_v58  ;;  %v2369_v0 = vpop.f32.mrb[10].mxu1  ;;  %v2324_v1 = vpop.f32.mrb[11].mxu0 }
 0x10a   :  { %v1545_v2 = vadd.f32 %v2322_v60, %v3427_v26  ;;  %v2325_v3 = vadd.f32 %v2324_v1, %v2323_v62  ;;  %v2370_v4 = vpop.f32.mrb[11].mxu1 }
 0x10b   :  { %v2371_v5 = vadd.f32 %v2370_v4, %v2369_v0 }
 0x10c   :  { %v3442_v6 = vadd.f32 %v2368_v63, %v1545_v2  ;;  %v1548_v7 = vadd.f32 %v2325_v3, %v3427_v26 }
 0x10e   :  { %v3445_v8 = vadd.f32 %v2371_v5, %v1548_v7  ;;  %v2326_v9 = vpop.f32.mrb[12].mxu0 }
 0x10f   :  { %v2372_v10 = vpop.f32.mrb[12].mxu1  ;;  %v2327_v11 = vpop.f32.mrb[13].mxu0 }
 0x110   :  { %v2328_v12 = vadd.f32 %v2327_v11, %v2326_v9  ;;  %v2373_v13 = vpop.f32.mrb[13].mxu1  ;;  %v2329_v14 = vpop.f32.mrb[14].mxu0 }
 0x111   :  { %v2374_v15 = vadd.f32 %v2373_v13, %v2372_v10  ;;  %v2375_v16 = vpop.f32.mrb[14].mxu1  ;;  %v2330_v17 = vpop.f32.mrb[15].mxu0 }
 0x112   :  { %v1553_v18 = vadd.f32 %v2328_v12, %v3427_v26  ;;  %v2331_v19 = vadd.f32 %v2330_v17, %v2329_v14  ;;  %v2376_v20 = vpop.f32.mrb[15].mxu1 }
 0x113   :  { %v2377_v21 = vadd.f32 %v2376_v20, %v2375_v16 }
 0x114   :  { %v3448_v22 = vadd.f32 %v2374_v15, %v1553_v18  ;;  %v1556_v23 = vadd.f32 %v2331_v19, %v3427_v26 }
 0x116   :  { %v3451_v24 = vadd.f32 %v2377_v21, %v1556_v23  ;;  %v2332_v25 = vpop.f32.mrb[16].mxu0 }
 0x117   :  { %v2378_v27 = vpop.f32.mrb[16].mxu1  ;;  %v2333_v28 = vpop.f32.mrb[17].mxu0 }
 0x118   :  { %v2334_v29 = vadd.f32 %v2333_v28, %v2332_v25  ;;  %v2379_v30 = vpop.f32.mrb[17].mxu1  ;;  %v2335_v31 = vpop.f32.mrb[18].mxu0 }
 0x119   :  { %v2380_v32 = vadd.f32 %v2379_v30, %v2378_v27  ;;  %v2381_v33 = vpop.f32.mrb[18].mxu1  ;;  %v2336_v34 = vpop.f32.mrb[19].mxu0 }
 0x11a   :  { %v1561_v35 = vadd.f32 %v2334_v29, %v3427_v26  ;;  %v2382_v36 = vpop.f32.mrb[19].mxu1 }
 0x11c   :  { %v3454_v37 = vadd.f32 %v2380_v32, %v1561_v35 }
 0x11e   :  { %v2400_v39 = vpop.f32.mrb[20].mxu0 }
 0x11f   :  { %v2446_v41 = vpop.f32.mrb[20].mxu1  ;;  %v2401_v42 = vpop.f32.mrb[21].mxu0 }
 0x120   :  { %v2402_v43 = vadd.f32 %v2401_v42, %v2400_v39  ;;  %v2447_v44 = vpop.f32.mrb[21].mxu1  ;;  %v2403_v45 = vpop.f32.mrb[22].mxu0 }
 0x121   :  { %v2448_v46 = vadd.f32 %v2447_v44, %v2446_v41  ;;  %v2449_v47 = vpop.f32.mrb[22].mxu1  ;;  %v2404_v48 = vpop.f32.mrb[23].mxu0 }
 0x122   :  { %v1673_v49 = vadd.f32 %v2402_v43, %v3430_v38  ;;  %v2405_v50 = vadd.f32 %v2404_v48, %v2403_v45  ;;  %v2450_v51 = vpop.f32.mrb[23].mxu1 }
 0x123   :  { %v2451_v52 = vadd.f32 %v2450_v51, %v2449_v47 }
 0x124   :  { %v3457_v53 = vadd.f32 %v2448_v46, %v1673_v49  ;;  %v1676_v26 = vadd.f32 %v2405_v50, %v3433_v40 }
 0x126   :  { %v3460_v55 = vadd.f32 %v2451_v52, %v1676_v26  ;;  %v2406_v57 = vpop.f32.mrb[24].mxu0 }
 0x127   :  { %v2452_v58 = vpop.f32.mrb[24].mxu1  ;;  %v2407_v59 = vpop.f32.mrb[25].mxu0 }
 0x128   :  { %v2408_v60 = vadd.f32 %v2407_v59, %v2406_v57  ;;  %v2453_v61 = vpop.f32.mrb[25].mxu1  ;;  %v2409_v62 = vpop.f32.mrb[26].mxu0 }
 0x129   :  { %v2454_v63 = vadd.f32 %v2453_v61, %v2452_v58  ;;  %v2455_v0 = vpop.f32.mrb[26].mxu1  ;;  %v2410_v1 = vpop.f32.mrb[27].mxu0 }
 0x12a   :  { %v1681_v38 = vadd.f32 %v2408_v60, %v3436_v54  ;;  %v2411_v2 = vadd.f32 %v2410_v1, %v2409_v62  ;;  %v2456_v3 = vpop.f32.mrb[27].mxu1 }
 0x12b   :  { %v2457_v4 = vadd.f32 %v2456_v3, %v2455_v0 }
 0x12c   :  { %v3463_v5 = vadd.f32 %v2454_v63, %v1681_v38  ;;  %v1684_v40 = vadd.f32 %v2411_v2, %v3439_v56 }
 0x12e   :  { %v3466_v7 = vadd.f32 %v2457_v4, %v1684_v40  ;;  %v2412_v9 = vpop.f32.mrb[28].mxu0 }
 0x12f   :  { %v2458_v10 = vpop.f32.mrb[28].mxu1  ;;  %v2413_v11 = vpop.f32.mrb[29].mxu0 }
 0x130   :  { %v2414_v12 = vadd.f32 %v2413_v11, %v2412_v9  ;;  %v2459_v13 = vpop.f32.mrb[29].mxu1  ;;  %v2415_v14 = vpop.f32.mrb[30].mxu0 }
 0x131   :  { %v2460_v15 = vadd.f32 %v2459_v13, %v2458_v10  ;;  %v2461_v16 = vpop.f32.mrb[30].mxu1  ;;  %v2416_v17 = vpop.f32.mrb[31].mxu0 }
 0x132   :  { %v1689_v54 = vadd.f32 %v2414_v12, %v3442_v6  ;;  %v2417_v18 = vadd.f32 %v2416_v17, %v2415_v14  ;;  %v2462_v19 = vpop.f32.mrb[31].mxu1 }
 0x133   :  { %v2463_v20 = vadd.f32 %v2462_v19, %v2461_v16 }
 0x134   :  { %v3469_v21 = vadd.f32 %v2460_v15, %v1689_v54  ;;  %v1692_v56 = vadd.f32 %v2417_v18, %v3445_v8 }
 0x136   :  { %v3472_v23 = vadd.f32 %v2463_v20, %v1692_v56  ;;  %v2418_v25 = vpop.f32.mrb[32].mxu0 }
 0x137   :  { %v2464_v27 = vpop.f32.mrb[32].mxu1  ;;  %v2419_v28 = vpop.f32.mrb[33].mxu0 }
 0x138   :  { %v2420_v29 = vadd.f32 %v2419_v28, %v2418_v25  ;;  %v2465_v30 = vpop.f32.mrb[33].mxu1  ;;  %v2421_v31 = vpop.f32.mrb[34].mxu0 }
 0x139   :  { %v2466_v32 = vadd.f32 %v2465_v30, %v2464_v27  ;;  %v2467_v33 = vpop.f32.mrb[34].mxu1  ;;  %v2422_v34 = vpop.f32.mrb[35].mxu0 }
 0x13a   :  { %v1697_v6 = vadd.f32 %v2420_v29, %v3448_v22  ;;  %v2423_v35 = vadd.f32 %v2422_v34, %v2421_v31  ;;  %v2468_v36 = vpop.f32.mrb[35].mxu1 }
 0x13b   :  { %v2469_v39 = vadd.f32 %v2468_v36, %v2467_v33 }
 0x13c   :  { %v3475_v41 = vadd.f32 %v2466_v32, %v1697_v6  ;;  %v1700_v8 = vadd.f32 %v2423_v35, %v3451_v24 }
 0x13e   :  { %v3478_v42 = vadd.f32 %v2469_v39, %v1700_v8  ;;  %v2424_v43 = vpop.f32.mrb[36].mxu0 }
 0x13f   :  { %v2470_v44 = vpop.f32.mrb[36].mxu1  ;;  %v2425_v45 = vpop.f32.mrb[37].mxu0 }
 0x140   :  { %v2426_v46 = vadd.f32 %v2425_v45, %v2424_v43  ;;  %v2471_v47 = vpop.f32.mrb[37].mxu1  ;;  %v2427_v48 = vpop.f32.mrb[38].mxu0 }
 0x141   :  { %v2472_v49 = vadd.f32 %v2471_v47, %v2470_v44  ;;  %v2473_v50 = vpop.f32.mrb[38].mxu1  ;;  %v2428_v51 = vpop.f32.mrb[39].mxu0 }
 0x142   :  { %v1705_v22 = vadd.f32 %v2426_v46, %v3454_v37  ;;  %v2474_v52 = vpop.f32.mrb[39].mxu1 }
 0x144   :  { %v3481_v26 = vadd.f32 %v2472_v49, %v1705_v22 }
 0x146   :  { %v2492_v57 = vpop.f32.mrb[40].mxu0 }
 0x147   :  { %v2538_v58 = vpop.f32.mrb[40].mxu1  ;;  %v2493_v59 = vpop.f32.mrb[41].mxu0 }
 0x148   :  { %v2494_v24 = vadd.f32 %v2493_v59, %v2492_v57  ;;  %v2539_v60 = vpop.f32.mrb[41].mxu1  ;;  %v2495_v61 = vpop.f32.mrb[42].mxu0 }
 0x149   :  { %v2540_v62 = vadd.f32 %v2539_v60, %v2538_v58  ;;  %v2541_v63 = vpop.f32.mrb[42].mxu1  ;;  %v2496_v0 = vpop.f32.mrb[43].mxu0 }
 0x14a   :  { %v1817_v1 = vadd.f32 %v2494_v24, %v3457_v53  ;;  %v2497_v38 = vadd.f32 %v2496_v0, %v2495_v61  ;;  %v2542_v2 = vpop.f32.mrb[43].mxu1 }
 0x14b   :  { %v2543_v3 = vadd.f32 %v2542_v2, %v2541_v63 }
 0x14c   :  { %v3484_v4 = vadd.f32 %v2540_v62, %v1817_v1  ;;  %v1820_v37 = vadd.f32 %v2497_v38, %v3460_v55 }
 0x14e   :  { %v3487_v40 = vadd.f32 %v2543_v3, %v1820_v37  ;;  %v2498_v9 = vpop.f32.mrb[44].mxu0 }
 0x14f   :  { %v2544_v10 = vpop.f32.mrb[44].mxu1  ;;  %v2499_v11 = vpop.f32.mrb[45].mxu0 }
 0x150   :  { %v2500_v12 = vadd.f32 %v2499_v11, %v2498_v9  ;;  %v2545_v13 = vpop.f32.mrb[45].mxu1  ;;  %v2501_v14 = vpop.f32.mrb[46].mxu0 }
 0x151   :  { %v2546_v15 = vadd.f32 %v2545_v13, %v2544_v10  ;;  %v2547_v16 = vpop.f32.mrb[46].mxu1  ;;  %v2502_v17 = vpop.f32.mrb[47].mxu0 }
 0x152   :  { %v1825_v53 = vadd.f32 %v2500_v12, %v3463_v5  ;;  %v2503_v54 = vadd.f32 %v2502_v17, %v2501_v14  ;;  %v2548_v18 = vpop.f32.mrb[47].mxu1 }
 0x153   :  { %v2549_v19 = vadd.f32 %v2548_v18, %v2547_v16 }
 0x154   :  { %v3490_v20 = vadd.f32 %v2546_v15, %v1825_v53  ;;  %v1828_v55 = vadd.f32 %v2503_v54, %v3466_v7 }
 0x156   :  { %v3493_v56 = vadd.f32 %v2549_v19, %v1828_v55  ;;  %v2504_v25 = vpop.f32.mrb[48].mxu0 }
 0x157   :  { %v2550_v27 = vpop.f32.mrb[48].mxu1  ;;  %v2505_v28 = vpop.f32.mrb[49].mxu0 }
 0x158   :  { %v2506_v29 = vadd.f32 %v2505_v28, %v2504_v25  ;;  %v2551_v30 = vpop.f32.mrb[49].mxu1  ;;  %v2507_v31 = vpop.f32.mrb[50].mxu0 }
 0x159   :  { %v2552_v32 = vadd.f32 %v2551_v30, %v2550_v27  ;;  %v2553_v33 = vpop.f32.mrb[50].mxu1  ;;  %v2508_v34 = vpop.f32.mrb[51].mxu0 }
 0x15a   :  { %v1833_v5 = vadd.f32 %v2506_v29, %v3469_v21  ;;  %v2509_v6 = vadd.f32 %v2508_v34, %v2507_v31  ;;  %v2554_v35 = vpop.f32.mrb[51].mxu1 }
 0x15b   :  { %v2555_v36 = vadd.f32 %v2554_v35, %v2553_v33 }
 0x15c   :  { %v3496_v39 = vadd.f32 %v2552_v32, %v1833_v5  ;;  %v1836_v7 = vadd.f32 %v2509_v6, %v3472_v23 }
 0x15e   :  { %v3499_v8 = vadd.f32 %v2555_v36, %v1836_v7  ;;  %v2510_v43 = vpop.f32.mrb[52].mxu0 }
 0x15f   :  { %v2556_v44 = vpop.f32.mrb[52].mxu1  ;;  %v2511_v45 = vpop.f32.mrb[53].mxu0 }
 0x160   :  { %v2512_v46 = vadd.f32 %v2511_v45, %v2510_v43  ;;  %v2557_v47 = vpop.f32.mrb[53].mxu1  ;;  %v2513_v48 = vpop.f32.mrb[54].mxu0 }
 0x161   :  { %v2558_v49 = vadd.f32 %v2557_v47, %v2556_v44  ;;  %v2559_v50 = vpop.f32.mrb[54].mxu1  ;;  %v2514_v51 = vpop.f32.mrb[55].mxu0 }
 0x162   :  { %v1841_v21 = vadd.f32 %v2512_v46, %v3475_v41  ;;  %v2515_v22 = vadd.f32 %v2514_v51, %v2513_v48  ;;  %v2560_v52 = vpop.f32.mrb[55].mxu1 }
 0x163   :  { %v2561_v57 = vadd.f32 %v2560_v52, %v2559_v50 }
 0x164   :  { %v3502_v58 = vadd.f32 %v2558_v49, %v1841_v21  ;;  %v1844_v23 = vadd.f32 %v2515_v22, %v3478_v42 }
 0x166   :  { %v3505_v59 = vadd.f32 %v2561_v57, %v1844_v23  ;;  %v2516_v24 = vpop.f32.mrb[56].mxu0 }
 0x167   :  { %v2562_v60 = vpop.f32.mrb[56].mxu1  ;;  %v2517_v61 = vpop.f32.mrb[57].mxu0 }
 0x168   :  { %v2518_v62 = vadd.f32 %v2517_v61, %v2516_v24  ;;  %v2563_v63 = vpop.f32.mrb[57].mxu1  ;;  %v2519_v0 = vpop.f32.mrb[58].mxu0 }
 0x169   :  { %v2564_v1 = vadd.f32 %v2563_v63, %v2562_v60  ;;  %v2565_v38 = vpop.f32.mrb[58].mxu1  ;;  %v2520_v2 = vpop.f32.mrb[59].mxu0 }
 0x16a   :  { %v1849_v41 = vadd.f32 %v2518_v62, %v3481_v26  ;;  %v2566_v3 = vpop.f32.mrb[59].mxu1 }
 0x16c   :  { %v3508_v37 = vadd.f32 %v2564_v1, %v1849_v41 }
 0x16e   :  { %v2584_v9 = vpop.f32.mrb[60].mxu0 }
 0x16f   :  { %v2630_v10 = vpop.f32.mrb[60].mxu1  ;;  %v2585_v11 = vpop.f32.mrb[61].mxu0 }
 0x170   :  { %v2586_v42 = vadd.f32 %v2585_v11, %v2584_v9  ;;  %v2631_v12 = vpop.f32.mrb[61].mxu1  ;;  %v2587_v13 = vpop.f32.mrb[62].mxu0 }
 0x171   :  { %v2632_v14 = vadd.f32 %v2631_v12, %v2630_v10  ;;  %v2633_v15 = vpop.f32.mrb[62].mxu1  ;;  %v2588_v16 = vpop.f32.mrb[63].mxu0 }
 0x172   :  { %v1961_v17 = vadd.f32 %v2586_v42, %v3484_v4  ;;  %v2589_v53 = vadd.f32 %v2588_v16, %v2587_v13  ;;  %v2634_v54 = vpop.f32.mrb[63].mxu1 }
 0x173   :  { %v2635_v18 = vadd.f32 %v2634_v54, %v2633_v15 }
 0x174   :  { %v2033_v19 = vadd.f32 %v2632_v14, %v1961_v17  ;;  %v1964_v26 = vadd.f32 %v2589_v53, %v3487_v40 }
 0x176   :  { %2070 = vst [vmem:[%s3549_s3] sm:$0xff] %v2033_v19  ;;  %v2036_v55 = vadd.f32 %v2635_v18, %v1964_v26  ;;  %v2590_v25 = vpop.f32.mrb[64].mxu0 }
 0x177   :  { %v2636_v27 = vpop.f32.mrb[64].mxu1  ;;  %v2591_v28 = vpop.f32.mrb[65].mxu0 }
 0x178   :  { %2071 = vst [vmem:[%s3549_s3 + $0x8] sm:$0xff] %v2036_v55  ;;  %v2592_v29 = vadd.f32 %v2591_v28, %v2590_v25  ;;  %v2637_v4 = vpop.f32.mrb[65].mxu1  ;;  %v2593_v30 = vpop.f32.mrb[66].mxu0 }
 0x179   :  { %v2638_v31 = vadd.f32 %v2637_v4, %v2636_v27  ;;  %v2639_v32 = vpop.f32.mrb[66].mxu1  ;;  %v2594_v33 = vpop.f32.mrb[67].mxu0 }
 0x17a   :  { %v1969_v40 = vadd.f32 %v2592_v29, %v3490_v20  ;;  %v2595_v34 = vadd.f32 %v2594_v33, %v2593_v30  ;;  %v2640_v5 = vpop.f32.mrb[67].mxu1 }
 0x17b   :  { %v2641_v6 = vadd.f32 %v2640_v5, %v2639_v32 }
 0x17c   :  { %v2041_v35 = vadd.f32 %v2638_v31, %v1969_v40  ;;  %v1972_v36 = vadd.f32 %v2595_v34, %v3493_v56 }
 0x17e   :  { %2072 = vst [vmem:[%s3549_s3 + $0x10] sm:$0xff] %v2041_v35  ;;  %v2044_v7 = vadd.f32 %v2641_v6, %v1972_v36  ;;  %v2596_v43 = vpop.f32.mrb[68].mxu0 }
 0x17f   :  { %v2642_v44 = vpop.f32.mrb[68].mxu1  ;;  %v2597_v45 = vpop.f32.mrb[69].mxu0 }
 0x180   :  { %2073 = vst [vmem:[%s3549_s3 + $0x18] sm:$0xff] %v2044_v7  ;;  %v2598_v46 = vadd.f32 %v2597_v45, %v2596_v43  ;;  %v2643_v20 = vpop.f32.mrb[69].mxu1  ;;  %v2599_v47 = vpop.f32.mrb[70].mxu0 }
 0x181   :  { %v2644_v48 = vadd.f32 %v2643_v20, %v2642_v44  ;;  %v2645_v49 = vpop.f32.mrb[70].mxu1  ;;  %v2600_v50 = vpop.f32.mrb[71].mxu0 }
 0x182   :  { %v1977_v56 = vadd.f32 %v2598_v46, %v3496_v39  ;;  %v2601_v51 = vadd.f32 %v2600_v50, %v2599_v47  ;;  %v2646_v21 = vpop.f32.mrb[71].mxu1 }
 0x183   :  { %v2647_v22 = vadd.f32 %v2646_v21, %v2645_v49 }
 0x184   :  { %v2049_v52 = vadd.f32 %v2644_v48, %v1977_v56  ;;  %v1980_v57 = vadd.f32 %v2601_v51, %v3499_v8 }
 0x186   :  { %2074 = vst [vmem:[%s3549_s3 + $0x20] sm:$0xff] %v2049_v52  ;;  %v2052_v23 = vadd.f32 %v2647_v22, %v1980_v57  ;;  %v2602_v24 = vpop.f32.mrb[72].mxu0 }
 0x187   :  { %v2648_v60 = vpop.f32.mrb[72].mxu1  ;;  %v2603_v61 = vpop.f32.mrb[73].mxu0 }
 0x188   :  { %2075 = vst [vmem:[%s3549_s3 + $0x28] sm:$0xff] %v2052_v23  ;;  %v2604_v62 = vadd.f32 %v2603_v61, %v2602_v24  ;;  %v2649_v39 = vpop.f32.mrb[73].mxu1  ;;  %v2605_v63 = vpop.f32.mrb[74].mxu0 }
 0x189   :  { %v2650_v0 = vadd.f32 %v2649_v39, %v2648_v60  ;;  %v2651_v1 = vpop.f32.mrb[74].mxu1  ;;  %v2606_v38 = vpop.f32.mrb[75].mxu0 }
 0x18a   :  { %v1985_v8 = vadd.f32 %v2604_v62, %v3502_v58  ;;  %v2607_v2 = vadd.f32 %v2606_v38, %v2605_v63  ;;  %v2652_v41 = vpop.f32.mrb[75].mxu1 }
 0x18b   :  { %v2653_v3 = vadd.f32 %v2652_v41, %v2651_v1 }
 0x18c   :  { %v2057_v9 = vadd.f32 %v2650_v0, %v1985_v8  ;;  %v1988_v10 = vadd.f32 %v2607_v2, %v3505_v59 }
 0x18e   :  { %2076 = vst [vmem:[%s3549_s3 + $0x30] sm:$0xff] %v2057_v9  ;;  %v2060_v11 = vadd.f32 %v2653_v3, %v1988_v10  ;;  %v2608_v42 = vpop.f32.mrb[76].mxu0 }
 0x18f   :  { %v2654_v12 = vpop.f32.mrb[76].mxu1  ;;  %v2609_v13 = vpop.f32.mrb[77].mxu0 }
 0x190   :  { %2077 = vst [vmem:[%s3549_s3 + $0x38] sm:$0xff] %v2060_v11  ;;  %v2610_v14 = vadd.f32 %v2609_v13, %v2608_v42  ;;  %v2655_v58 = vpop.f32.mrb[77].mxu1  ;;  %v2611_v15 = vpop.f32.mrb[78].mxu0 }
 0x191   :  { %v2656_v16 = vadd.f32 %v2655_v58, %v2654_v12  ;;  %v2657_v17 = vpop.f32.mrb[78].mxu1  ;;  %v2612_v53 = vpop.f32.mrb[79].mxu0 }
 0x192   :  { %v1993_v59 = vadd.f32 %v2610_v14, %v3508_v37  ;;  %v2658_v54 = vpop.f32.mrb[79].mxu1 }
 0x194   :  { %v2065_v18 = vadd.f32 %v2656_v16, %v1993_v59 }
 0x196   :  { %2078 = vst [vmem:[%s3549_s3 + $0x40] sm:$0xff] %v2065_v18 }

</bundles_post_ra>
